<compile_context>
chip_gen: v6e
topology: v6e:2x2x1
jax: 0.10.0
libtpu: 0.0.40
codegen_flags: <defaults>
</compile_context>

<pallas_src>
import functools
import math

import jax
import jax.numpy as jnp
import numpy as np
from jax.experimental import pallas as pl
from jax.experimental.pallas import tpu as pltpu

D_MODEL = 32
NHEAD = 4
DIM_FF = 64
HEAD_DIM = D_MODEL // NHEAD
EPS = 1e-5   # nn.LayerNorm default


# ------------------------------ fused kernel ------------------------------

def _decoder_layer_kernel(
    # activations (batch-major 2-D: rows of batch n are contiguous)
    tgt_ref, mem_ref, qpos_ref, pos_ref,
    # self-attention params (pre-transposed)
    sa_w_in_ref, sa_b_in_ref, sa_w_out_ref, sa_b_out_ref,
    # cross-attention params (pre-transposed)
    ca_w_in_ref, ca_b_in_ref, ca_w_out_ref, ca_b_out_ref,
    # layer norms
    n1_g_ref, n1_b_ref, n2_g_ref, n2_b_ref, n3_g_ref, n3_b_ref,
    # FFN (pre-transposed)
    l1_w_ref, l1_b_ref, l2_w_ref, l2_b_ref,
    # outputs
    out_ref, saw_ref, caw_ref,
    # scratch
    attn_scratch,
    *, L, S, N, E, H):
    """Whole decoder layer in one kernel body; everything resident in VMEM."""
    f32 = jnp.float32
    dh = E // H
    scale = 1.0 / math.sqrt(dh)

    def layer_norm(x, g, b):
        m = jnp.mean(x, axis=-1, keepdims=True)
        c = x - m
        v = jnp.mean(c * c, axis=-1, keepdims=True)
        return c * jax.lax.rsqrt(v + EPS) * g + b

    def attention(q_proj, k_proj, v_proj, w_out, kv_len, w_avg_ref):
        # q_proj: (N*L, E) (already scaled); k_proj/v_proj: (N*kv_len, E).
        # Writes the out-projected (bias-less) result into attn_scratch and
        # the head-averaged attention weights into w_avg_ref[n].
        for n in range(N):                       # unrolled, traced once
            q_n = q_proj[n * L:(n + 1) * L, :]
            k_n = k_proj[n * kv_len:(n + 1) * kv_len, :]
            v_n = v_proj[n * kv_len:(n + 1) * kv_len, :]
            o_n = jnp.zeros((L, E), f32)
            w_n = jnp.zeros((L, kv_len), f32)
            for h in range(H):                   # unrolled
                sl = slice(h * dh, (h + 1) * dh)
                s = jax.lax.dot_general(         # q @ k.T without explicit .T
                    q_n[:, sl], k_n[:, sl], (((1,), (1,)), ((), ())),
                    preferred_element_type=f32)              # (L, kv_len)
                s = s - jnp.max(s, axis=-1, keepdims=True)
                p = jnp.exp(s)
                p = p * pl.reciprocal(jnp.sum(p, axis=-1, keepdims=True))
                w_n = w_n + p
                o_h = jnp.dot(p, v_n[:, sl], preferred_element_type=f32)
                # concat(heads) @ W_out == sum_h head_h @ W_out[h*dh:(h+1)*dh]
                o_n = o_n + jnp.dot(o_h, w_out[sl, :],
                                    preferred_element_type=f32)
            attn_scratch[n * L:(n + 1) * L, :] = o_n
            w_avg_ref[n] = w_n * (1.0 / H)

    tgt = tgt_ref[...]                 # (N*L, E)
    mem = mem_ref[...]                 # (N*S, E)
    qpos = qpos_ref[...]
    mpos = pos_ref[...]

    # -------- self-attention: fused QK projection (shared source), V separate
    sa_w_in = sa_w_in_ref[...]         # (E, 3E)
    sa_b_in = sa_b_in_ref[...]         # (1, 3E)
    qk_src = tgt + qpos
    sa_qk = (jnp.dot(qk_src, sa_w_in[:, :2 * E], preferred_element_type=f32)
             + sa_b_in[:, :2 * E])
    sa_v = (jnp.dot(tgt, sa_w_in[:, 2 * E:], preferred_element_type=f32)
            + sa_b_in[:, 2 * E:])
    sa_q = sa_qk[:, :E] * scale        # fold 1/sqrt(dh) into Q
    sa_k = sa_qk[:, E:]
    attention(sa_q, sa_k, sa_v, sa_w_out_ref[...], L, saw_ref)
    x1 = layer_norm(tgt + attn_scratch[...] + sa_b_out_ref[...],
                    n1_g_ref[...], n1_b_ref[...])

    # -------- cross-attention (Q from x1+query_pos, K from memory+pos, V mem)
    ca_w_in = ca_w_in_ref[...]
    ca_b_in = ca_b_in_ref[...]
    ca_q = (jnp.dot(x1 + qpos, ca_w_in[:, :E], preferred_element_type=f32)
            + ca_b_in[:, :E]) * scale
    ca_k = (jnp.dot(mem + mpos, ca_w_in[:, E:2 * E], preferred_element_type=f32)
            + ca_b_in[:, E:2 * E])
    ca_v = (jnp.dot(mem, ca_w_in[:, 2 * E:], preferred_element_type=f32)
            + ca_b_in[:, 2 * E:])
    attention(ca_q, ca_k, ca_v, ca_w_out_ref[...], S, caw_ref)
    x2 = layer_norm(x1 + attn_scratch[...] + ca_b_out_ref[...],
                    n2_g_ref[...], n2_b_ref[...])

    # -------- FFN: linear1 -> ReLU -> linear2, residual + LayerNorm
    hdn = jnp.maximum(
        jnp.dot(x2, l1_w_ref[...], preferred_element_type=f32) + l1_b_ref[...],
        0.0)
    ff = jnp.dot(hdn, l2_w_ref[...], preferred_element_type=f32) + l2_b_ref[...]
    out_ref[...] = layer_norm(x2 + ff, n3_g_ref[...], n3_b_ref[...])


# ------------------------------ wrappers ------------------------------

def prepare_params(params):
    """One-time conversion of PyTorch-layout parameters into kernel layout
    (pre-transposed (K,N) weights, 2-D biases)."""
    E, F = D_MODEL, DIM_FF

    def attn(p):
        return (jnp.asarray(p["in_w"]).T,                   # (E, 3E)
                jnp.asarray(p["in_b"]).reshape(1, 3 * E),
                jnp.asarray(p["out_w"]).T,                  # (E, E)
                jnp.asarray(p["out_b"]).reshape(1, E))

    sa_w_in, sa_b_in, sa_w_out, sa_b_out = attn(params["self_attn"])
    ca_w_in, ca_b_in, ca_w_out, ca_b_out = attn(params["cross_attn"])
    return {
        "sa_w_in": sa_w_in, "sa_b_in": sa_b_in,
        "sa_w_out": sa_w_out, "sa_b_out": sa_b_out,
        "ca_w_in": ca_w_in, "ca_b_in": ca_b_in,
        "ca_w_out": ca_w_out, "ca_b_out": ca_b_out,
        "n1_g": params["norm1_g"].reshape(1, E), "n1_b": params["norm1_b"].reshape(1, E),
        "n2_g": params["norm2_g"].reshape(1, E), "n2_b": params["norm2_b"].reshape(1, E),
        "n3_g": params["norm3_g"].reshape(1, E), "n3_b": params["norm3_b"].reshape(1, E),
        "l1_w": jnp.asarray(params["lin1_w"]).T, "l1_b": params["lin1_b"].reshape(1, F),
        "l2_w": jnp.asarray(params["lin2_w"]).T, "l2_b": params["lin2_b"].reshape(1, E),
    }


def decoder_layer_forward(prepared, tgt, memory, pos=None, query_pos=None):
    """forward_post (normalize_before=False); dropout = identity (eval)."""
    L, N, E = tgt.shape
    S = memory.shape[0]
    H = NHEAD
    F = DIM_FF

    qp = query_pos if query_pos is not None else jnp.zeros_like(tgt)
    mp = pos if pos is not None else jnp.zeros_like(memory)

    # sequence-first (L, N, E) -> batch-major 2-D (N*L, E); tiny, done once
    # at kernel entry so the kernel only uses contiguous static slices.
    tgt_b = tgt.transpose(1, 0, 2).reshape(N * L, E)
    mem_b = memory.transpose(1, 0, 2).reshape(N * S, E)
    qp_b = qp.transpose(1, 0, 2).reshape(N * L, E)
    mp_b = mp.transpose(1, 0, 2).reshape(N * S, E)

    def vspec(shape):
        zeros = (0,) * len(shape)
        return pl.BlockSpec(shape, lambda i, _z=zeros: _z)

    kernel = functools.partial(_decoder_layer_kernel, L=L, S=S, N=N, E=E, H=H)

    out2d, self_attn, cross_attn = pl.pallas_call(
        kernel,
        grid=(1,),
        out_shape=(jax.ShapeDtypeStruct((N * L, E), jnp.float32),
                   jax.ShapeDtypeStruct((N, L, L), jnp.float32),
                   jax.ShapeDtypeStruct((N, L, S), jnp.float32)),
        in_specs=[
            # activations
            vspec((N * L, E)), vspec((N * S, E)), vspec((N * L, E)), vspec((N * S, E)),
            # self-attention
            vspec((E, 3 * E)), vspec((1, 3 * E)), vspec((E, E)), vspec((1, E)),
            # cross-attention
            vspec((E, 3 * E)), vspec((1, 3 * E)), vspec((E, E)), vspec((1, E)),
            # layer norms
            vspec((1, E)), vspec((1, E)), vspec((1, E)),
            vspec((1, E)), vspec((1, E)), vspec((1, E)),
            # FFN
            vspec((E, F)), vspec((1, F)), vspec((F, E)), vspec((1, E)),
        ],
        out_specs=(vspec((N * L, E)), vspec((N, L, L)), vspec((N, L, S))),
        scratch_shapes=[pltpu.VMEM((N * L, E), jnp.float32)],
        compiler_params=pltpu.CompilerParams(
            dimension_semantics=("arbitrary",)),
    )(tgt_b, mem_b, qp_b, mp_b,
      prepared["sa_w_in"], prepared["sa_b_in"], prepared["sa_w_out"], prepared["sa_b_out"],
      prepared["ca_w_in"], prepared["ca_b_in"], prepared["ca_w_out"], prepared["ca_b_out"],
      prepared["n1_g"], prepared["n1_b"], prepared["n2_g"], prepared["n2_b"],
      prepared["n3_g"], prepared["n3_b"],
      prepared["l1_w"], prepared["l1_b"], prepared["l2_w"], prepared["l2_b"])

    out = out2d.reshape(N, L, E).transpose(1, 0, 2)   # back to (L, N, E)
    return out, self_attn, cross_attn


# --------------------------- pure-JAX reference ---------------------------

def _ref_ln(x, g, b):
    m = x.mean(-1, keepdims=True)
    v = ((x - m) ** 2).mean(-1, keepdims=True)
    return (x - m) / jnp.sqrt(v + EPS) * g + b


def _ref_mha(query, key, value, p):
    L, N, E = query.shape
    S = key.shape[0]
    H, dh = NHEAD, HEAD_DIM
    Wq, Wk, Wv = p["in_w"][:E], p["in_w"][E:2 * E], p["in_w"][2 * E:]
    bq, bk, bv = p["in_b"][:E], p["in_b"][E:2 * E], p["in_b"][2 * E:]
    q = (query.reshape(L * N, E) @ Wq.T + bq).reshape(L, N, H, dh).transpose(1, 2, 0, 3)
    k = (key.reshape(S * N, E) @ Wk.T + bk).reshape(S, N, H, dh).transpose(1, 2, 0, 3)
    v = (value.reshape(S * N, E) @ Wv.T + bv).reshape(S, N, H, dh).transpose(1, 2, 0, 3)
    s = jnp.einsum("nhld,nhsd->nhls", q, k) / math.sqrt(dh)
    w = jax.nn.softmax(s, axis=-1)
    o = jnp.einsum("nhls,nhsd->nhld", w, v)
    o = o.transpose(2, 0, 1, 3).reshape(L * N, E)
    o = (o @ p["out_w"].T + p["out_b"]).reshape(L, N, E)
    return o, w.mean(axis=1)


def _ref_forward(params, tgt, memory, pos, query_pos):
    q = tgt + query_pos
    t2, sa = _ref_mha(q, q, tgt, params["self_attn"])
    tgt = _ref_ln(tgt + t2, params["norm1_g"], params["norm1_b"])
    q2 = tgt + query_pos
    k2 = memory + pos
    t2, ca = _ref_mha(q2, k2, memory, params["cross_attn"])
    tgt = _ref_ln(tgt + t2, params["norm2_g"], params["norm2_b"])
    h = jnp.maximum(tgt @ params["lin1_w"].T + params["lin1_b"], 0.0)
    t2 = h @ params["lin2_w"].T + params["lin2_b"]
    tgt = _ref_ln(tgt + t2, params["norm3_g"], params["norm3_b"])
    return tgt, sa, ca


# ----------------------------------- main -----------------------------------

def _init_params(key):
    ks = jax.random.split(key, 12)
    sc = 0.05

    def attn_params(k0, k1, k2, k3):
        return {
            "in_w": jax.random.normal(k0, (3 * D_MODEL, D_MODEL), jnp.float32) * sc,
            "in_b": jax.random.normal(k1, (3 * D_MODEL,), jnp.float32) * sc,
            "out_w": jax.random.normal(k2, (D_MODEL, D_MODEL), jnp.float32) * sc,
            "out_b": jax.random.normal(k3, (D_MODEL,), jnp.float32) * sc,
        }

    return {
        "self_attn": attn_params(ks[0], ks[1], ks[2], ks[3]),
        "cross_attn": attn_params(ks[4], ks[5], ks[6], ks[7]),
        "norm1_g": jnp.ones((D_MODEL,), jnp.float32),
        "norm1_b": jnp.zeros((D_MODEL,), jnp.float32),
        "norm2_g": jnp.ones((D_MODEL,), jnp.float32),
        "norm2_b": jnp.zeros((D_MODEL,), jnp.float32),
        "norm3_g": jnp.ones((D_MODEL,), jnp.float32),
        "norm3_b": jnp.zeros((D_MODEL,), jnp.float32),
        "lin1_w": jax.random.normal(ks[8], (DIM_FF, D_MODEL), jnp.float32) * sc,
        "lin1_b": jax.random.normal(ks[9], (DIM_FF,), jnp.float32) * sc,
        "lin2_w": jax.random.normal(ks[10], (D_MODEL, DIM_FF), jnp.float32) * sc,
        "lin2_b": jax.random.normal(ks[11], (D_MODEL,), jnp.float32) * sc,
    }


if __name__ == "__main__":
    L, S, N = 8, 16, 2   # tgt len, memory len, batch

    key = jax.random.PRNGKey(0)
    k_in, k_par = jax.random.split(key)
    ki = jax.random.split(k_in, 4)
    tgt = jax.random.normal(ki[0], (L, N, D_MODEL), jnp.float32)
    memory = jax.random.normal(ki[1], (S, N, D_MODEL), jnp.float32)
    query_pos = jax.random.normal(ki[2], (L, N, D_MODEL), jnp.float32)
    pos = jax.random.normal(ki[3], (S, N, D_MODEL), jnp.float32)

    params = _init_params(k_par)
    prepared = prepare_params(params)   # one-time weight pre-transpose

    fwd = jax.jit(decoder_layer_forward)
    out, self_attn, cross_attn = fwd(prepared, tgt, memory,
                                     pos=pos, query_pos=query_pos)
    jax.block_until_ready((out, self_attn, cross_attn))

    # correctness vs. pure-JAX reference of the same math
    ref_out, ref_sa, ref_ca = _ref_forward(params, tgt, memory, pos, query_pos)
    np.testing.assert_allclose(np.asarray(out), np.asarray(ref_out), rtol=1e-4, atol=1e-4)
    np.testing.assert_allclose(np.asarray(self_attn), np.asarray(ref_sa), rtol=1e-4, atol=1e-4)
    np.testing.assert_allclose(np.asarray(cross_attn), np.asarray(ref_ca), rtol=1e-4, atol=1e-4)

    assert out.shape == (L, N, D_MODEL)
    assert self_attn.shape == (N, L, L)
    assert cross_attn.shape == (N, L, S)
    print("KERNEL_OK")
</pallas_src>

<mosaic_0001>
module attributes {stable_mosaic.version = 11 : i64} {
  func.func @_decoder_layer_kernel(%arg0: i32, %arg1: memref<16x32xf32, #tpu.memory_space<vmem>>, %arg2: memref<32x32xf32, #tpu.memory_space<vmem>>, %arg3: memref<16x32xf32, #tpu.memory_space<vmem>>, %arg4: memref<32x32xf32, #tpu.memory_space<vmem>>, %arg5: memref<32x96xf32, #tpu.memory_space<vmem>>, %arg6: memref<1x96xf32, #tpu.memory_space<vmem>>, %arg7: memref<32x32xf32, #tpu.memory_space<vmem>>, %arg8: memref<1x32xf32, #tpu.memory_space<vmem>>, %arg9: memref<32x96xf32, #tpu.memory_space<vmem>>, %arg10: memref<1x96xf32, #tpu.memory_space<vmem>>, %arg11: memref<32x32xf32, #tpu.memory_space<vmem>>, %arg12: memref<1x32xf32, #tpu.memory_space<vmem>>, %arg13: memref<1x32xf32, #tpu.memory_space<vmem>>, %arg14: memref<1x32xf32, #tpu.memory_space<vmem>>, %arg15: memref<1x32xf32, #tpu.memory_space<vmem>>, %arg16: memref<1x32xf32, #tpu.memory_space<vmem>>, %arg17: memref<1x32xf32, #tpu.memory_space<vmem>>, %arg18: memref<1x32xf32, #tpu.memory_space<vmem>>, %arg19: memref<32x64xf32, #tpu.memory_space<vmem>>, %arg20: memref<1x64xf32, #tpu.memory_space<vmem>>, %arg21: memref<64x32xf32, #tpu.memory_space<vmem>>, %arg22: memref<1x32xf32, #tpu.memory_space<vmem>>, %arg23: memref<16x32xf32, #tpu.memory_space<vmem>>, %arg24: memref<2x8x8xf32, #tpu.memory_space<vmem>>, %arg25: memref<2x8x16xf32, #tpu.memory_space<vmem>>, %arg26: memref<16x32xf32, #tpu.memory_space<vmem>>) attributes {dimension_semantics = [#tpu.dimension_semantics<arbitrary>], iteration_bounds = array<i64: 1>, scalar_prefetch = 0 : i64, scratch_operands = 1 : i64, tpu.core_type = #tpu.core_type<tc>, window_params = [{pipeline_mode = #tpu.pipeline_mode<synchronous>, transform_indices = @transform_0, window_bounds = array<i64: 16, 32>}, {pipeline_mode = #tpu.pipeline_mode<synchronous>, transform_indices = @transform_1, window_bounds = array<i64: 32, 32>}, {pipeline_mode = #tpu.pipeline_mode<synchronous>, transform_indices = @transform_2, window_bounds = array<i64: 16, 32>}, {pipeline_mode = #tpu.pipeline_mode<synchronous>, transform_indices = @transform_3, window_bounds = array<i64: 32, 32>}, {pipeline_mode = #tpu.pipeline_mode<synchronous>, transform_indices = @transform_4, window_bounds = array<i64: 32, 96>}, {pipeline_mode = #tpu.pipeline_mode<synchronous>, transform_indices = @transform_5, window_bounds = array<i64: 1, 96>}, {pipeline_mode = #tpu.pipeline_mode<synchronous>, transform_indices = @transform_6, window_bounds = array<i64: 32, 32>}, {pipeline_mode = #tpu.pipeline_mode<synchronous>, transform_indices = @transform_7, window_bounds = array<i64: 1, 32>}, {pipeline_mode = #tpu.pipeline_mode<synchronous>, transform_indices = @transform_8, window_bounds = array<i64: 32, 96>}, {pipeline_mode = #tpu.pipeline_mode<synchronous>, transform_indices = @transform_9, window_bounds = array<i64: 1, 96>}, {pipeline_mode = #tpu.pipeline_mode<synchronous>, transform_indices = @transform_10, window_bounds = array<i64: 32, 32>}, {pipeline_mode = #tpu.pipeline_mode<synchronous>, transform_indices = @transform_11, window_bounds = array<i64: 1, 32>}, {pipeline_mode = #tpu.pipeline_mode<synchronous>, transform_indices = @transform_12, window_bounds = array<i64: 1, 32>}, {pipeline_mode = #tpu.pipeline_mode<synchronous>, transform_indices = @transform_13, window_bounds = array<i64: 1, 32>}, {pipeline_mode = #tpu.pipeline_mode<synchronous>, transform_indices = @transform_14, window_bounds = array<i64: 1, 32>}, {pipeline_mode = #tpu.pipeline_mode<synchronous>, transform_indices = @transform_15, window_bounds = array<i64: 1, 32>}, {pipeline_mode = #tpu.pipeline_mode<synchronous>, transform_indices = @transform_16, window_bounds = array<i64: 1, 32>}, {pipeline_mode = #tpu.pipeline_mode<synchronous>, transform_indices = @transform_17, window_bounds = array<i64: 1, 32>}, {pipeline_mode = #tpu.pipeline_mode<synchronous>, transform_indices = @transform_18, window_bounds = array<i64: 32, 64>}, {pipeline_mode = #tpu.pipeline_mode<synchronous>, transform_indices = @transform_19, window_bounds = array<i64: 1, 64>}, {pipeline_mode = #tpu.pipeline_mode<synchronous>, transform_indices = @transform_20, window_bounds = array<i64: 64, 32>}, {pipeline_mode = #tpu.pipeline_mode<synchronous>, transform_indices = @transform_21, window_bounds = array<i64: 1, 32>}, {pipeline_mode = #tpu.pipeline_mode<synchronous>, transform_indices = @transform_22, window_bounds = array<i64: 16, 32>}, {pipeline_mode = #tpu.pipeline_mode<synchronous>, transform_indices = @transform_23, window_bounds = array<i64: 2, 8, 8>}, {pipeline_mode = #tpu.pipeline_mode<synchronous>, transform_indices = @transform_24, window_bounds = array<i64: 2, 8, 16>}]} {
    %c0 = arith.constant 0 : index
    %c0_0 = arith.constant 0 : index
    %0 = vector.load %arg1[%c0, %c0_0] : memref<16x32xf32, #tpu.memory_space<vmem>>, vector<16x32xf32>
    %c0_1 = arith.constant 0 : index
    %c0_2 = arith.constant 0 : index
    %1 = vector.load %arg2[%c0_1, %c0_2] : memref<32x32xf32, #tpu.memory_space<vmem>>, vector<32x32xf32>
    %c0_3 = arith.constant 0 : index
    %c0_4 = arith.constant 0 : index
    %2 = vector.load %arg3[%c0_3, %c0_4] : memref<16x32xf32, #tpu.memory_space<vmem>>, vector<16x32xf32>
    %c0_5 = arith.constant 0 : index
    %c0_6 = arith.constant 0 : index
    %3 = vector.load %arg4[%c0_5, %c0_6] : memref<32x32xf32, #tpu.memory_space<vmem>>, vector<32x32xf32>
    %c0_7 = arith.constant 0 : index
    %c0_8 = arith.constant 0 : index
    %4 = vector.load %arg5[%c0_7, %c0_8] : memref<32x96xf32, #tpu.memory_space<vmem>>, vector<32x96xf32>
    %c0_9 = arith.constant 0 : index
    %c0_10 = arith.constant 0 : index
    %5 = vector.load %arg6[%c0_9, %c0_10] : memref<1x96xf32, #tpu.memory_space<vmem>>, vector<1x96xf32>
    %6 = arith.addf %0, %2 : vector<16x32xf32>
    %7 = vector.extract_strided_slice %4 {offsets = [0, 0], sizes = [32, 64], strides = [1, 1]} : vector<32x96xf32> to vector<32x64xf32>
    %cst = arith.constant dense<0.000000e+00> : vector<16x64xf32>
    %8 = tpu.matmul %6, %7, %cst {dimension_numbers = #tpu.dot_dimension_numbers<[1], [0], [0], [1], [0, 0, 1, 1], [], []>} : vector<16x32xf32>, vector<32x64xf32>, vector<16x64xf32> -> vector<16x64xf32>
    %9 = vector.extract_strided_slice %5 {offsets = [0, 0], sizes = [1, 64], strides = [1, 1]} : vector<1x96xf32> to vector<1x64xf32>
    %10 = vector.broadcast %9 : vector<1x64xf32> to vector<16x64xf32>
    %11 = arith.addf %8, %10 : vector<16x64xf32>
    %12 = vector.extract_strided_slice %4 {offsets = [0, 64], sizes = [32, 32], strides = [1, 1]} : vector<32x96xf32> to vector<32x32xf32>
    %cst_11 = arith.constant dense<0.000000e+00> : vector<16x32xf32>
    %13 = tpu.matmul %0, %12, %cst_11 {dimension_numbers = #tpu.dot_dimension_numbers<[1], [0], [0], [1], [0, 0, 1, 1], [], []>} : vector<16x32xf32>, vector<32x32xf32>, vector<16x32xf32> -> vector<16x32xf32>
    %14 = vector.extract_strided_slice %5 {offsets = [0, 64], sizes = [1, 32], strides = [1, 1]} : vector<1x96xf32> to vector<1x32xf32>
    %15 = vector.broadcast %14 : vector<1x32xf32> to vector<16x32xf32>
    %16 = arith.addf %13, %15 : vector<16x32xf32>
    %17 = vector.extract_strided_slice %11 {offsets = [0, 0], sizes = [16, 32], strides = [1, 1]} : vector<16x64xf32> to vector<16x32xf32>
    %cst_12 = arith.constant 0.353553385 : f32
    %18 = vector.broadcast %cst_12 : f32 to vector<16x32xf32>
    %19 = arith.mulf %17, %18 : vector<16x32xf32>
    %20 = vector.extract_strided_slice %11 {offsets = [0, 32], sizes = [16, 32], strides = [1, 1]} : vector<16x64xf32> to vector<16x32xf32>
    %c0_13 = arith.constant 0 : index
    %c0_14 = arith.constant 0 : index
    %21 = vector.load %arg7[%c0_13, %c0_14] : memref<32x32xf32, #tpu.memory_space<vmem>>, vector<32x32xf32>
    %22 = vector.extract_strided_slice %19 {offsets = [0, 0], sizes = [8, 32], strides = [1, 1]} : vector<16x32xf32> to vector<8x32xf32>
    %23 = vector.extract_strided_slice %20 {offsets = [0, 0], sizes = [8, 32], strides = [1, 1]} : vector<16x32xf32> to vector<8x32xf32>
    %24 = vector.extract_strided_slice %16 {offsets = [0, 0], sizes = [8, 32], strides = [1, 1]} : vector<16x32xf32> to vector<8x32xf32>
    %cst_15 = arith.constant 0.000000e+00 : f32
    %25 = vector.broadcast %cst_15 : f32 to vector<8x32xf32>
    %cst_16 = arith.constant 0.000000e+00 : f32
    %26 = vector.broadcast %cst_16 : f32 to vector<8x8xf32>
    %27 = vector.extract_strided_slice %22 {offsets = [0, 0], sizes = [8, 8], strides = [1, 1]} : vector<8x32xf32> to vector<8x8xf32>
    %28 = vector.extract_strided_slice %23 {offsets = [0, 0], sizes = [8, 8], strides = [1, 1]} : vector<8x32xf32> to vector<8x8xf32>
    %cst_17 = arith.constant dense<0.000000e+00> : vector<8x8xf32>
    %29 = tpu.matmul %27, %28, %cst_17 {dimension_numbers = #tpu.dot_dimension_numbers<[1], [1], [0], [0], [0, 0, 1, 0], [], []>} : vector<8x8xf32>, vector<8x8xf32>, vector<8x8xf32> -> vector<8x8xf32>
    %cst_18 = arith.constant dense<0xFF800000> : vector<8xf32>
    %30 = vector.multi_reduction <maximumf>, %29, %cst_18 [1] : vector<8x8xf32> to vector<8xf32>
    %31 = vector.shape_cast %30 : vector<8xf32> to vector<8x1xf32>
    %32 = vector.broadcast %31 : vector<8x1xf32> to vector<8x8xf32>
    %33 = arith.subf %29, %32 : vector<8x8xf32>
    %34 = math.exp %33 : vector<8x8xf32>
    %cst_19 = arith.constant dense<0.000000e+00> : vector<8xf32>
    %35 = vector.multi_reduction <add>, %34, %cst_19 [1] : vector<8x8xf32> to vector<8xf32>
    %36 = vector.shape_cast %35 : vector<8xf32> to vector<8x1xf32>
    %37 = tpu.reciprocal %36 : vector<8x1xf32> -> vector<8x1xf32>
    %38 = vector.broadcast %37 : vector<8x1xf32> to vector<8x8xf32>
    %39 = arith.mulf %34, %38 : vector<8x8xf32>
    %40 = arith.addf %26, %39 : vector<8x8xf32>
    %41 = vector.extract_strided_slice %24 {offsets = [0, 0], sizes = [8, 8], strides = [1, 1]} : vector<8x32xf32> to vector<8x8xf32>
    %cst_20 = arith.constant dense<0.000000e+00> : vector<8x8xf32>
    %42 = tpu.matmul %39, %41, %cst_20 {dimension_numbers = #tpu.dot_dimension_numbers<[1], [0], [0], [1], [0, 0, 1, 1], [], []>} : vector<8x8xf32>, vector<8x8xf32>, vector<8x8xf32> -> vector<8x8xf32>
    %43 = vector.extract_strided_slice %21 {offsets = [0, 0], sizes = [8, 32], strides = [1, 1]} : vector<32x32xf32> to vector<8x32xf32>
    %cst_21 = arith.constant dense<0.000000e+00> : vector<8x32xf32>
    %44 = tpu.matmul %42, %43, %cst_21 {dimension_numbers = #tpu.dot_dimension_numbers<[1], [0], [0], [1], [0, 0, 1, 1], [], []>} : vector<8x8xf32>, vector<8x32xf32>, vector<8x32xf32> -> vector<8x32xf32>
    %45 = arith.addf %25, %44 : vector<8x32xf32>
    %46 = vector.extract_strided_slice %22 {offsets = [0, 8], sizes = [8, 8], strides = [1, 1]} : vector<8x32xf32> to vector<8x8xf32>
    %47 = vector.extract_strided_slice %23 {offsets = [0, 8], sizes = [8, 8], strides = [1, 1]} : vector<8x32xf32> to vector<8x8xf32>
    %cst_22 = arith.constant dense<0.000000e+00> : vector<8x8xf32>
    %48 = tpu.matmul %46, %47, %cst_22 {dimension_numbers = #tpu.dot_dimension_numbers<[1], [1], [0], [0], [0, 0, 1, 0], [], []>} : vector<8x8xf32>, vector<8x8xf32>, vector<8x8xf32> -> vector<8x8xf32>
    %cst_23 = arith.constant dense<0xFF800000> : vector<8xf32>
    %49 = vector.multi_reduction <maximumf>, %48, %cst_23 [1] : vector<8x8xf32> to vector<8xf32>
    %50 = vector.shape_cast %49 : vector<8xf32> to vector<8x1xf32>
    %51 = vector.broadcast %50 : vector<8x1xf32> to vector<8x8xf32>
    %52 = arith.subf %48, %51 : vector<8x8xf32>
    %53 = math.exp %52 : vector<8x8xf32>
    %cst_24 = arith.constant dense<0.000000e+00> : vector<8xf32>
    %54 = vector.multi_reduction <add>, %53, %cst_24 [1] : vector<8x8xf32> to vector<8xf32>
    %55 = vector.shape_cast %54 : vector<8xf32> to vector<8x1xf32>
    %56 = tpu.reciprocal %55 : vector<8x1xf32> -> vector<8x1xf32>
    %57 = vector.broadcast %56 : vector<8x1xf32> to vector<8x8xf32>
    %58 = arith.mulf %53, %57 : vector<8x8xf32>
    %59 = arith.addf %40, %58 : vector<8x8xf32>
    %60 = vector.extract_strided_slice %24 {offsets = [0, 8], sizes = [8, 8], strides = [1, 1]} : vector<8x32xf32> to vector<8x8xf32>
    %cst_25 = arith.constant dense<0.000000e+00> : vector<8x8xf32>
    %61 = tpu.matmul %58, %60, %cst_25 {dimension_numbers = #tpu.dot_dimension_numbers<[1], [0], [0], [1], [0, 0, 1, 1], [], []>} : vector<8x8xf32>, vector<8x8xf32>, vector<8x8xf32> -> vector<8x8xf32>
    %62 = vector.extract_strided_slice %21 {offsets = [8, 0], sizes = [8, 32], strides = [1, 1]} : vector<32x32xf32> to vector<8x32xf32>
    %cst_26 = arith.constant dense<0.000000e+00> : vector<8x32xf32>
    %63 = tpu.matmul %61, %62, %cst_26 {dimension_numbers = #tpu.dot_dimension_numbers<[1], [0], [0], [1], [0, 0, 1, 1], [], []>} : vector<8x8xf32>, vector<8x32xf32>, vector<8x32xf32> -> vector<8x32xf32>
    %64 = arith.addf %45, %63 : vector<8x32xf32>
    %65 = vector.extract_strided_slice %22 {offsets = [0, 16], sizes = [8, 8], strides = [1, 1]} : vector<8x32xf32> to vector<8x8xf32>
    %66 = vector.extract_strided_slice %23 {offsets = [0, 16], sizes = [8, 8], strides = [1, 1]} : vector<8x32xf32> to vector<8x8xf32>
    %cst_27 = arith.constant dense<0.000000e+00> : vector<8x8xf32>
    %67 = tpu.matmul %65, %66, %cst_27 {dimension_numbers = #tpu.dot_dimension_numbers<[1], [1], [0], [0], [0, 0, 1, 0], [], []>} : vector<8x8xf32>, vector<8x8xf32>, vector<8x8xf32> -> vector<8x8xf32>
    %cst_28 = arith.constant dense<0xFF800000> : vector<8xf32>
    %68 = vector.multi_reduction <maximumf>, %67, %cst_28 [1] : vector<8x8xf32> to vector<8xf32>
    %69 = vector.shape_cast %68 : vector<8xf32> to vector<8x1xf32>
    %70 = vector.broadcast %69 : vector<8x1xf32> to vector<8x8xf32>
    %71 = arith.subf %67, %70 : vector<8x8xf32>
    %72 = math.exp %71 : vector<8x8xf32>
    %cst_29 = arith.constant dense<0.000000e+00> : vector<8xf32>
    %73 = vector.multi_reduction <add>, %72, %cst_29 [1] : vector<8x8xf32> to vector<8xf32>
    %74 = vector.shape_cast %73 : vector<8xf32> to vector<8x1xf32>
    %75 = tpu.reciprocal %74 : vector<8x1xf32> -> vector<8x1xf32>
    %76 = vector.broadcast %75 : vector<8x1xf32> to vector<8x8xf32>
    %77 = arith.mulf %72, %76 : vector<8x8xf32>
    %78 = arith.addf %59, %77 : vector<8x8xf32>
    %79 = vector.extract_strided_slice %24 {offsets = [0, 16], sizes = [8, 8], strides = [1, 1]} : vector<8x32xf32> to vector<8x8xf32>
    %cst_30 = arith.constant dense<0.000000e+00> : vector<8x8xf32>
    %80 = tpu.matmul %77, %79, %cst_30 {dimension_numbers = #tpu.dot_dimension_numbers<[1], [0], [0], [1], [0, 0, 1, 1], [], []>} : vector<8x8xf32>, vector<8x8xf32>, vector<8x8xf32> -> vector<8x8xf32>
    %81 = vector.extract_strided_slice %21 {offsets = [16, 0], sizes = [8, 32], strides = [1, 1]} : vector<32x32xf32> to vector<8x32xf32>
    %cst_31 = arith.constant dense<0.000000e+00> : vector<8x32xf32>
    %82 = tpu.matmul %80, %81, %cst_31 {dimension_numbers = #tpu.dot_dimension_numbers<[1], [0], [0], [1], [0, 0, 1, 1], [], []>} : vector<8x8xf32>, vector<8x32xf32>, vector<8x32xf32> -> vector<8x32xf32>
    %83 = arith.addf %64, %82 : vector<8x32xf32>
    %84 = vector.extract_strided_slice %22 {offsets = [0, 24], sizes = [8, 8], strides = [1, 1]} : vector<8x32xf32> to vector<8x8xf32>
    %85 = vector.extract_strided_slice %23 {offsets = [0, 24], sizes = [8, 8], strides = [1, 1]} : vector<8x32xf32> to vector<8x8xf32>
    %cst_32 = arith.constant dense<0.000000e+00> : vector<8x8xf32>
    %86 = tpu.matmul %84, %85, %cst_32 {dimension_numbers = #tpu.dot_dimension_numbers<[1], [1], [0], [0], [0, 0, 1, 0], [], []>} : vector<8x8xf32>, vector<8x8xf32>, vector<8x8xf32> -> vector<8x8xf32>
    %cst_33 = arith.constant dense<0xFF800000> : vector<8xf32>
    %87 = vector.multi_reduction <maximumf>, %86, %cst_33 [1] : vector<8x8xf32> to vector<8xf32>
    %88 = vector.shape_cast %87 : vector<8xf32> to vector<8x1xf32>
    %89 = vector.broadcast %88 : vector<8x1xf32> to vector<8x8xf32>
    %90 = arith.subf %86, %89 : vector<8x8xf32>
    %91 = math.exp %90 : vector<8x8xf32>
    %cst_34 = arith.constant dense<0.000000e+00> : vector<8xf32>
    %92 = vector.multi_reduction <add>, %91, %cst_34 [1] : vector<8x8xf32> to vector<8xf32>
    %93 = vector.shape_cast %92 : vector<8xf32> to vector<8x1xf32>
    %94 = tpu.reciprocal %93 : vector<8x1xf32> -> vector<8x1xf32>
    %95 = vector.broadcast %94 : vector<8x1xf32> to vector<8x8xf32>
    %96 = arith.mulf %91, %95 : vector<8x8xf32>
    %97 = arith.addf %78, %96 : vector<8x8xf32>
    %98 = vector.extract_strided_slice %24 {offsets = [0, 24], sizes = [8, 8], strides = [1, 1]} : vector<8x32xf32> to vector<8x8xf32>
    %cst_35 = arith.constant dense<0.000000e+00> : vector<8x8xf32>
    %99 = tpu.matmul %96, %98, %cst_35 {dimension_numbers = #tpu.dot_dimension_numbers<[1], [0], [0], [1], [0, 0, 1, 1], [], []>} : vector<8x8xf32>, vector<8x8xf32>, vector<8x8xf32> -> vector<8x8xf32>
    %100 = vector.extract_strided_slice %21 {offsets = [24, 0], sizes = [8, 32], strides = [1, 1]} : vector<32x32xf32> to vector<8x32xf32>
    %cst_36 = arith.constant dense<0.000000e+00> : vector<8x32xf32>
    %101 = tpu.matmul %99, %100, %cst_36 {dimension_numbers = #tpu.dot_dimension_numbers<[1], [0], [0], [1], [0, 0, 1, 1], [], []>} : vector<8x8xf32>, vector<8x32xf32>, vector<8x32xf32> -> vector<8x32xf32>
    %102 = arith.addf %83, %101 : vector<8x32xf32>
    %c0_37 = arith.constant 0 : index
    %c0_38 = arith.constant 0 : index
    %103 = vector.load %arg26[%c0_37, %c0_38] : memref<16x32xf32, #tpu.memory_space<vmem>>, vector<8x32xf32>
    tpu.vector_store %arg26[%c0_37, %c0_38], %102 {strides = array<i32>} : memref<16x32xf32, #tpu.memory_space<vmem>>, vector<8x32xf32>,
    %cst_39 = arith.constant 2.500000e-01 : f32
    %104 = vector.broadcast %cst_39 : f32 to vector<8x8xf32>
    %105 = arith.mulf %97, %104 : vector<8x8xf32>
    %c0_40 = arith.constant 0 : index
    %c0_41 = arith.constant 0 : index
    %c0_42 = arith.constant 0 : index
    %106 = vector.load %arg24[%c0_40, %c0_41, %c0_42] : memref<2x8x8xf32, #tpu.memory_space<vmem>>, vector<1x8x8xf32>
    %107 = vector.shape_cast %106 : vector<1x8x8xf32> to vector<8x8xf32>
    %108 = vector.shape_cast %105 : vector<8x8xf32> to vector<1x8x8xf32>
    tpu.vector_store %arg24[%c0_40, %c0_41, %c0_42], %108 {strides = array<i32>} : memref<2x8x8xf32, #tpu.memory_space<vmem>>, vector<1x8x8xf32>,
    %109 = vector.extract_strided_slice %19 {offsets = [8, 0], sizes = [8, 32], strides = [1, 1]} : vector<16x32xf32> to vector<8x32xf32>
    %110 = vector.extract_strided_slice %20 {offsets = [8, 0], sizes = [8, 32], strides = [1, 1]} : vector<16x32xf32> to vector<8x32xf32>
    %111 = vector.extract_strided_slice %16 {offsets = [8, 0], sizes = [8, 32], strides = [1, 1]} : vector<16x32xf32> to vector<8x32xf32>
    %cst_43 = arith.constant 0.000000e+00 : f32
    %112 = vector.broadcast %cst_43 : f32 to vector<8x32xf32>
    %cst_44 = arith.constant 0.000000e+00 : f32
    %113 = vector.broadcast %cst_44 : f32 to vector<8x8xf32>
    %114 = vector.extract_strided_slice %109 {offsets = [0, 0], sizes = [8, 8], strides = [1, 1]} : vector<8x32xf32> to vector<8x8xf32>
    %115 = vector.extract_strided_slice %110 {offsets = [0, 0], sizes = [8, 8], strides = [1, 1]} : vector<8x32xf32> to vector<8x8xf32>
    %cst_45 = arith.constant dense<0.000000e+00> : vector<8x8xf32>
    %116 = tpu.matmul %114, %115, %cst_45 {dimension_numbers = #tpu.dot_dimension_numbers<[1], [1], [0], [0], [0, 0, 1, 0], [], []>} : vector<8x8xf32>, vector<8x8xf32>, vector<8x8xf32> -> vector<8x8xf32>
    %cst_46 = arith.constant dense<0xFF800000> : vector<8xf32>
    %117 = vector.multi_reduction <maximumf>, %116, %cst_46 [1] : vector<8x8xf32> to vector<8xf32>
    %118 = vector.shape_cast %117 : vector<8xf32> to vector<8x1xf32>
    %119 = vector.broadcast %118 : vector<8x1xf32> to vector<8x8xf32>
    %120 = arith.subf %116, %119 : vector<8x8xf32>
    %121 = math.exp %120 : vector<8x8xf32>
    %cst_47 = arith.constant dense<0.000000e+00> : vector<8xf32>
    %122 = vector.multi_reduction <add>, %121, %cst_47 [1] : vector<8x8xf32> to vector<8xf32>
    %123 = vector.shape_cast %122 : vector<8xf32> to vector<8x1xf32>
    %124 = tpu.reciprocal %123 : vector<8x1xf32> -> vector<8x1xf32>
    %125 = vector.broadcast %124 : vector<8x1xf32> to vector<8x8xf32>
    %126 = arith.mulf %121, %125 : vector<8x8xf32>
    %127 = arith.addf %113, %126 : vector<8x8xf32>
    %128 = vector.extract_strided_slice %111 {offsets = [0, 0], sizes = [8, 8], strides = [1, 1]} : vector<8x32xf32> to vector<8x8xf32>
    %cst_48 = arith.constant dense<0.000000e+00> : vector<8x8xf32>
    %129 = tpu.matmul %126, %128, %cst_48 {dimension_numbers = #tpu.dot_dimension_numbers<[1], [0], [0], [1], [0, 0, 1, 1], [], []>} : vector<8x8xf32>, vector<8x8xf32>, vector<8x8xf32> -> vector<8x8xf32>
    %130 = vector.extract_strided_slice %21 {offsets = [0, 0], sizes = [8, 32], strides = [1, 1]} : vector<32x32xf32> to vector<8x32xf32>
    %cst_49 = arith.constant dense<0.000000e+00> : vector<8x32xf32>
    %131 = tpu.matmul %129, %130, %cst_49 {dimension_numbers = #tpu.dot_dimension_numbers<[1], [0], [0], [1], [0, 0, 1, 1], [], []>} : vector<8x8xf32>, vector<8x32xf32>, vector<8x32xf32> -> vector<8x32xf32>
    %132 = arith.addf %112, %131 : vector<8x32xf32>
    %133 = vector.extract_strided_slice %109 {offsets = [0, 8], sizes = [8, 8], strides = [1, 1]} : vector<8x32xf32> to vector<8x8xf32>
    %134 = vector.extract_strided_slice %110 {offsets = [0, 8], sizes = [8, 8], strides = [1, 1]} : vector<8x32xf32> to vector<8x8xf32>
    %cst_50 = arith.constant dense<0.000000e+00> : vector<8x8xf32>
    %135 = tpu.matmul %133, %134, %cst_50 {dimension_numbers = #tpu.dot_dimension_numbers<[1], [1], [0], [0], [0, 0, 1, 0], [], []>} : vector<8x8xf32>, vector<8x8xf32>, vector<8x8xf32> -> vector<8x8xf32>
    %cst_51 = arith.constant dense<0xFF800000> : vector<8xf32>
    %136 = vector.multi_reduction <maximumf>, %135, %cst_51 [1] : vector<8x8xf32> to vector<8xf32>
    %137 = vector.shape_cast %136 : vector<8xf32> to vector<8x1xf32>
    %138 = vector.broadcast %137 : vector<8x1xf32> to vector<8x8xf32>
    %139 = arith.subf %135, %138 : vector<8x8xf32>
    %140 = math.exp %139 : vector<8x8xf32>
    %cst_52 = arith.constant dense<0.000000e+00> : vector<8xf32>
    %141 = vector.multi_reduction <add>, %140, %cst_52 [1] : vector<8x8xf32> to vector<8xf32>
    %142 = vector.shape_cast %141 : vector<8xf32> to vector<8x1xf32>
    %143 = tpu.reciprocal %142 : vector<8x1xf32> -> vector<8x1xf32>
    %144 = vector.broadcast %143 : vector<8x1xf32> to vector<8x8xf32>
    %145 = arith.mulf %140, %144 : vector<8x8xf32>
    %146 = arith.addf %127, %145 : vector<8x8xf32>
    %147 = vector.extract_strided_slice %111 {offsets = [0, 8], sizes = [8, 8], strides = [1, 1]} : vector<8x32xf32> to vector<8x8xf32>
    %cst_53 = arith.constant dense<0.000000e+00> : vector<8x8xf32>
    %148 = tpu.matmul %145, %147, %cst_53 {dimension_numbers = #tpu.dot_dimension_numbers<[1], [0], [0], [1], [0, 0, 1, 1], [], []>} : vector<8x8xf32>, vector<8x8xf32>, vector<8x8xf32> -> vector<8x8xf32>
    %149 = vector.extract_strided_slice %21 {offsets = [8, 0], sizes = [8, 32], strides = [1, 1]} : vector<32x32xf32> to vector<8x32xf32>
    %cst_54 = arith.constant dense<0.000000e+00> : vector<8x32xf32>
    %150 = tpu.matmul %148, %149, %cst_54 {dimension_numbers = #tpu.dot_dimension_numbers<[1], [0], [0], [1], [0, 0, 1, 1], [], []>} : vector<8x8xf32>, vector<8x32xf32>, vector<8x32xf32> -> vector<8x32xf32>
    %151 = arith.addf %132, %150 : vector<8x32xf32>
    %152 = vector.extract_strided_slice %109 {offsets = [0, 16], sizes = [8, 8], strides = [1, 1]} : vector<8x32xf32> to vector<8x8xf32>
    %153 = vector.extract_strided_slice %110 {offsets = [0, 16], sizes = [8, 8], strides = [1, 1]} : vector<8x32xf32> to vector<8x8xf32>
    %cst_55 = arith.constant dense<0.000000e+00> : vector<8x8xf32>
    %154 = tpu.matmul %152, %153, %cst_55 {dimension_numbers = #tpu.dot_dimension_numbers<[1], [1], [0], [0], [0, 0, 1, 0], [], []>} : vector<8x8xf32>, vector<8x8xf32>, vector<8x8xf32> -> vector<8x8xf32>
    %cst_56 = arith.constant dense<0xFF800000> : vector<8xf32>
    %155 = vector.multi_reduction <maximumf>, %154, %cst_56 [1] : vector<8x8xf32> to vector<8xf32>
    %156 = vector.shape_cast %155 : vector<8xf32> to vector<8x1xf32>
    %157 = vector.broadcast %156 : vector<8x1xf32> to vector<8x8xf32>
    %158 = arith.subf %154, %157 : vector<8x8xf32>
    %159 = math.exp %158 : vector<8x8xf32>
    %cst_57 = arith.constant dense<0.000000e+00> : vector<8xf32>
    %160 = vector.multi_reduction <add>, %159, %cst_57 [1] : vector<8x8xf32> to vector<8xf32>
    %161 = vector.shape_cast %160 : vector<8xf32> to vector<8x1xf32>
    %162 = tpu.reciprocal %161 : vector<8x1xf32> -> vector<8x1xf32>
    %163 = vector.broadcast %162 : vector<8x1xf32> to vector<8x8xf32>
    %164 = arith.mulf %159, %163 : vector<8x8xf32>
    %165 = arith.addf %146, %164 : vector<8x8xf32>
    %166 = vector.extract_strided_slice %111 {offsets = [0, 16], sizes = [8, 8], strides = [1, 1]} : vector<8x32xf32> to vector<8x8xf32>
    %cst_58 = arith.constant dense<0.000000e+00> : vector<8x8xf32>
    %167 = tpu.matmul %164, %166, %cst_58 {dimension_numbers = #tpu.dot_dimension_numbers<[1], [0], [0], [1], [0, 0, 1, 1], [], []>} : vector<8x8xf32>, vector<8x8xf32>, vector<8x8xf32> -> vector<8x8xf32>
    %168 = vector.extract_strided_slice %21 {offsets = [16, 0], sizes = [8, 32], strides = [1, 1]} : vector<32x32xf32> to vector<8x32xf32>
    %cst_59 = arith.constant dense<0.000000e+00> : vector<8x32xf32>
    %169 = tpu.matmul %167, %168, %cst_59 {dimension_numbers = #tpu.dot_dimension_numbers<[1], [0], [0], [1], [0, 0, 1, 1], [], []>} : vector<8x8xf32>, vector<8x32xf32>, vector<8x32xf32> -> vector<8x32xf32>
    %170 = arith.addf %151, %169 : vector<8x32xf32>
    %171 = vector.extract_strided_slice %109 {offsets = [0, 24], sizes = [8, 8], strides = [1, 1]} : vector<8x32xf32> to vector<8x8xf32>
    %172 = vector.extract_strided_slice %110 {offsets = [0, 24], sizes = [8, 8], strides = [1, 1]} : vector<8x32xf32> to vector<8x8xf32>
    %cst_60 = arith.constant dense<0.000000e+00> : vector<8x8xf32>
    %173 = tpu.matmul %171, %172, %cst_60 {dimension_numbers = #tpu.dot_dimension_numbers<[1], [1], [0], [0], [0, 0, 1, 0], [], []>} : vector<8x8xf32>, vector<8x8xf32>, vector<8x8xf32> -> vector<8x8xf32>
    %cst_61 = arith.constant dense<0xFF800000> : vector<8xf32>
    %174 = vector.multi_reduction <maximumf>, %173, %cst_61 [1] : vector<8x8xf32> to vector<8xf32>
    %175 = vector.shape_cast %174 : vector<8xf32> to vector<8x1xf32>
    %176 = vector.broadcast %175 : vector<8x1xf32> to vector<8x8xf32>
    %177 = arith.subf %173, %176 : vector<8x8xf32>
    %178 = math.exp %177 : vector<8x8xf32>
    %cst_62 = arith.constant dense<0.000000e+00> : vector<8xf32>
    %179 = vector.multi_reduction <add>, %178, %cst_62 [1] : vector<8x8xf32> to vector<8xf32>
    %180 = vector.shape_cast %179 : vector<8xf32> to vector<8x1xf32>
    %181 = tpu.reciprocal %180 : vector<8x1xf32> -> vector<8x1xf32>
    %182 = vector.broadcast %181 : vector<8x1xf32> to vector<8x8xf32>
    %183 = arith.mulf %178, %182 : vector<8x8xf32>
    %184 = arith.addf %165, %183 : vector<8x8xf32>
    %185 = vector.extract_strided_slice %111 {offsets = [0, 24], sizes = [8, 8], strides = [1, 1]} : vector<8x32xf32> to vector<8x8xf32>
    %cst_63 = arith.constant dense<0.000000e+00> : vector<8x8xf32>
    %186 = tpu.matmul %183, %185, %cst_63 {dimension_numbers = #tpu.dot_dimension_numbers<[1], [0], [0], [1], [0, 0, 1, 1], [], []>} : vector<8x8xf32>, vector<8x8xf32>, vector<8x8xf32> -> vector<8x8xf32>
    %187 = vector.extract_strided_slice %21 {offsets = [24, 0], sizes = [8, 32], strides = [1, 1]} : vector<32x32xf32> to vector<8x32xf32>
    %cst_64 = arith.constant dense<0.000000e+00> : vector<8x32xf32>
    %188 = tpu.matmul %186, %187, %cst_64 {dimension_numbers = #tpu.dot_dimension_numbers<[1], [0], [0], [1], [0, 0, 1, 1], [], []>} : vector<8x8xf32>, vector<8x32xf32>, vector<8x32xf32> -> vector<8x32xf32>
    %189 = arith.addf %170, %188 : vector<8x32xf32>
    %c8 = arith.constant 8 : index
    %c0_65 = arith.constant 0 : index
    %190 = vector.load %arg26[%c8, %c0_65] : memref<16x32xf32, #tpu.memory_space<vmem>>, vector<8x32xf32>
    tpu.vector_store %arg26[%c8, %c0_65], %189 {strides = array<i32>} : memref<16x32xf32, #tpu.memory_space<vmem>>, vector<8x32xf32>,
    %cst_66 = arith.constant 2.500000e-01 : f32
    %191 = vector.broadcast %cst_66 : f32 to vector<8x8xf32>
    %192 = arith.mulf %184, %191 : vector<8x8xf32>
    %c1 = arith.constant 1 : index
    %c0_67 = arith.constant 0 : index
    %c0_68 = arith.constant 0 : index
    %193 = vector.load %arg24[%c1, %c0_67, %c0_68] : memref<2x8x8xf32, #tpu.memory_space<vmem>>, vector<1x8x8xf32>
    %194 = vector.shape_cast %193 : vector<1x8x8xf32> to vector<8x8xf32>
    %195 = vector.shape_cast %192 : vector<8x8xf32> to vector<1x8x8xf32>
    tpu.vector_store %arg24[%c1, %c0_67, %c0_68], %195 {strides = array<i32>} : memref<2x8x8xf32, #tpu.memory_space<vmem>>, vector<1x8x8xf32>,
    %c0_69 = arith.constant 0 : index
    %c0_70 = arith.constant 0 : index
    %196 = vector.load %arg26[%c0_69, %c0_70] : memref<16x32xf32, #tpu.memory_space<vmem>>, vector<16x32xf32>
    %197 = arith.addf %0, %196 : vector<16x32xf32>
    %c0_71 = arith.constant 0 : index
    %c0_72 = arith.constant 0 : index
    %198 = vector.load %arg8[%c0_71, %c0_72] : memref<1x32xf32, #tpu.memory_space<vmem>>, vector<1x32xf32>
    %199 = vector.broadcast %198 : vector<1x32xf32> to vector<16x32xf32>
    %200 = arith.addf %197, %199 : vector<16x32xf32>
    %c0_73 = arith.constant 0 : index
    %c0_74 = arith.constant 0 : index
    %201 = vector.load %arg13[%c0_73, %c0_74] : memref<1x32xf32, #tpu.memory_space<vmem>>, vector<1x32xf32>
    %c0_75 = arith.constant 0 : index
    %c0_76 = arith.constant 0 : index
    %202 = vector.load %arg14[%c0_75, %c0_76] : memref<1x32xf32, #tpu.memory_space<vmem>>, vector<1x32xf32>
    %cst_77 = arith.constant dense<0.000000e+00> : vector<16xf32>
    %203 = vector.multi_reduction <add>, %200, %cst_77 [1] : vector<16x32xf32> to vector<16xf32>
    %204 = vector.shape_cast %203 : vector<16xf32> to vector<16x1xf32>
    %cst_78 = arith.constant 3.200000e+01 : f32
    %205 = vector.broadcast %cst_78 : f32 to vector<16x1xf32>
    %206 = arith.divf %204, %205 : vector<16x1xf32>
    %207 = vector.broadcast %206 : vector<16x1xf32> to vector<16x32xf32>
    %208 = arith.subf %200, %207 : vector<16x32xf32>
    %209 = arith.mulf %208, %208 : vector<16x32xf32>
    %cst_79 = arith.constant dense<0.000000e+00> : vector<16xf32>
    %210 = vector.multi_reduction <add>, %209, %cst_79 [1] : vector<16x32xf32> to vector<16xf32>
    %211 = vector.shape_cast %210 : vector<16xf32> to vector<16x1xf32>
    %cst_80 = arith.constant 3.200000e+01 : f32
    %212 = vector.broadcast %cst_80 : f32 to vector<16x1xf32>
    %213 = arith.divf %211, %212 : vector<16x1xf32>
    %cst_81 = arith.constant 9.99999974E-6 : f32
    %214 = vector.broadcast %cst_81 : f32 to vector<16x1xf32>
    %215 = arith.addf %213, %214 : vector<16x1xf32>
    %216 = math.rsqrt %215 : vector<16x1xf32>
    %217 = vector.broadcast %216 : vector<16x1xf32> to vector<16x32xf32>
    %218 = arith.mulf %208, %217 : vector<16x32xf32>
    %219 = vector.broadcast %201 : vector<1x32xf32> to vector<16x32xf32>
    %220 = arith.mulf %218, %219 : vector<16x32xf32>
    %221 = vector.broadcast %202 : vector<1x32xf32> to vector<16x32xf32>
    %222 = arith.addf %220, %221 : vector<16x32xf32>
    %c0_82 = arith.constant 0 : index
    %c0_83 = arith.constant 0 : index
    %223 = vector.load %arg9[%c0_82, %c0_83] : memref<32x96xf32, #tpu.memory_space<vmem>>, vector<32x96xf32>
    %c0_84 = arith.constant 0 : index
    %c0_85 = arith.constant 0 : index
    %224 = vector.load %arg10[%c0_84, %c0_85] : memref<1x96xf32, #tpu.memory_space<vmem>>, vector<1x96xf32>
    %225 = arith.addf %222, %2 : vector<16x32xf32>
    %226 = vector.extract_strided_slice %223 {offsets = [0, 0], sizes = [32, 32], strides = [1, 1]} : vector<32x96xf32> to vector<32x32xf32>
    %cst_86 = arith.constant dense<0.000000e+00> : vector<16x32xf32>
    %227 = tpu.matmul %225, %226, %cst_86 {dimension_numbers = #tpu.dot_dimension_numbers<[1], [0], [0], [1], [0, 0, 1, 1], [], []>} : vector<16x32xf32>, vector<32x32xf32>, vector<16x32xf32> -> vector<16x32xf32>
    %228 = vector.extract_strided_slice %224 {offsets = [0, 0], sizes = [1, 32], strides = [1, 1]} : vector<1x96xf32> to vector<1x32xf32>
    %229 = vector.broadcast %228 : vector<1x32xf32> to vector<16x32xf32>
    %230 = arith.addf %227, %229 : vector<16x32xf32>
    %cst_87 = arith.constant 0.353553385 : f32
    %231 = vector.broadcast %cst_87 : f32 to vector<16x32xf32>
    %232 = arith.mulf %230, %231 : vector<16x32xf32>
    %233 = arith.addf %1, %3 : vector<32x32xf32>
    %234 = vector.extract_strided_slice %223 {offsets = [0, 32], sizes = [32, 32], strides = [1, 1]} : vector<32x96xf32> to vector<32x32xf32>
    %cst_88 = arith.constant dense<0.000000e+00> : vector<32x32xf32>
    %235 = tpu.matmul %233, %234, %cst_88 {dimension_numbers = #tpu.dot_dimension_numbers<[1], [0], [0], [1], [0, 0, 1, 1], [], []>} : vector<32x32xf32>, vector<32x32xf32>, vector<32x32xf32> -> vector<32x32xf32>
    %236 = vector.extract_strided_slice %224 {offsets = [0, 32], sizes = [1, 32], strides = [1, 1]} : vector<1x96xf32> to vector<1x32xf32>
    %237 = vector.broadcast %236 : vector<1x32xf32> to vector<32x32xf32>
    %238 = arith.addf %235, %237 : vector<32x32xf32>
    %239 = vector.extract_strided_slice %223 {offsets = [0, 64], sizes = [32, 32], strides = [1, 1]} : vector<32x96xf32> to vector<32x32xf32>
    %cst_89 = arith.constant dense<0.000000e+00> : vector<32x32xf32>
    %240 = tpu.matmul %1, %239, %cst_89 {dimension_numbers = #tpu.dot_dimension_numbers<[1], [0], [0], [1], [0, 0, 1, 1], [], []>} : vector<32x32xf32>, vector<32x32xf32>, vector<32x32xf32> -> vector<32x32xf32>
    %241 = vector.extract_strided_slice %224 {offsets = [0, 64], sizes = [1, 32], strides = [1, 1]} : vector<1x96xf32> to vector<1x32xf32>
    %242 = vector.broadcast %241 : vector<1x32xf32> to vector<32x32xf32>
    %243 = arith.addf %240, %242 : vector<32x32xf32>
    %c0_90 = arith.constant 0 : index
    %c0_91 = arith.constant 0 : index
    %244 = vector.load %arg11[%c0_90, %c0_91] : memref<32x32xf32, #tpu.memory_space<vmem>>, vector<32x32xf32>
    %245 = vector.extract_strided_slice %232 {offsets = [0, 0], sizes = [8, 32], strides = [1, 1]} : vector<16x32xf32> to vector<8x32xf32>
    %246 = vector.extract_strided_slice %238 {offsets = [0, 0], sizes = [16, 32], strides = [1, 1]} : vector<32x32xf32> to vector<16x32xf32>
    %247 = vector.extract_strided_slice %243 {offsets = [0, 0], sizes = [16, 32], strides = [1, 1]} : vector<32x32xf32> to vector<16x32xf32>
    %cst_92 = arith.constant 0.000000e+00 : f32
    %248 = vector.broadcast %cst_92 : f32 to vector<8x32xf32>
    %cst_93 = arith.constant 0.000000e+00 : f32
    %249 = vector.broadcast %cst_93 : f32 to vector<8x16xf32>
    %250 = vector.extract_strided_slice %245 {offsets = [0, 0], sizes = [8, 8], strides = [1, 1]} : vector<8x32xf32> to vector<8x8xf32>
    %251 = vector.extract_strided_slice %246 {offsets = [0, 0], sizes = [16, 8], strides = [1, 1]} : vector<16x32xf32> to vector<16x8xf32>
    %cst_94 = arith.constant dense<0.000000e+00> : vector<8x16xf32>
    %252 = tpu.matmul %250, %251, %cst_94 {dimension_numbers = #tpu.dot_dimension_numbers<[1], [1], [0], [0], [0, 0, 1, 0], [], []>} : vector<8x8xf32>, vector<16x8xf32>, vector<8x16xf32> -> vector<8x16xf32>
    %cst_95 = arith.constant dense<0xFF800000> : vector<8xf32>
    %253 = vector.multi_reduction <maximumf>, %252, %cst_95 [1] : vector<8x16xf32> to vector<8xf32>
    %254 = vector.shape_cast %253 : vector<8xf32> to vector<8x1xf32>
    %255 = vector.broadcast %254 : vector<8x1xf32> to vector<8x16xf32>
    %256 = arith.subf %252, %255 : vector<8x16xf32>
    %257 = math.exp %256 : vector<8x16xf32>
    %cst_96 = arith.constant dense<0.000000e+00> : vector<8xf32>
    %258 = vector.multi_reduction <add>, %257, %cst_96 [1] : vector<8x16xf32> to vector<8xf32>
    %259 = vector.shape_cast %258 : vector<8xf32> to vector<8x1xf32>
    %260 = tpu.reciprocal %259 : vector<8x1xf32> -> vector<8x1xf32>
    %261 = vector.broadcast %260 : vector<8x1xf32> to vector<8x16xf32>
    %262 = arith.mulf %257, %261 : vector<8x16xf32>
    %263 = arith.addf %249, %262 : vector<8x16xf32>
    %264 = vector.extract_strided_slice %247 {offsets = [0, 0], sizes = [16, 8], strides = [1, 1]} : vector<16x32xf32> to vector<16x8xf32>
    %cst_97 = arith.constant dense<0.000000e+00> : vector<8x8xf32>
    %265 = tpu.matmul %262, %264, %cst_97 {dimension_numbers = #tpu.dot_dimension_numbers<[1], [0], [0], [1], [0, 0, 1, 1], [], []>} : vector<8x16xf32>, vector<16x8xf32>, vector<8x8xf32> -> vector<8x8xf32>
    %266 = vector.extract_strided_slice %244 {offsets = [0, 0], sizes = [8, 32], strides = [1, 1]} : vector<32x32xf32> to vector<8x32xf32>
    %cst_98 = arith.constant dense<0.000000e+00> : vector<8x32xf32>
    %267 = tpu.matmul %265, %266, %cst_98 {dimension_numbers = #tpu.dot_dimension_numbers<[1], [0], [0], [1], [0, 0, 1, 1], [], []>} : vector<8x8xf32>, vector<8x32xf32>, vector<8x32xf32> -> vector<8x32xf32>
    %268 = arith.addf %248, %267 : vector<8x32xf32>
    %269 = vector.extract_strided_slice %245 {offsets = [0, 8], sizes = [8, 8], strides = [1, 1]} : vector<8x32xf32> to vector<8x8xf32>
    %270 = vector.extract_strided_slice %246 {offsets = [0, 8], sizes = [16, 8], strides = [1, 1]} : vector<16x32xf32> to vector<16x8xf32>
    %cst_99 = arith.constant dense<0.000000e+00> : vector<8x16xf32>
    %271 = tpu.matmul %269, %270, %cst_99 {dimension_numbers = #tpu.dot_dimension_numbers<[1], [1], [0], [0], [0, 0, 1, 0], [], []>} : vector<8x8xf32>, vector<16x8xf32>, vector<8x16xf32> -> vector<8x16xf32>
    %cst_100 = arith.constant dense<0xFF800000> : vector<8xf32>
    %272 = vector.multi_reduction <maximumf>, %271, %cst_100 [1] : vector<8x16xf32> to vector<8xf32>
    %273 = vector.shape_cast %272 : vector<8xf32> to vector<8x1xf32>
    %274 = vector.broadcast %273 : vector<8x1xf32> to vector<8x16xf32>
    %275 = arith.subf %271, %274 : vector<8x16xf32>
    %276 = math.exp %275 : vector<8x16xf32>
    %cst_101 = arith.constant dense<0.000000e+00> : vector<8xf32>
    %277 = vector.multi_reduction <add>, %276, %cst_101 [1] : vector<8x16xf32> to vector<8xf32>
    %278 = vector.shape_cast %277 : vector<8xf32> to vector<8x1xf32>
    %279 = tpu.reciprocal %278 : vector<8x1xf32> -> vector<8x1xf32>
    %280 = vector.broadcast %279 : vector<8x1xf32> to vector<8x16xf32>
    %281 = arith.mulf %276, %280 : vector<8x16xf32>
    %282 = arith.addf %263, %281 : vector<8x16xf32>
    %283 = vector.extract_strided_slice %247 {offsets = [0, 8], sizes = [16, 8], strides = [1, 1]} : vector<16x32xf32> to vector<16x8xf32>
    %cst_102 = arith.constant dense<0.000000e+00> : vector<8x8xf32>
    %284 = tpu.matmul %281, %283, %cst_102 {dimension_numbers = #tpu.dot_dimension_numbers<[1], [0], [0], [1], [0, 0, 1, 1], [], []>} : vector<8x16xf32>, vector<16x8xf32>, vector<8x8xf32> -> vector<8x8xf32>
    %285 = vector.extract_strided_slice %244 {offsets = [8, 0], sizes = [8, 32], strides = [1, 1]} : vector<32x32xf32> to vector<8x32xf32>
    %cst_103 = arith.constant dense<0.000000e+00> : vector<8x32xf32>
    %286 = tpu.matmul %284, %285, %cst_103 {dimension_numbers = #tpu.dot_dimension_numbers<[1], [0], [0], [1], [0, 0, 1, 1], [], []>} : vector<8x8xf32>, vector<8x32xf32>, vector<8x32xf32> -> vector<8x32xf32>
    %287 = arith.addf %268, %286 : vector<8x32xf32>
    %288 = vector.extract_strided_slice %245 {offsets = [0, 16], sizes = [8, 8], strides = [1, 1]} : vector<8x32xf32> to vector<8x8xf32>
    %289 = vector.extract_strided_slice %246 {offsets = [0, 16], sizes = [16, 8], strides = [1, 1]} : vector<16x32xf32> to vector<16x8xf32>
    %cst_104 = arith.constant dense<0.000000e+00> : vector<8x16xf32>
    %290 = tpu.matmul %288, %289, %cst_104 {dimension_numbers = #tpu.dot_dimension_numbers<[1], [1], [0], [0], [0, 0, 1, 0], [], []>} : vector<8x8xf32>, vector<16x8xf32>, vector<8x16xf32> -> vector<8x16xf32>
    %cst_105 = arith.constant dense<0xFF800000> : vector<8xf32>
    %291 = vector.multi_reduction <maximumf>, %290, %cst_105 [1] : vector<8x16xf32> to vector<8xf32>
    %292 = vector.shape_cast %291 : vector<8xf32> to vector<8x1xf32>
    %293 = vector.broadcast %292 : vector<8x1xf32> to vector<8x16xf32>
    %294 = arith.subf %290, %293 : vector<8x16xf32>
    %295 = math.exp %294 : vector<8x16xf32>
    %cst_106 = arith.constant dense<0.000000e+00> : vector<8xf32>
    %296 = vector.multi_reduction <add>, %295, %cst_106 [1] : vector<8x16xf32> to vector<8xf32>
    %297 = vector.shape_cast %296 : vector<8xf32> to vector<8x1xf32>
    %298 = tpu.reciprocal %297 : vector<8x1xf32> -> vector<8x1xf32>
    %299 = vector.broadcast %298 : vector<8x1xf32> to vector<8x16xf32>
    %300 = arith.mulf %295, %299 : vector<8x16xf32>
    %301 = arith.addf %282, %300 : vector<8x16xf32>
    %302 = vector.extract_strided_slice %247 {offsets = [0, 16], sizes = [16, 8], strides = [1, 1]} : vector<16x32xf32> to vector<16x8xf32>
    %cst_107 = arith.constant dense<0.000000e+00> : vector<8x8xf32>
    %303 = tpu.matmul %300, %302, %cst_107 {dimension_numbers = #tpu.dot_dimension_numbers<[1], [0], [0], [1], [0, 0, 1, 1], [], []>} : vector<8x16xf32>, vector<16x8xf32>, vector<8x8xf32> -> vector<8x8xf32>
    %304 = vector.extract_strided_slice %244 {offsets = [16, 0], sizes = [8, 32], strides = [1, 1]} : vector<32x32xf32> to vector<8x32xf32>
    %cst_108 = arith.constant dense<0.000000e+00> : vector<8x32xf32>
    %305 = tpu.matmul %303, %304, %cst_108 {dimension_numbers = #tpu.dot_dimension_numbers<[1], [0], [0], [1], [0, 0, 1, 1], [], []>} : vector<8x8xf32>, vector<8x32xf32>, vector<8x32xf32> -> vector<8x32xf32>
    %306 = arith.addf %287, %305 : vector<8x32xf32>
    %307 = vector.extract_strided_slice %245 {offsets = [0, 24], sizes = [8, 8], strides = [1, 1]} : vector<8x32xf32> to vector<8x8xf32>
    %308 = vector.extract_strided_slice %246 {offsets = [0, 24], sizes = [16, 8], strides = [1, 1]} : vector<16x32xf32> to vector<16x8xf32>
    %cst_109 = arith.constant dense<0.000000e+00> : vector<8x16xf32>
    %309 = tpu.matmul %307, %308, %cst_109 {dimension_numbers = #tpu.dot_dimension_numbers<[1], [1], [0], [0], [0, 0, 1, 0], [], []>} : vector<8x8xf32>, vector<16x8xf32>, vector<8x16xf32> -> vector<8x16xf32>
    %cst_110 = arith.constant dense<0xFF800000> : vector<8xf32>
    %310 = vector.multi_reduction <maximumf>, %309, %cst_110 [1] : vector<8x16xf32> to vector<8xf32>
    %311 = vector.shape_cast %310 : vector<8xf32> to vector<8x1xf32>
    %312 = vector.broadcast %311 : vector<8x1xf32> to vector<8x16xf32>
    %313 = arith.subf %309, %312 : vector<8x16xf32>
    %314 = math.exp %313 : vector<8x16xf32>
    %cst_111 = arith.constant dense<0.000000e+00> : vector<8xf32>
    %315 = vector.multi_reduction <add>, %314, %cst_111 [1] : vector<8x16xf32> to vector<8xf32>
    %316 = vector.shape_cast %315 : vector<8xf32> to vector<8x1xf32>
    %317 = tpu.reciprocal %316 : vector<8x1xf32> -> vector<8x1xf32>
    %318 = vector.broadcast %317 : vector<8x1xf32> to vector<8x16xf32>
    %319 = arith.mulf %314, %318 : vector<8x16xf32>
    %320 = arith.addf %301, %319 : vector<8x16xf32>
    %321 = vector.extract_strided_slice %247 {offsets = [0, 24], sizes = [16, 8], strides = [1, 1]} : vector<16x32xf32> to vector<16x8xf32>
    %cst_112 = arith.constant dense<0.000000e+00> : vector<8x8xf32>
    %322 = tpu.matmul %319, %321, %cst_112 {dimension_numbers = #tpu.dot_dimension_numbers<[1], [0], [0], [1], [0, 0, 1, 1], [], []>} : vector<8x16xf32>, vector<16x8xf32>, vector<8x8xf32> -> vector<8x8xf32>
    %323 = vector.extract_strided_slice %244 {offsets = [24, 0], sizes = [8, 32], strides = [1, 1]} : vector<32x32xf32> to vector<8x32xf32>
    %cst_113 = arith.constant dense<0.000000e+00> : vector<8x32xf32>
    %324 = tpu.matmul %322, %323, %cst_113 {dimension_numbers = #tpu.dot_dimension_numbers<[1], [0], [0], [1], [0, 0, 1, 1], [], []>} : vector<8x8xf32>, vector<8x32xf32>, vector<8x32xf32> -> vector<8x32xf32>
    %325 = arith.addf %306, %324 : vector<8x32xf32>
    %c0_114 = arith.constant 0 : index
    %c0_115 = arith.constant 0 : index
    %326 = vector.load %arg26[%c0_114, %c0_115] : memref<16x32xf32, #tpu.memory_space<vmem>>, vector<8x32xf32>
    tpu.vector_store %arg26[%c0_114, %c0_115], %325 {strides = array<i32>} : memref<16x32xf32, #tpu.memory_space<vmem>>, vector<8x32xf32>,
    %cst_116 = arith.constant 2.500000e-01 : f32
    %327 = vector.broadcast %cst_116 : f32 to vector<8x16xf32>
    %328 = arith.mulf %320, %327 : vector<8x16xf32>
    %c0_117 = arith.constant 0 : index
    %c0_118 = arith.constant 0 : index
    %c0_119 = arith.constant 0 : index
    %329 = vector.load %arg25[%c0_117, %c0_118, %c0_119] : memref<2x8x16xf32, #tpu.memory_space<vmem>>, vector<1x8x16xf32>
    %330 = vector.shape_cast %329 : vector<1x8x16xf32> to vector<8x16xf32>
    %331 = vector.shape_cast %328 : vector<8x16xf32> to vector<1x8x16xf32>
    tpu.vector_store %arg25[%c0_117, %c0_118, %c0_119], %331 {strides = array<i32>} : memref<2x8x16xf32, #tpu.memory_space<vmem>>, vector<1x8x16xf32>,
    %332 = vector.extract_strided_slice %232 {offsets = [8, 0], sizes = [8, 32], strides = [1, 1]} : vector<16x32xf32> to vector<8x32xf32>
    %333 = vector.extract_strided_slice %238 {offsets = [16, 0], sizes = [16, 32], strides = [1, 1]} : vector<32x32xf32> to vector<16x32xf32>
    %334 = vector.extract_strided_slice %243 {offsets = [16, 0], sizes = [16, 32], strides = [1, 1]} : vector<32x32xf32> to vector<16x32xf32>
    %cst_120 = arith.constant 0.000000e+00 : f32
    %335 = vector.broadcast %cst_120 : f32 to vector<8x32xf32>
    %cst_121 = arith.constant 0.000000e+00 : f32
    %336 = vector.broadcast %cst_121 : f32 to vector<8x16xf32>
    %337 = vector.extract_strided_slice %332 {offsets = [0, 0], sizes = [8, 8], strides = [1, 1]} : vector<8x32xf32> to vector<8x8xf32>
    %338 = vector.extract_strided_slice %333 {offsets = [0, 0], sizes = [16, 8], strides = [1, 1]} : vector<16x32xf32> to vector<16x8xf32>
    %cst_122 = arith.constant dense<0.000000e+00> : vector<8x16xf32>
    %339 = tpu.matmul %337, %338, %cst_122 {dimension_numbers = #tpu.dot_dimension_numbers<[1], [1], [0], [0], [0, 0, 1, 0], [], []>} : vector<8x8xf32>, vector<16x8xf32>, vector<8x16xf32> -> vector<8x16xf32>
    %cst_123 = arith.constant dense<0xFF800000> : vector<8xf32>
    %340 = vector.multi_reduction <maximumf>, %339, %cst_123 [1] : vector<8x16xf32> to vector<8xf32>
    %341 = vector.shape_cast %340 : vector<8xf32> to vector<8x1xf32>
    %342 = vector.broadcast %341 : vector<8x1xf32> to vector<8x16xf32>
    %343 = arith.subf %339, %342 : vector<8x16xf32>
    %344 = math.exp %343 : vector<8x16xf32>
    %cst_124 = arith.constant dense<0.000000e+00> : vector<8xf32>
    %345 = vector.multi_reduction <add>, %344, %cst_124 [1] : vector<8x16xf32> to vector<8xf32>
    %346 = vector.shape_cast %345 : vector<8xf32> to vector<8x1xf32>
    %347 = tpu.reciprocal %346 : vector<8x1xf32> -> vector<8x1xf32>
    %348 = vector.broadcast %347 : vector<8x1xf32> to vector<8x16xf32>
    %349 = arith.mulf %344, %348 : vector<8x16xf32>
    %350 = arith.addf %336, %349 : vector<8x16xf32>
    %351 = vector.extract_strided_slice %334 {offsets = [0, 0], sizes = [16, 8], strides = [1, 1]} : vector<16x32xf32> to vector<16x8xf32>
    %cst_125 = arith.constant dense<0.000000e+00> : vector<8x8xf32>
    %352 = tpu.matmul %349, %351, %cst_125 {dimension_numbers = #tpu.dot_dimension_numbers<[1], [0], [0], [1], [0, 0, 1, 1], [], []>} : vector<8x16xf32>, vector<16x8xf32>, vector<8x8xf32> -> vector<8x8xf32>
    %353 = vector.extract_strided_slice %244 {offsets = [0, 0], sizes = [8, 32], strides = [1, 1]} : vector<32x32xf32> to vector<8x32xf32>
    %cst_126 = arith.constant dense<0.000000e+00> : vector<8x32xf32>
    %354 = tpu.matmul %352, %353, %cst_126 {dimension_numbers = #tpu.dot_dimension_numbers<[1], [0], [0], [1], [0, 0, 1, 1], [], []>} : vector<8x8xf32>, vector<8x32xf32>, vector<8x32xf32> -> vector<8x32xf32>
    %355 = arith.addf %335, %354 : vector<8x32xf32>
    %356 = vector.extract_strided_slice %332 {offsets = [0, 8], sizes = [8, 8], strides = [1, 1]} : vector<8x32xf32> to vector<8x8xf32>
    %357 = vector.extract_strided_slice %333 {offsets = [0, 8], sizes = [16, 8], strides = [1, 1]} : vector<16x32xf32> to vector<16x8xf32>
    %cst_127 = arith.constant dense<0.000000e+00> : vector<8x16xf32>
    %358 = tpu.matmul %356, %357, %cst_127 {dimension_numbers = #tpu.dot_dimension_numbers<[1], [1], [0], [0], [0, 0, 1, 0], [], []>} : vector<8x8xf32>, vector<16x8xf32>, vector<8x16xf32> -> vector<8x16xf32>
    %cst_128 = arith.constant dense<0xFF800000> : vector<8xf32>
    %359 = vector.multi_reduction <maximumf>, %358, %cst_128 [1] : vector<8x16xf32> to vector<8xf32>
    %360 = vector.shape_cast %359 : vector<8xf32> to vector<8x1xf32>
    %361 = vector.broadcast %360 : vector<8x1xf32> to vector<8x16xf32>
    %362 = arith.subf %358, %361 : vector<8x16xf32>
    %363 = math.exp %362 : vector<8x16xf32>
    %cst_129 = arith.constant dense<0.000000e+00> : vector<8xf32>
    %364 = vector.multi_reduction <add>, %363, %cst_129 [1] : vector<8x16xf32> to vector<8xf32>
    %365 = vector.shape_cast %364 : vector<8xf32> to vector<8x1xf32>
    %366 = tpu.reciprocal %365 : vector<8x1xf32> -> vector<8x1xf32>
    %367 = vector.broadcast %366 : vector<8x1xf32> to vector<8x16xf32>
    %368 = arith.mulf %363, %367 : vector<8x16xf32>
    %369 = arith.addf %350, %368 : vector<8x16xf32>
    %370 = vector.extract_strided_slice %334 {offsets = [0, 8], sizes = [16, 8], strides = [1, 1]} : vector<16x32xf32> to vector<16x8xf32>
    %cst_130 = arith.constant dense<0.000000e+00> : vector<8x8xf32>
    %371 = tpu.matmul %368, %370, %cst_130 {dimension_numbers = #tpu.dot_dimension_numbers<[1], [0], [0], [1], [0, 0, 1, 1], [], []>} : vector<8x16xf32>, vector<16x8xf32>, vector<8x8xf32> -> vector<8x8xf32>
    %372 = vector.extract_strided_slice %244 {offsets = [8, 0], sizes = [8, 32], strides = [1, 1]} : vector<32x32xf32> to vector<8x32xf32>
    %cst_131 = arith.constant dense<0.000000e+00> : vector<8x32xf32>
    %373 = tpu.matmul %371, %372, %cst_131 {dimension_numbers = #tpu.dot_dimension_numbers<[1], [0], [0], [1], [0, 0, 1, 1], [], []>} : vector<8x8xf32>, vector<8x32xf32>, vector<8x32xf32> -> vector<8x32xf32>
    %374 = arith.addf %355, %373 : vector<8x32xf32>
    %375 = vector.extract_strided_slice %332 {offsets = [0, 16], sizes = [8, 8], strides = [1, 1]} : vector<8x32xf32> to vector<8x8xf32>
    %376 = vector.extract_strided_slice %333 {offsets = [0, 16], sizes = [16, 8], strides = [1, 1]} : vector<16x32xf32> to vector<16x8xf32>
    %cst_132 = arith.constant dense<0.000000e+00> : vector<8x16xf32>
    %377 = tpu.matmul %375, %376, %cst_132 {dimension_numbers = #tpu.dot_dimension_numbers<[1], [1], [0], [0], [0, 0, 1, 0], [], []>} : vector<8x8xf32>, vector<16x8xf32>, vector<8x16xf32> -> vector<8x16xf32>
    %cst_133 = arith.constant dense<0xFF800000> : vector<8xf32>
    %378 = vector.multi_reduction <maximumf>, %377, %cst_133 [1] : vector<8x16xf32> to vector<8xf32>
    %379 = vector.shape_cast %378 : vector<8xf32> to vector<8x1xf32>
    %380 = vector.broadcast %379 : vector<8x1xf32> to vector<8x16xf32>
    %381 = arith.subf %377, %380 : vector<8x16xf32>
    %382 = math.exp %381 : vector<8x16xf32>
    %cst_134 = arith.constant dense<0.000000e+00> : vector<8xf32>
    %383 = vector.multi_reduction <add>, %382, %cst_134 [1] : vector<8x16xf32> to vector<8xf32>
    %384 = vector.shape_cast %383 : vector<8xf32> to vector<8x1xf32>
    %385 = tpu.reciprocal %384 : vector<8x1xf32> -> vector<8x1xf32>
    %386 = vector.broadcast %385 : vector<8x1xf32> to vector<8x16xf32>
    %387 = arith.mulf %382, %386 : vector<8x16xf32>
    %388 = arith.addf %369, %387 : vector<8x16xf32>
    %389 = vector.extract_strided_slice %334 {offsets = [0, 16], sizes = [16, 8], strides = [1, 1]} : vector<16x32xf32> to vector<16x8xf32>
    %cst_135 = arith.constant dense<0.000000e+00> : vector<8x8xf32>
    %390 = tpu.matmul %387, %389, %cst_135 {dimension_numbers = #tpu.dot_dimension_numbers<[1], [0], [0], [1], [0, 0, 1, 1], [], []>} : vector<8x16xf32>, vector<16x8xf32>, vector<8x8xf32> -> vector<8x8xf32>
    %391 = vector.extract_strided_slice %244 {offsets = [16, 0], sizes = [8, 32], strides = [1, 1]} : vector<32x32xf32> to vector<8x32xf32>
    %cst_136 = arith.constant dense<0.000000e+00> : vector<8x32xf32>
    %392 = tpu.matmul %390, %391, %cst_136 {dimension_numbers = #tpu.dot_dimension_numbers<[1], [0], [0], [1], [0, 0, 1, 1], [], []>} : vector<8x8xf32>, vector<8x32xf32>, vector<8x32xf32> -> vector<8x32xf32>
    %393 = arith.addf %374, %392 : vector<8x32xf32>
    %394 = vector.extract_strided_slice %332 {offsets = [0, 24], sizes = [8, 8], strides = [1, 1]} : vector<8x32xf32> to vector<8x8xf32>
    %395 = vector.extract_strided_slice %333 {offsets = [0, 24], sizes = [16, 8], strides = [1, 1]} : vector<16x32xf32> to vector<16x8xf32>
    %cst_137 = arith.constant dense<0.000000e+00> : vector<8x16xf32>
    %396 = tpu.matmul %394, %395, %cst_137 {dimension_numbers = #tpu.dot_dimension_numbers<[1], [1], [0], [0], [0, 0, 1, 0], [], []>} : vector<8x8xf32>, vector<16x8xf32>, vector<8x16xf32> -> vector<8x16xf32>
    %cst_138 = arith.constant dense<0xFF800000> : vector<8xf32>
    %397 = vector.multi_reduction <maximumf>, %396, %cst_138 [1] : vector<8x16xf32> to vector<8xf32>
    %398 = vector.shape_cast %397 : vector<8xf32> to vector<8x1xf32>
    %399 = vector.broadcast %398 : vector<8x1xf32> to vector<8x16xf32>
    %400 = arith.subf %396, %399 : vector<8x16xf32>
    %401 = math.exp %400 : vector<8x16xf32>
    %cst_139 = arith.constant dense<0.000000e+00> : vector<8xf32>
    %402 = vector.multi_reduction <add>, %401, %cst_139 [1] : vector<8x16xf32> to vector<8xf32>
    %403 = vector.shape_cast %402 : vector<8xf32> to vector<8x1xf32>
    %404 = tpu.reciprocal %403 : vector<8x1xf32> -> vector<8x1xf32>
    %405 = vector.broadcast %404 : vector<8x1xf32> to vector<8x16xf32>
    %406 = arith.mulf %401, %405 : vector<8x16xf32>
    %407 = arith.addf %388, %406 : vector<8x16xf32>
    %408 = vector.extract_strided_slice %334 {offsets = [0, 24], sizes = [16, 8], strides = [1, 1]} : vector<16x32xf32> to vector<16x8xf32>
    %cst_140 = arith.constant dense<0.000000e+00> : vector<8x8xf32>
    %409 = tpu.matmul %406, %408, %cst_140 {dimension_numbers = #tpu.dot_dimension_numbers<[1], [0], [0], [1], [0, 0, 1, 1], [], []>} : vector<8x16xf32>, vector<16x8xf32>, vector<8x8xf32> -> vector<8x8xf32>
    %410 = vector.extract_strided_slice %244 {offsets = [24, 0], sizes = [8, 32], strides = [1, 1]} : vector<32x32xf32> to vector<8x32xf32>
    %cst_141 = arith.constant dense<0.000000e+00> : vector<8x32xf32>
    %411 = tpu.matmul %409, %410, %cst_141 {dimension_numbers = #tpu.dot_dimension_numbers<[1], [0], [0], [1], [0, 0, 1, 1], [], []>} : vector<8x8xf32>, vector<8x32xf32>, vector<8x32xf32> -> vector<8x32xf32>
    %412 = arith.addf %393, %411 : vector<8x32xf32>
    %c8_142 = arith.constant 8 : index
    %c0_143 = arith.constant 0 : index
    %413 = vector.load %arg26[%c8_142, %c0_143] : memref<16x32xf32, #tpu.memory_space<vmem>>, vector<8x32xf32>
    tpu.vector_store %arg26[%c8_142, %c0_143], %412 {strides = array<i32>} : memref<16x32xf32, #tpu.memory_space<vmem>>, vector<8x32xf32>,
    %cst_144 = arith.constant 2.500000e-01 : f32
    %414 = vector.broadcast %cst_144 : f32 to vector<8x16xf32>
    %415 = arith.mulf %407, %414 : vector<8x16xf32>
    %c1_145 = arith.constant 1 : index
    %c0_146 = arith.constant 0 : index
    %c0_147 = arith.constant 0 : index
    %416 = vector.load %arg25[%c1_145, %c0_146, %c0_147] : memref<2x8x16xf32, #tpu.memory_space<vmem>>, vector<1x8x16xf32>
    %417 = vector.shape_cast %416 : vector<1x8x16xf32> to vector<8x16xf32>
    %418 = vector.shape_cast %415 : vector<8x16xf32> to vector<1x8x16xf32>
    tpu.vector_store %arg25[%c1_145, %c0_146, %c0_147], %418 {strides = array<i32>} : memref<2x8x16xf32, #tpu.memory_space<vmem>>, vector<1x8x16xf32>,
    %c0_148 = arith.constant 0 : index
    %c0_149 = arith.constant 0 : index
    %419 = vector.load %arg26[%c0_148, %c0_149] : memref<16x32xf32, #tpu.memory_space<vmem>>, vector<16x32xf32>
    %420 = arith.addf %222, %419 : vector<16x32xf32>
    %c0_150 = arith.constant 0 : index
    %c0_151 = arith.constant 0 : index
    %421 = vector.load %arg12[%c0_150, %c0_151] : memref<1x32xf32, #tpu.memory_space<vmem>>, vector<1x32xf32>
    %422 = vector.broadcast %421 : vector<1x32xf32> to vector<16x32xf32>
    %423 = arith.addf %420, %422 : vector<16x32xf32>
    %c0_152 = arith.constant 0 : index
    %c0_153 = arith.constant 0 : index
    %424 = vector.load %arg15[%c0_152, %c0_153] : memref<1x32xf32, #tpu.memory_space<vmem>>, vector<1x32xf32>
    %c0_154 = arith.constant 0 : index
    %c0_155 = arith.constant 0 : index
    %425 = vector.load %arg16[%c0_154, %c0_155] : memref<1x32xf32, #tpu.memory_space<vmem>>, vector<1x32xf32>
    %cst_156 = arith.constant dense<0.000000e+00> : vector<16xf32>
    %426 = vector.multi_reduction <add>, %423, %cst_156 [1] : vector<16x32xf32> to vector<16xf32>
    %427 = vector.shape_cast %426 : vector<16xf32> to vector<16x1xf32>
    %cst_157 = arith.constant 3.200000e+01 : f32
    %428 = vector.broadcast %cst_157 : f32 to vector<16x1xf32>
    %429 = arith.divf %427, %428 : vector<16x1xf32>
    %430 = vector.broadcast %429 : vector<16x1xf32> to vector<16x32xf32>
    %431 = arith.subf %423, %430 : vector<16x32xf32>
    %432 = arith.mulf %431, %431 : vector<16x32xf32>
    %cst_158 = arith.constant dense<0.000000e+00> : vector<16xf32>
    %433 = vector.multi_reduction <add>, %432, %cst_158 [1] : vector<16x32xf32> to vector<16xf32>
    %434 = vector.shape_cast %433 : vector<16xf32> to vector<16x1xf32>
    %cst_159 = arith.constant 3.200000e+01 : f32
    %435 = vector.broadcast %cst_159 : f32 to vector<16x1xf32>
    %436 = arith.divf %434, %435 : vector<16x1xf32>
    %cst_160 = arith.constant 9.99999974E-6 : f32
    %437 = vector.broadcast %cst_160 : f32 to vector<16x1xf32>
    %438 = arith.addf %436, %437 : vector<16x1xf32>
    %439 = math.rsqrt %438 : vector<16x1xf32>
    %440 = vector.broadcast %439 : vector<16x1xf32> to vector<16x32xf32>
    %441 = arith.mulf %431, %440 : vector<16x32xf32>
    %442 = vector.broadcast %424 : vector<1x32xf32> to vector<16x32xf32>
    %443 = arith.mulf %441, %442 : vector<16x32xf32>
    %444 = vector.broadcast %425 : vector<1x32xf32> to vector<16x32xf32>
    %445 = arith.addf %443, %444 : vector<16x32xf32>
    %c0_161 = arith.constant 0 : index
    %c0_162 = arith.constant 0 : index
    %446 = vector.load %arg19[%c0_161, %c0_162] : memref<32x64xf32, #tpu.memory_space<vmem>>, vector<32x64xf32>
    %cst_163 = arith.constant dense<0.000000e+00> : vector<16x64xf32>
    %447 = tpu.matmul %445, %446, %cst_163 {dimension_numbers = #tpu.dot_dimension_numbers<[1], [0], [0], [1], [0, 0, 1, 1], [], []>} : vector<16x32xf32>, vector<32x64xf32>, vector<16x64xf32> -> vector<16x64xf32>
    %c0_164 = arith.constant 0 : index
    %c0_165 = arith.constant 0 : index
    %448 = vector.load %arg20[%c0_164, %c0_165] : memref<1x64xf32, #tpu.memory_space<vmem>>, vector<1x64xf32>
    %449 = vector.broadcast %448 : vector<1x64xf32> to vector<16x64xf32>
    %450 = arith.addf %447, %449 : vector<16x64xf32>
    %cst_166 = arith.constant 0.000000e+00 : f32
    %451 = vector.broadcast %cst_166 : f32 to vector<16x64xf32>
    %452 = arith.maximumf %450, %451 : vector<16x64xf32>
    %c0_167 = arith.constant 0 : index
    %c0_168 = arith.constant 0 : index
    %453 = vector.load %arg21[%c0_167, %c0_168] : memref<64x32xf32, #tpu.memory_space<vmem>>, vector<64x32xf32>
    %cst_169 = arith.constant dense<0.000000e+00> : vector<16x32xf32>
    %454 = tpu.matmul %452, %453, %cst_169 {dimension_numbers = #tpu.dot_dimension_numbers<[1], [0], [0], [1], [0, 0, 1, 1], [], []>} : vector<16x64xf32>, vector<64x32xf32>, vector<16x32xf32> -> vector<16x32xf32>
    %c0_170 = arith.constant 0 : index
    %c0_171 = arith.constant 0 : index
    %455 = vector.load %arg22[%c0_170, %c0_171] : memref<1x32xf32, #tpu.memory_space<vmem>>, vector<1x32xf32>
    %456 = vector.broadcast %455 : vector<1x32xf32> to vector<16x32xf32>
    %457 = arith.addf %454, %456 : vector<16x32xf32>
    %458 = arith.addf %445, %457 : vector<16x32xf32>
    %c0_172 = arith.constant 0 : index
    %c0_173 = arith.constant 0 : index
    %459 = vector.load %arg17[%c0_172, %c0_173] : memref<1x32xf32, #tpu.memory_space<vmem>>, vector<1x32xf32>
    %c0_174 = arith.constant 0 : index
    %c0_175 = arith.constant 0 : index
    %460 = vector.load %arg18[%c0_174, %c0_175] : memref<1x32xf32, #tpu.memory_space<vmem>>, vector<1x32xf32>
    %cst_176 = arith.constant dense<0.000000e+00> : vector<16xf32>
    %461 = vector.multi_reduction <add>, %458, %cst_176 [1] : vector<16x32xf32> to vector<16xf32>
    %462 = vector.shape_cast %461 : vector<16xf32> to vector<16x1xf32>
    %cst_177 = arith.constant 3.200000e+01 : f32
    %463 = vector.broadcast %cst_177 : f32 to vector<16x1xf32>
    %464 = arith.divf %462, %463 : vector<16x1xf32>
    %465 = vector.broadcast %464 : vector<16x1xf32> to vector<16x32xf32>
    %466 = arith.subf %458, %465 : vector<16x32xf32>
    %467 = arith.mulf %466, %466 : vector<16x32xf32>
    %cst_178 = arith.constant dense<0.000000e+00> : vector<16xf32>
    %468 = vector.multi_reduction <add>, %467, %cst_178 [1] : vector<16x32xf32> to vector<16xf32>
    %469 = vector.shape_cast %468 : vector<16xf32> to vector<16x1xf32>
    %cst_179 = arith.constant 3.200000e+01 : f32
    %470 = vector.broadcast %cst_179 : f32 to vector<16x1xf32>
    %471 = arith.divf %469, %470 : vector<16x1xf32>
    %cst_180 = arith.constant 9.99999974E-6 : f32
    %472 = vector.broadcast %cst_180 : f32 to vector<16x1xf32>
    %473 = arith.addf %471, %472 : vector<16x1xf32>
    %474 = math.rsqrt %473 : vector<16x1xf32>
    %475 = vector.broadcast %474 : vector<16x1xf32> to vector<16x32xf32>
    %476 = arith.mulf %466, %475 : vector<16x32xf32>
    %477 = vector.broadcast %459 : vector<1x32xf32> to vector<16x32xf32>
    %478 = arith.mulf %476, %477 : vector<16x32xf32>
    %479 = vector.broadcast %460 : vector<1x32xf32> to vector<16x32xf32>
    %480 = arith.addf %478, %479 : vector<16x32xf32>
    %c0_181 = arith.constant 0 : index
    %c0_182 = arith.constant 0 : index
    %481 = vector.load %arg23[%c0_181, %c0_182] : memref<16x32xf32, #tpu.memory_space<vmem>>, vector<16x32xf32>
    tpu.vector_store %arg23[%c0_181, %c0_182], %480 {strides = array<i32>} : memref<16x32xf32, #tpu.memory_space<vmem>>, vector<16x32xf32>,
    return
  }
  func.func @transform_0(%arg0: i32) -> (i32, i32) {
    %c0_i32 = arith.constant 0 : i32
    %c0_i32_0 = arith.constant 0 : i32
    %c0_i32_1 = arith.constant 0 : i32
    return %c0_i32, %c0_i32_0 : i32, i32
  }
  func.func @transform_1(%arg0: i32) -> (i32, i32) {
    %c0_i32 = arith.constant 0 : i32
    %c0_i32_0 = arith.constant 0 : i32
    %c0_i32_1 = arith.constant 0 : i32
    return %c0_i32, %c0_i32_0 : i32, i32
  }
  func.func @transform_2(%arg0: i32) -> (i32, i32) {
    %c0_i32 = arith.constant 0 : i32
    %c0_i32_0 = arith.constant 0 : i32
    %c0_i32_1 = arith.constant 0 : i32
    return %c0_i32, %c0_i32_0 : i32, i32
  }
  func.func @transform_3(%arg0: i32) -> (i32, i32) {
    %c0_i32 = arith.constant 0 : i32
    %c0_i32_0 = arith.constant 0 : i32
    %c0_i32_1 = arith.constant 0 : i32
    return %c0_i32, %c0_i32_0 : i32, i32
  }
  func.func @transform_4(%arg0: i32) -> (i32, i32) {
    %c0_i32 = arith.constant 0 : i32
    %c0_i32_0 = arith.constant 0 : i32
    %c0_i32_1 = arith.constant 0 : i32
    return %c0_i32, %c0_i32_0 : i32, i32
  }
  func.func @transform_5(%arg0: i32) -> (i32, i32) {
    %c0_i32 = arith.constant 0 : i32
    %c0_i32_0 = arith.constant 0 : i32
    %c0_i32_1 = arith.constant 0 : i32
    return %c0_i32, %c0_i32_0 : i32, i32
  }
  func.func @transform_6(%arg0: i32) -> (i32, i32) {
    %c0_i32 = arith.constant 0 : i32
    %c0_i32_0 = arith.constant 0 : i32
    %c0_i32_1 = arith.constant 0 : i32
    return %c0_i32, %c0_i32_0 : i32, i32
  }
  func.func @transform_7(%arg0: i32) -> (i32, i32) {
    %c0_i32 = arith.constant 0 : i32
    %c0_i32_0 = arith.constant 0 : i32
    %c0_i32_1 = arith.constant 0 : i32
    return %c0_i32, %c0_i32_0 : i32, i32
  }
  func.func @transform_8(%arg0: i32) -> (i32, i32) {
    %c0_i32 = arith.constant 0 : i32
    %c0_i32_0 = arith.constant 0 : i32
    %c0_i32_1 = arith.constant 0 : i32
    return %c0_i32, %c0_i32_0 : i32, i32
  }
  func.func @transform_9(%arg0: i32) -> (i32, i32) {
    %c0_i32 = arith.constant 0 : i32
    %c0_i32_0 = arith.constant 0 : i32
    %c0_i32_1 = arith.constant 0 : i32
    return %c0_i32, %c0_i32_0 : i32, i32
  }
  func.func @transform_10(%arg0: i32) -> (i32, i32) {
    %c0_i32 = arith.constant 0 : i32
    %c0_i32_0 = arith.constant 0 : i32
    %c0_i32_1 = arith.constant 0 : i32
    return %c0_i32, %c0_i32_0 : i32, i32
  }
  func.func @transform_11(%arg0: i32) -> (i32, i32) {
    %c0_i32 = arith.constant 0 : i32
    %c0_i32_0 = arith.constant 0 : i32
    %c0_i32_1 = arith.constant 0 : i32
    return %c0_i32, %c0_i32_0 : i32, i32
  }
  func.func @transform_12(%arg0: i32) -> (i32, i32) {
    %c0_i32 = arith.constant 0 : i32
    %c0_i32_0 = arith.constant 0 : i32
    %c0_i32_1 = arith.constant 0 : i32
    return %c0_i32, %c0_i32_0 : i32, i32
  }
  func.func @transform_13(%arg0: i32) -> (i32, i32) {
    %c0_i32 = arith.constant 0 : i32
    %c0_i32_0 = arith.constant 0 : i32
    %c0_i32_1 = arith.constant 0 : i32
    return %c0_i32, %c0_i32_0 : i32, i32
  }
  func.func @transform_14(%arg0: i32) -> (i32, i32) {
    %c0_i32 = arith.constant 0 : i32
    %c0_i32_0 = arith.constant 0 : i32
    %c0_i32_1 = arith.constant 0 : i32
    return %c0_i32, %c0_i32_0 : i32, i32
  }
  func.func @transform_15(%arg0: i32) -> (i32, i32) {
    %c0_i32 = arith.constant 0 : i32
    %c0_i32_0 = arith.constant 0 : i32
    %c0_i32_1 = arith.constant 0 : i32
    return %c0_i32, %c0_i32_0 : i32, i32
  }
  func.func @transform_16(%arg0: i32) -> (i32, i32) {
    %c0_i32 = arith.constant 0 : i32
    %c0_i32_0 = arith.constant 0 : i32
    %c0_i32_1 = arith.constant 0 : i32
    return %c0_i32, %c0_i32_0 : i32, i32
  }
  func.func @transform_17(%arg0: i32) -> (i32, i32) {
    %c0_i32 = arith.constant 0 : i32
    %c0_i32_0 = arith.constant 0 : i32
    %c0_i32_1 = arith.constant 0 : i32
    return %c0_i32, %c0_i32_0 : i32, i32
  }
  func.func @transform_18(%arg0: i32) -> (i32, i32) {
    %c0_i32 = arith.constant 0 : i32
    %c0_i32_0 = arith.constant 0 : i32
    %c0_i32_1 = arith.constant 0 : i32
    return %c0_i32, %c0_i32_0 : i32, i32
  }
  func.func @transform_19(%arg0: i32) -> (i32, i32) {
    %c0_i32 = arith.constant 0 : i32
    %c0_i32_0 = arith.constant 0 : i32
    %c0_i32_1 = arith.constant 0 : i32
    return %c0_i32, %c0_i32_0 : i32, i32
  }
  func.func @transform_20(%arg0: i32) -> (i32, i32) {
    %c0_i32 = arith.constant 0 : i32
    %c0_i32_0 = arith.constant 0 : i32
    %c0_i32_1 = arith.constant 0 : i32
    return %c0_i32, %c0_i32_0 : i32, i32
  }
  func.func @transform_21(%arg0: i32) -> (i32, i32) {
    %c0_i32 = arith.constant 0 : i32
    %c0_i32_0 = arith.constant 0 : i32
    %c0_i32_1 = arith.constant 0 : i32
    return %c0_i32, %c0_i32_0 : i32, i32
  }
  func.func @transform_22(%arg0: i32) -> (i32, i32) {
    %c0_i32 = arith.constant 0 : i32
    %c0_i32_0 = arith.constant 0 : i32
    %c0_i32_1 = arith.constant 0 : i32
    return %c0_i32, %c0_i32_0 : i32, i32
  }
  func.func @transform_23(%arg0: i32) -> (i32, i32, i32) {
    %c0_i32 = arith.constant 0 : i32
    %c0_i32_0 = arith.constant 0 : i32
    %c0_i32_1 = arith.constant 0 : i32
    %c0_i32_2 = arith.constant 0 : i32
    return %c0_i32, %c0_i32_0, %c0_i32_1 : i32, i32, i32
  }
  func.func @transform_24(%arg0: i32) -> (i32, i32, i32) {
    %c0_i32 = arith.constant 0 : i32
    %c0_i32_0 = arith.constant 0 : i32
    %c0_i32_1 = arith.constant 0 : i32
    %c0_i32_2 = arith.constant 0 : i32
    return %c0_i32, %c0_i32_0, %c0_i32_1 : i32, i32, i32
  }
}

</mosaic_0001>

<bundles_post_ra>
// kernel: decoder_layer_forward.1
= control target key start
LH: loop header
LB: loop body
LE: loop exit
PB: predicated region body
PF: predicated region fallthrough
CT: control target
= control target key end

     0   :  { %s6577_s0 = inlined_call_operand.vmem [shape: f32[16,32], index: 0, kind: input, shape index: {}]   ;;  %s6578_s1 = inlined_call_operand.vmem [shape: f32[32,32], index: 1, kind: input, shape index: {}]   ;;  %s6579_s2 = inlined_call_operand.vmem [shape: f32[16,32], index: 2, kind: input, shape index: {}]   ;;  %s6580_s3 = inlined_call_operand.vmem [shape: f32[32,32], index: 3, kind: input, shape index: {}]   ;;  %s6581_s4 = inlined_call_operand.vmem [shape: f32[32,96], index: 4, kind: input, shape index: {}]   ;;  %s6582_s5 = inlined_call_operand.vmem [shape: f32[1,96], index: 5, kind: input, shape index: {}]   ;;  %s6583_s6 = inlined_call_operand.vmem [shape: f32[32,32], index: 6, kind: input, shape index: {}]   ;;  %s6584_s7 = inlined_call_operand.vmem [shape: f32[1,32], index: 7, kind: input, shape index: {}]   ;;  %s6585_s8 = inlined_call_operand.vmem [shape: f32[32,96], index: 8, kind: input, shape index: {}]   ;;  %s6586_s9 = inlined_call_operand.vmem [shape: f32[1,96], index: 9, kind: input, shape index: {}]   ;;  %s6587_s10 = inlined_call_operand.vmem [shape: f32[32,32], index: 10, kind: input, shape index: {}]   ;;  %s6588_s11 = inlined_call_operand.vmem [shape: f32[1,32], index: 11, kind: input, shape index: {}]   ;;  %s6589_s12 = inlined_call_operand.vmem [shape: f32[1,32], index: 12, kind: input, shape index: {}]   ;;  %s6590_s13 = inlined_call_operand.vmem [shape: f32[1,32], index: 13, kind: input, shape index: {}]   ;;  %s6591_s14 = inlined_call_operand.vmem [shape: f32[1,32], index: 14, kind: input, shape index: {}]   ;;  %s6592_s15 = inlined_call_operand.vmem [shape: f32[1,32], index: 15, kind: input, shape index: {}]   ;;  %s6593_s16 = inlined_call_operand.vmem [shape: f32[1,32], index: 16, kind: input, shape index: {}]   ;;  %s6594_s17 = inlined_call_operand.vmem [shape: f32[1,32], index: 17, kind: input, shape index: {}]   ;;  %s6595_s18 = inlined_call_operand.vmem [shape: f32[32,64], index: 18, kind: input, shape index: {}]   ;;  %s6596_s19 = inlined_call_operand.vmem [shape: f32[1,64], index: 19, kind: input, shape index: {}]   ;;  %s6597_s20 = inlined_call_operand.vmem [shape: f32[64,32], index: 20, kind: input, shape index: {}]   ;;  %s6598_s21 = inlined_call_operand.vmem [shape: f32[1,32], index: 21, kind: input, shape index: {}]   ;;  %s6599_s22 = inlined_call_operand.vmem [shape: f32[16,32], index: 22, kind: output, shape index: {0}]   ;;  %s6600_s23 = inlined_call_operand.hbm [shape: f32[2,8,8], index: 23, kind: output, shape index: {1}]   ;;  %s6601_s24 = inlined_call_operand.hbm [shape: f32[2,8,16], index: 24, kind: output, shape index: {2}]  }
   0x1   :  { %6609 = sst [smem:[#allocation9_spill]] %s6577_s0 }
   0x2   :  { %6610 = sst [smem:[#allocation10_spill]] %s6578_s1 }
   0x3   :  { %6611 = sst [smem:[#allocation11_spill]] %s6579_s2 }
   0x4   :  { %6612 = sst [smem:[#allocation12_spill]] %s6580_s3 }
   0x5   :  { %6613 = sst [smem:[#allocation13_spill]] %s6581_s4 }
   0x6   :  { %6614 = sst [smem:[#allocation14_spill]] %s6582_s5 }
   0x7   :  { %6615 = sst [smem:[#allocation15_spill]] %s6583_s6 }
   0x8   :  { %6616 = sst [smem:[#allocation16_spill]] %s6584_s7 }
   0x9   :  { %6617 = sst [smem:[#allocation17_spill]] %s6585_s8 }
   0xa   :  { %30 = vsyncpa [#allocation4], 0  ;;  %s6618_s27 = sld [smem:[#allocation13_spill]]  ;;  %vm101_vm0 = vcmask 261120  }
   0xb   :  { %s6619_s30 = sld [smem:[#allocation9_spill]] }
   0xc   :  { %s6620_s8 = sld [smem:[#allocation11_spill]] }
  0x10   :  { %v91_v0 = vld [vmem:[%s6618_s27 + $0x18] sm:$0xff]  ;;  %v90_v1 = vld [vmem:[%s6618_s27 + $0x10] sm:$0xff]  ;;  %v89_v2 = vld [vmem:[%s6618_s27 + $0x8] sm:$0xff] }
  0x11   :  { %5161 = vmatprep.subr.mxu0 %v91_v0  ;;  %v5809_v3 = vld [vmem:[%s6619_s30] sm:$0xff]  ;;  %v5821_v6 = vld [vmem:[%s6619_s30 + $0x8] sm:$0xff] }
  0x12   :  { %v5814_v4 = vld [vmem:[%s6620_s8] sm:$0xff]  ;;  %5162 = vmatpush3.msra.mxu0 %v91_v0  ;;  %v5826_v7 = vld [vmem:[%s6620_s8 + $0x8] sm:$0xff]  ;;  %5180 = vmatprep.mubr.msk.f32.mxu1 %vm101_vm0, %v5809_v3 }
  0x13   :  { %v93_v5 = vadd.f32 %v5814_v4, %v5809_v3 }
  0x14   :  { %31 = vsyncpa [#allocation6], 0  ;;  %5163 = vmatprep.subr.mxu0 %v90_v1  ;;  %v88_v8 = vld [vmem:[%s6618_s27] sm:$0xff]  ;;  %v94_v9 = vadd.f32 %v5826_v7, %v5821_v6  ;;  %v5658_v10 = vmov 0.0   ;;  %vm5659_vm1 = vmmov 0   ;;  %s5660_s2 = smov 64  }
  0x15   :  { %5164 = vmatpush3.msra.mxu0 %v90_v1  ;;  %5169 = vmatprep.mubr.msk.f32.mxu0 %vm101_vm0, %v93_v5  ;;  %s6621_s0 = sld [smem:[#allocation14_spill]]  ;;  %s5661_s7 = smov 96   ;;  %vm292_vm2 = vcmask 64512   ;;  %vm2678_vm3 = vcmask 130048   ;;  %vm4731_vm4 = vcmask 523264  }
  0x16   :  { %5165 = vmatprep.subr.mxu0 %v89_v2  ;;  %191 = vrot.lane.b32.xlu1 %v90_v1, %s5660_s2  ;;  %s5662_s30 = smov 88   ;;  %s5663_s3 = smov 120  }
  0x17   :  { %5166 = vmatpush3.msra.mxu0 %v89_v2  ;;  %s5664_s25 = smov 112   ;;  %s5665_s8 = smov 80  }
  0x18   :  { %5167 = vmatprep.subr.mxu0 %v88_v8  ;;  %s6622_s5 = sld [smem:[#allocation15_spill]]  ;;  %s5666_s6 = smov 72  }
  0x19   :  { %5168 = vmatpush3.msra.mxu0 %v88_v8  ;;  %s5667_s27 = smov 104  }
  0x1a   :  { %5170 = vmatmul.mubr.msk.f32.vlgmr.msra.gmra.mxu0 %vm101_vm0, %v94_v9  ;;  %5183 = vmatprep.subr.mxu0 %v5658_v10 }
  0x1b   :  { %5185 = vmatprep.mubr.msk.f32.mxu0 %vm5659_vm1, %v5658_v10  ;;  %189 = vrot.lane.b32.xlu1 %v89_v2, %s5660_s2  ;;  %v5847_v12 = vld [vmem:[%s6621_s0] ss:$0 sm:$0xff] }
  0x1e   :  { %v5910_v49 = vld [vmem:[%s6622_s5 + $0x8] sm:$0xff]  ;;  %v5917_v53 = vld [vmem:[%s6622_s5] sm:$0xff] }
  0x88   :  { %v192_v18 = vpop.permute.xlu1 %191 }
  0x8d   :  { %v190_v19 = vpop.permute.xlu1 %189 }
  0xda   :  { %v5841_v11 = vpop.f32.mrf.mxu0 }
  0xdb   :  { %v5944_v1 = vadd.f32 %v5841_v11, %v5847_v12 }
  0xdc   :  { %v174_v13 = vpop.f32.mrf.mxu0 }
  0xdd   :  { %v5850_v14 = vadd.f32 %v5847_v12, %v174_v13 }
  0xdf   :  { %290 = vrot.lane.b32.xlu0 %v5850_v14, %s5661_s7  ;;  %v5858_v16 = vmul.f32 0.35355338, %v5850_v14 }
  0xe3   :  { %193 = vrot.lane.b32.xlu0 %v91_v0, %s5660_s2 }
  0xe7   :  { %187 = vrot.lane.b32.xlu0 %v88_v8, %s5660_s2 }
 0x151   :  { %v291_v15 = vpop.permute.xlu0 %290 }
 0x152   :  { %5184 = vmatpush3.xpose.msk.msra.mxu0 %vm292_vm2, %v291_v15 }
 0x153   :  { %5188 = vmatprep.subr.mxu0 %v5658_v10 }
 0x155   :  { %5186 = vmatmul.mubr.msk.f32.vlgmr.msra.gmra.mxu0 %vm292_vm2, %v5858_v16  ;;  %v194_v17 = vpop.permute.xlu0 %193 }
 0x156   :  { %5190 = vmatprep.mubr.msk.f32.mxu0 %vm5659_vm1, %v5658_v10  ;;  %5172 = vmatprep.subr.mxu1 %v194_v17 }
 0x157   :  { %5173 = vmatpush3.msra.mxu1 %v194_v17 }
 0x158   :  { %5174 = vmatprep.subr.mxu1 %v192_v18 }
 0x159   :  { %5175 = vmatpush3.msra.mxu1 %v192_v18  ;;  %v188_v20 = vpop.permute.xlu0 %187 }
 0x15a   :  { %5176 = vmatprep.subr.mxu1 %v190_v19 }
 0x15b   :  { %5177 = vmatpush3.msra.mxu1 %v190_v19 }
 0x15c   :  { %5178 = vmatprep.subr.mxu1 %v188_v20 }
 0x15d   :  { %5179 = vmatpush3.msra.mxu1 %v188_v20  ;;  %v5964_v20 = vld [vmem:[%s6622_s5 + $0x10] sm:$0xff] }
 0x15e   :  { %5181 = vmatmul.mubr.msk.f32.vlgmr.msra.gmra.mxu1 %vm101_vm0, %v5821_v6  ;;  %5198 = vmatprep.subr.mxu1 %v5658_v10 }
 0x15f   :  { %5200 = vmatprep.mubr.msk.f32.mxu1 %vm5659_vm1, %v5658_v10 }
 0x215   :  { %v364_v21 = vpop.f32.mrf.mxu0 }
 0x216   :  { %v368_v22 = vsel %vm292_vm2, %v364_v21, -inf }
 0x217   :  { %369 = vmax.xlane.f32.xlu1 %v368_v22  ;;  %v5187_v23 = vpop.f32.mrf.mxu0 }
 0x21e   :  { %v5878_v29 = vpop.f32.mrf.mxu1 }
 0x220   :  { %v274_v31 = vpop.f32.mrf.mxu1 }
 0x228   :  { %455 = vrot.lane.b32.xlu1 %v5850_v14, %s5662_s30 }
 0x22c   :  { %453 = vrot.lane.b32.xlu1 %v5858_v16, %s5663_s3 }
 0x2a0   :  { %v370_v24 = vpop.xlane.xlu1 %369 }
 0x2a1   :  { %v371_v25 = vsub.f32 %v364_v21, %v370_v24 }
 0x2a3   :  { %v372_v26 = vmul.f32 1.442695, %v371_v25 }
 0x2a4   :  { %v456_v35 = vpop.permute.xlu1 %455 }
 0x2a5   :  { %5538 = vpow2.f32 %v372_v26 }
 0x2a8   :  { %v454_v37 = vpop.permute.xlu1 %453 }
 0x2b2   :  { %v5539_v27 = vpop.eup %5538 }
 0x2b3   :  { %v374_v28 = vsel %vm292_vm2, %v5539_v27, 0.0 }
 0x2b4   :  { %375 = vadd.xlane.f32.xlu0 %v374_v28 }
 0x2ca   :  { %199 = vrot.lane.b32.xlu0 %v5847_v12, %s5660_s2 }
 0x33d   :  { %v376_v30 = vpop.xlane.xlu0 %375 }
 0x33e   :  { %5540 = vrcp.f32 %v376_v30 }
 0x341   :  { %v5880_v32 = vpop.permute.xlu0 %199 }
 0x342   :  { %v5883_v33 = vadd.f32 %v274_v31, %v5880_v32 }
 0x344   :  { %5189 = vmatpush3.msra.mxu0 %v5883_v33 }
 0x345   :  { %5193 = vmatprep.subr.mxu0 %v5658_v10 }
 0x34b   :  { %v5541_v34 = vpop.eup %5540 }
 0x34c   :  { %v5887_v36 = vmul.f32 %v5541_v34, %v5539_v27 }
 0x34e   :  { %5191 = vmatmul.mubr.msk.f32.vlgmr.msra.gmra.mxu0 %vm292_vm2, %v5887_v36 }
 0x34f   :  { %5194 = vmatpush3.xpose.msk.msra.mxu0 %vm292_vm2, %v456_v35  ;;  %5195 = vmatprep.mubr.msk.f32.mxu0 %vm5659_vm1, %v5658_v10  ;;  %v5979_v35 = vmul.f32 0.35355338, %v5944_v1 }
 0x350   :  { %5203 = vmatprep.subr.mxu0 %v5658_v10 }
 0x352   :  { %5196 = vmatmul.mubr.msk.f32.vlgmr.msra.gmra.mxu0 %vm292_vm2, %v454_v37 }
 0x353   :  { %5205 = vmatprep.mubr.msk.f32.mxu0 %vm5659_vm1, %v5658_v10  ;;  %5204 = vmatpush3.msra.mxu0 %v5910_v49 }
 0x354   :  { %5213 = vmatprep.subr.mxu0 %v5658_v10 }
 0x40e   :  { %v449_v38 = vpop.f32.mrf.mxu0 }
 0x410   :  { %v5192_v39 = vpop.f32.mrf.mxu0 }
 0x411   :  { %v5987_v39 = vld [vmem:[%s6622_s5 + $0x18] sm:$0xff]  ;;  %s6623_s5 = sld [smem:[#allocation16_spill]] }
 0x412   :  { %v527_v40 = vpop.f32.mrf.mxu0 }
 0x413   :  { %v531_v41 = vsel %vm292_vm2, %v527_v40, -inf }
 0x414   :  { %532 = vmax.xlane.f32.xlu0 %v531_v41  ;;  %v5197_v42 = vpop.f32.mrf.mxu0 }
 0x42a   :  { %544 = vrot.lane.b32.xlu0 %v5883_v33, %s5663_s3 }
 0x42e   :  { %766 = vrot.lane.b32.xlu0 %v5858_v16, %s5664_s25 }
 0x49d   :  { %v533_v43 = vpop.xlane.xlu0 %532 }
 0x49e   :  { %v534_v44 = vsub.f32 %v527_v40, %v533_v43 }
 0x4a0   :  { %v535_v45 = vmul.f32 1.442695, %v534_v44 }
 0x4a1   :  { %v545_v46 = vpop.permute.xlu0 %544 }
 0x4a2   :  { %5542 = vpow2.f32 %v535_v45  ;;  %5199 = vmatpush3.msra.mxu1 %v545_v46 }
 0x4a3   :  { %5208 = vmatprep.subr.mxu1 %v5658_v10 }
 0x4a5   :  { %v767_v57 = vpop.permute.xlu0 %766 }
 0x4af   :  { %v5543_v47 = vpop.eup %5542 }
 0x4b0   :  { %v537_v48 = vsel %vm292_vm2, %v5543_v47, 0.0 }
 0x4b1   :  { %538 = vadd.xlane.f32.xlu1 %v537_v48  ;;  %v6010_v48 = vadd.f32 %v5878_v29, %v5880_v32 }
 0x4c2   :  { %768 = vrot.lane.b32.xlu1 %v5850_v14, %s5665_s8 }
 0x53a   :  { %v539_v50 = vpop.xlane.xlu1 %538 }
 0x53b   :  { %5544 = vrcp.f32 %v539_v50 }
 0x53e   :  { %v769_v55 = vpop.permute.xlu1 %768 }
 0x548   :  { %v5545_v51 = vpop.eup %5544 }
 0x549   :  { %v541_v52 = vmul.f32 %v5545_v51, %v5543_v47 }
 0x54b   :  { %5201 = vmatmul.mubr.msk.f32.vlgmr.msra.gmra.mxu1 %vm292_vm2, %v541_v52  ;;  %v542_v17 = vadd.f32 %v541_v52, %v5887_v36 }
 0x54c   :  { %5209 = vmatpush3.msra.mxu1 %v5917_v53  ;;  %5210 = vmatprep.mubr.msk.f32.mxu1 %vm5659_vm1, %v5658_v10 }
 0x54d   :  { %5218 = vmatprep.subr.mxu1 %v5658_v10 }
 0x54f   :  { %5211 = vmatmul.mubr.msk.f32.vlgmr.msra.gmra.mxu1 %vm292_vm2, %v449_v38 }
 0x550   :  { %5220 = vmatprep.mubr.msk.f32.mxu1 %vm5659_vm1, %v5658_v10 }
 0x60b   :  { %v616_v54 = vpop.f32.mrf.mxu1 }
 0x60c   :  { %5206 = vmatmul.mubr.msk.f32.vlgmr.msra.gmra.mxu0 %vm292_vm2, %v616_v54 }
 0x60d   :  { %5214 = vmatpush3.xpose.msk.msra.mxu0 %vm292_vm2, %v769_v55  ;;  %v5202_v56 = vpop.f32.mrf.mxu1  ;;  %5215 = vmatprep.mubr.msk.f32.mxu0 %vm5659_vm1, %v5658_v10 }
 0x60e   :  { %5223 = vmatprep.subr.mxu0 %v5658_v10 }
 0x60f   :  { %v5932_v58 = vpop.f32.mrf.mxu1 }
 0x610   :  { %5216 = vmatmul.mubr.msk.f32.vlgmr.msra.gmra.mxu0 %vm292_vm2, %v767_v57 }
 0x611   :  { %v5212_v59 = vpop.f32.mrf.mxu1  ;;  %5225 = vmatprep.mubr.msk.f32.mxu0 %vm5659_vm1, %v5658_v10  ;;  %5224 = vmatpush3.msra.mxu0 %v5964_v20 }
 0x612   :  { %5233 = vmatprep.subr.mxu0 %v5658_v10 }
 0x6cc   :  { %v689_v60 = vpop.f32.mrf.mxu0 }
 0x6ce   :  { %v5207_v61 = vpop.f32.mrf.mxu0 }
 0x6d0   :  { %v840_v62 = vpop.f32.mrf.mxu0 }
 0x6d1   :  { %v844_v63 = vsel %vm292_vm2, %v840_v62, -inf }
 0x6d2   :  { %845 = vmax.xlane.f32.xlu1 %v844_v63  ;;  %v5217_v0 = vpop.f32.mrf.mxu0 }
 0x6e3   :  { %1008 = vrot.lane.b32.xlu1 %v5850_v14, %s5666_s6 }
 0x6e7   :  { %1006 = vrot.lane.b32.xlu1 %v5858_v16, %s5667_s27 }
 0x6eb   :  { %1250 = vrot.lane.b32.xlu1 %v5944_v1, %s5661_s7 }
 0x75b   :  { %v846_v2 = vpop.xlane.xlu1 %845 }
 0x75c   :  { %v847_v5 = vsub.f32 %v840_v62, %v846_v2 }
 0x75e   :  { %v848_v8 = vmul.f32 1.442695, %v847_v5 }
 0x75f   :  { %v1009_v12 = vpop.permute.xlu1 %1008 }
 0x760   :  { %5546 = vpow2.f32 %v848_v8 }
 0x763   :  { %v1007_v19 = vpop.permute.xlu1 %1006 }
 0x767   :  { %v1251_v40 = vpop.permute.xlu1 %1250 }
 0x76d   :  { %v5547_v9 = vpop.eup %5546 }
 0x76e   :  { %v850_v13 = vsel %vm292_vm2, %v5547_v9, 0.0 }
 0x76f   :  { %851 = vadd.xlane.f32.xlu0 %v850_v13 }
 0x785   :  { %856 = vrot.lane.b32.xlu0 %v5883_v33, %s5664_s25 }
 0x7f8   :  { %v852_v14 = vpop.xlane.xlu0 %851 }
 0x7f9   :  { %5548 = vrcp.f32 %v852_v14 }
 0x7fc   :  { %v857_v15 = vpop.permute.xlu0 %856 }
 0x7fd   :  { %5219 = vmatpush3.msra.mxu1 %v857_v15 }
 0x7fe   :  { %5228 = vmatprep.subr.mxu1 %v5658_v10 }
 0x806   :  { %v5549_v11 = vpop.eup %5548 }
 0x807   :  { %v854_v16 = vmul.f32 %v5549_v11, %v5547_v9 }
 0x809   :  { %5221 = vmatmul.mubr.msk.f32.vlgmr.msra.gmra.mxu1 %vm292_vm2, %v854_v16  ;;  %v855_v18 = vadd.f32 %v854_v16, %v542_v17 }
 0x80a   :  { %5229 = vmatpush3.xpose.msk.msra.mxu1 %vm292_vm2, %v1009_v12  ;;  %5230 = vmatprep.mubr.msk.f32.mxu1 %vm5659_vm1, %v5658_v10 }
 0x80b   :  { %5238 = vmatprep.subr.mxu1 %v5658_v10 }
 0x80d   :  { %5231 = vmatmul.mubr.msk.f32.vlgmr.msra.gmra.mxu1 %vm292_vm2, %v1007_v19 }
 0x80e   :  { %5240 = vmatprep.mubr.msk.f32.mxu1 %vm5659_vm1, %v5658_v10  ;;  %5239 = vmatpush3.msra.mxu1 %v5987_v39 }
 0x80f   :  { %5248 = vmatprep.subr.mxu1 %v5658_v10 }
 0x8c9   :  { %v928_v21 = vpop.f32.mrf.mxu1 }
 0x8ca   :  { %5226 = vmatmul.mubr.msk.f32.vlgmr.msra.gmra.mxu0 %vm292_vm2, %v928_v21 }
 0x8cb   :  { %v5222_v22 = vpop.f32.mrf.mxu1  ;;  %5235 = vmatprep.mubr.msk.f32.mxu0 %vm5659_vm1, %v5658_v10 }
 0x8cd   :  { %v1080_v23 = vpop.f32.mrf.mxu1 }
 0x8ce   :  { %v1084_v24 = vsel %vm292_vm2, %v1080_v23, -inf }
 0x8cf   :  { %1085 = vmax.xlane.f32.xlu0 %v1084_v24  ;;  %v5232_v25 = vpop.f32.mrf.mxu1 }
 0x8e5   :  { %1096 = vrot.lane.b32.xlu0 %v5883_v33, %s5667_s27  ;;  %v763_v33 = vadd.f32 %v5932_v58, %v689_v60 }
 0x8e9   :  { %1414 = vrot.lane.b32.xlu0 %v5944_v1, %s5662_s30 }
 0x958   :  { %v1086_v26 = vpop.xlane.xlu0 %1085 }
 0x959   :  { %v1087_v27 = vsub.f32 %v1080_v23, %v1086_v26 }
 0x95b   :  { %v1088_v28 = vmul.f32 1.442695, %v1087_v27 }
 0x95c   :  { %v1097_v30 = vpop.permute.xlu0 %1096 }
 0x95d   :  { %5550 = vpow2.f32 %v1088_v28  ;;  %5234 = vmatpush3.msra.mxu0 %v1097_v30 }
 0x95e   :  { %5243 = vmatprep.subr.mxu0 %v5658_v10 }
 0x960   :  { %v1415_v46 = vpop.permute.xlu0 %1414 }
 0x96a   :  { %v5551_v31 = vpop.eup %5550 }
 0x96b   :  { %v1090_v34 = vsel %vm292_vm2, %v5551_v31, 0.0 }
 0x96c   :  { %1091 = vadd.xlane.f32.xlu1 %v1090_v34 }
 0x97d   :  { %1412 = vrot.lane.b32.xlu1 %v5979_v35, %s5663_s3 }
 0x98a   :  { %v1001_v36 = vpop.f32.mrf.mxu0 }
 0x98b   :  { %v1005_v37 = vadd.f32 %v1001_v36, %v763_v33 }
 0x98c   :  { %v5227_v38 = vpop.f32.mrf.mxu0 }
 0x9f5   :  { %v1092_v41 = vpop.xlane.xlu1 %1091 }
 0x9f6   :  { %5552 = vrcp.f32 %v1092_v41 }
 0x9f9   :  { %v1413_v47 = vpop.permute.xlu1 %1412 }
 0xa03   :  { %v5553_v42 = vpop.eup %5552 }
 0xa04   :  { %v1094_v43 = vmul.f32 %v5553_v42, %v5551_v31 }
 0xa06   :  { %5236 = vmatmul.mubr.msk.f32.vlgmr.msra.gmra.mxu0 %vm292_vm2, %v1094_v43  ;;  %v1095_v44 = vadd.f32 %v1094_v43, %v855_v18 }
 0xa07   :  { %5244 = vmatpush3.xpose.msk.msra.mxu0 %vm292_vm2, %v1251_v40  ;;  %5245 = vmatprep.mubr.msk.f32.mxu0 %vm5659_vm1, %v5658_v10 }
 0xa08   :  { %5253 = vmatprep.subr.mxu0 %v5658_v10  ;;  %v1247_v45 = vmul.f32 0.25, %v1095_v44 }
 0xa0a   :  { %5246 = vmatmul.mubr.msk.f32.vlgmr.msra.gmra.mxu0 %vm292_vm2, %v5979_v35  ;;  %1248 = vst.msk [vmem:[#allocation3] sm:$0xff] %vm292_vm2, %v1247_v45 }
 0xa0b   :  { %5254 = vmatpush3.xpose.msk.msra.mxu0 %vm292_vm2, %v1415_v46  ;;  %5255 = vmatprep.mubr.msk.f32.mxu0 %vm5659_vm1, %v5658_v10 }
 0xa0c   :  { %5263 = vmatprep.subr.mxu0 %v5658_v10 }
 0xa0e   :  { %5256 = vmatmul.mubr.msk.f32.vlgmr.msra.gmra.mxu0 %vm292_vm2, %v1413_v47 }
 0xa0f   :  { %5264 = vmatpush3.msra.mxu0 %v5910_v49  ;;  %5265 = vmatprep.mubr.msk.f32.mxu0 %vm5659_vm1, %v5658_v10 }
 0xa10   :  { %5273 = vmatprep.subr.mxu0 %v5658_v10 }
 0xac6   :  { %v1168_v50 = vpop.f32.mrf.mxu0 }
 0xac7   :  { %5241 = vmatmul.mubr.msk.f32.vlgmr.msra.gmra.mxu1 %vm292_vm2, %v1168_v50 }
 0xac8   :  { %5249 = vmatpush3.msra.mxu1 %v6010_v48  ;;  %v5237_v51 = vpop.f32.mrf.mxu0  ;;  %5250 = vmatprep.mubr.msk.f32.mxu1 %vm5659_vm1, %v5658_v10 }
 0xac9   :  { %5258 = vmatprep.subr.mxu1 %v5658_v10 }
 0xaca   :  { %v1323_v49 = vpop.f32.mrf.mxu0 }
 0xacb   :  { %v1327_v52 = vsel %vm292_vm2, %v1323_v49, -inf }
 0xacc   :  { %1328 = vmax.xlane.f32.xlu0 %v1327_v52  ;;  %v5247_v54 = vpop.f32.mrf.mxu0 }
 0xace   :  { %v1486_v55 = vpop.f32.mrf.mxu0 }
 0xacf   :  { %v1490_v29 = vsel %vm292_vm2, %v1486_v55, -inf }
 0xad0   :  { %1491 = vmax.xlane.f32.xlu1 %v1490_v29  ;;  %v5257_v32 = vpop.f32.mrf.mxu0 }
 0xae1   :  { %1503 = vrot.lane.b32.xlu1 %v6010_v48, %s5663_s3 }
 0xae5   :  { %1725 = vrot.lane.b32.xlu1 %v5979_v35, %s5664_s25 }
 0xb55   :  { %v1329_v56 = vpop.xlane.xlu0 %1328 }
 0xb56   :  { %v1330_v57 = vsub.f32 %v1323_v49, %v1329_v56  ;;  %v4934_v56 = vld [vmem:[%s6623_s5] ss:$0 sm:$0xff] }
 0xb58   :  { %v1331_v58 = vmul.f32 1.442695, %v1330_v57 }
 0xb59   :  { %v1492_v59 = vpop.xlane.xlu1 %1491 }
 0xb5a   :  { %5554 = vpow2.f32 %v1331_v58  ;;  %v1493_v60 = vsub.f32 %v1486_v55, %v1492_v59 }
 0xb5c   :  { %v1494_v61 = vmul.f32 1.442695, %v1493_v60 }
 0xb5d   :  { %v1504_v12 = vpop.permute.xlu1 %1503 }
 0xb5e   :  { %5556 = vpow2.f32 %v1494_v61 }
 0xb67   :  { %v5555_v62 = vpop.eup %5554 }
 0xb68   :  { %v1333_v63 = vsel %vm292_vm2, %v5555_v62, 0.0 }
 0xb69   :  { %1334 = vadd.xlane.f32.xlu0 %v1333_v63 }
 0xb6b   :  { %v5557_v0 = vpop.eup %5556 }
 0xb6c   :  { %v1496_v2 = vsel %vm292_vm2, %v5557_v0, 0.0 }
 0xb6d   :  { %1497 = vadd.xlane.f32.xlu0 %v1496_v2 }
 0xb83   :  { %1727 = vrot.lane.b32.xlu0 %v5944_v1, %s5665_s8  ;;  %s6626_s8 = sld [smem:[#allocation12_spill]] }
 0xb87   :  { %v1241_v5 = vpop.f32.mrf.mxu1 }
 0xb88   :  { %v1245_v8 = vadd.f32 %v1241_v5, %v1005_v37 }
 0xb89   :  { %v5242_v9 = vpop.f32.mrf.mxu1 }
 0xb8a   :  { %1246 = vst.msk [vmem:[#allocation2] sm:$0xff] %vm101_vm0, %v1245_v8 }
 0xb91   :  { %v2209_v29 = vld [vmem:[#allocation2] sm:$0xff] }
 0xb92   :  { %v2211_v32 = vadd.f32 %v2209_v29, %v5809_v3 }
 0xb94   :  { %v2220_v59 = vadd.f32 %v4934_v56, %v2211_v32 }
 0xbf2   :  { %v1335_v13 = vpop.xlane.xlu0 %1334 }
 0xbf3   :  { %5558 = vrcp.f32 %v1335_v13 }
 0xbf6   :  { %v1498_v14 = vpop.xlane.xlu0 %1497 }
 0xbf7   :  { %5560 = vrcp.f32 %v1498_v14 }
 0xbfa   :  { %v1728_v23 = vpop.permute.xlu0 %1727 }
 0xc00   :  { %v5559_v15 = vpop.eup %5558 }
 0xc01   :  { %v1337_v11 = vmul.f32 %v5559_v15, %v5555_v62 }
 0xc03   :  { %5251 = vmatmul.mubr.msk.f32.vlgmr.msra.gmra.mxu1 %vm292_vm2, %v1337_v11 }
 0xc04   :  { %v5561_v16 = vpop.eup %5560  ;;  %5259 = vmatpush3.msra.mxu1 %v1504_v12  ;;  %5260 = vmatprep.mubr.msk.f32.mxu1 %vm5659_vm1, %v5658_v10 }
 0xc05   :  { %v1500_v17 = vmul.f32 %v5561_v16, %v5557_v0  ;;  %5268 = vmatprep.subr.mxu1 %v5658_v10 }
 0xc07   :  { %5261 = vmatmul.mubr.msk.f32.vlgmr.msra.gmra.mxu1 %vm292_vm2, %v1500_v17  ;;  %v1501_v18 = vadd.f32 %v1500_v17, %v1337_v11 }
 0xc08   :  { %5269 = vmatpush3.msra.mxu1 %v5917_v53  ;;  %5270 = vmatprep.mubr.msk.f32.mxu1 %vm5659_vm1, %v5658_v10  ;;  %v1726_v53 = vpop.permute.xlu1 %1725 }
 0xc09   :  { %5278 = vmatprep.subr.mxu1 %v5658_v10 }
 0xcc3   :  { %v1408_v19 = vpop.f32.mrf.mxu1 }
 0xcc4   :  { %5271 = vmatmul.mubr.msk.f32.vlgmr.msra.gmra.mxu1 %vm292_vm2, %v1408_v19 }
 0xcc5   :  { %v5252_v21 = vpop.f32.mrf.mxu1  ;;  %5280 = vmatprep.mubr.msk.f32.mxu1 %vm5659_vm1, %v5658_v10 }
 0xcc7   :  { %v1575_v22 = vpop.f32.mrf.mxu1 }
 0xcc8   :  { %5266 = vmatmul.mubr.msk.f32.vlgmr.msra.gmra.mxu0 %vm292_vm2, %v1575_v22 }
 0xcc9   :  { %5274 = vmatpush3.xpose.msk.msra.mxu0 %vm292_vm2, %v1728_v23  ;;  %v5262_v24 = vpop.f32.mrf.mxu1  ;;  %5275 = vmatprep.mubr.msk.f32.mxu0 %vm5659_vm1, %v5658_v10 }
 0xcca   :  { %5283 = vmatprep.subr.mxu0 %v5658_v10 }
 0xccc   :  { %5276 = vmatmul.mubr.msk.f32.vlgmr.msra.gmra.mxu0 %vm292_vm2, %v1726_v53 }
 0xccd   :  { %5284 = vmatpush3.msra.mxu0 %v5964_v20  ;;  %5285 = vmatprep.mubr.msk.f32.mxu0 %vm5659_vm1, %v5658_v10 }
 0xcce   :  { %5293 = vmatprep.subr.mxu0 %v5658_v10 }
 0xd84   :  { %v1721_v25 = vpop.f32.mrf.mxu1 }
 0xd86   :  { %v5272_v26 = vpop.f32.mrf.mxu1 }
 0xd88   :  { %v1648_v27 = vpop.f32.mrf.mxu0 }
 0xd89   :  { %v1722_v28 = vadd.f32 %v1721_v25, %v1648_v27 }
 0xd8a   :  { %v5267_v30 = vpop.f32.mrf.mxu0 }
 0xd8c   :  { %v1799_v31 = vpop.f32.mrf.mxu0 }
 0xd8d   :  { %v1803_v34 = vsel %vm292_vm2, %v1799_v31, -inf }
 0xd8e   :  { %1804 = vmax.xlane.f32.xlu1 %v1803_v34  ;;  %v5277_v33 = vpop.f32.mrf.mxu0 }
 0xd9f   :  { %1967 = vrot.lane.b32.xlu1 %v5944_v1, %s5666_s6  ;;  %s6624_s6 = sld [smem:[#allocation17_spill]] }
 0xda3   :  { %1965 = vrot.lane.b32.xlu1 %v5979_v35, %s5667_s27 }
 0xda5   :  { %v2269_v24 = vld [vmem:[%s6624_s6 + $0x10] sm:$0xff]  ;;  %v2270_v53 = vld [vmem:[%s6624_s6 + $0x18] sm:$0xff]  ;;  %v2267_v25 = vld [vmem:[%s6624_s6] sm:$0xff] }
 0xe17   :  { %v1805_v20 = vpop.xlane.xlu1 %1804 }
 0xe18   :  { %v1806_v36 = vsub.f32 %v1799_v31, %v1805_v20 }
 0xe1a   :  { %v1807_v37 = vmul.f32 1.442695, %v1806_v36 }
 0xe1b   :  { %v1968_v43 = vpop.permute.xlu1 %1967 }
 0xe1c   :  { %5562 = vpow2.f32 %v1807_v37  ;;  %v4935_v37 = vld [vmem:[%s6589_s12] ss:$0 sm:$0xff]  ;;  %s6625_s12 = sld [smem:[#allocation10_spill]] }
 0xe1f   :  { %v1966_v45 = vpop.permute.xlu1 %1965 }
 0xe29   :  { %v5563_v38 = vpop.eup %5562 }
 0xe2a   :  { %v1809_v40 = vsel %vm292_vm2, %v5563_v38, 0.0 }
 0xe2b   :  { %1810 = vadd.xlane.f32.xlu0 %v1809_v40  ;;  %v4936_v40 = vld [vmem:[%s6590_s13] ss:$0 sm:$0xff] }
 0xe41   :  { %1815 = vrot.lane.b32.xlu0 %v6010_v48, %s5664_s25 }
 0xeb4   :  { %v1811_v41 = vpop.xlane.xlu0 %1810 }
 0xeb5   :  { %5564 = vrcp.f32 %v1811_v41 }
 0xeb8   :  { %v1816_v42 = vpop.permute.xlu0 %1815 }
 0xeb9   :  { %5279 = vmatpush3.msra.mxu1 %v1816_v42 }
 0xeba   :  { %5288 = vmatprep.subr.mxu1 %v5658_v10 }
 0xec2   :  { %v5565_v1 = vpop.eup %5564 }
 0xec3   :  { %v1813_v35 = vmul.f32 %v5565_v1, %v5563_v38 }
 0xec5   :  { %5281 = vmatmul.mubr.msk.f32.vlgmr.msra.gmra.mxu1 %vm292_vm2, %v1813_v35  ;;  %v1814_v44 = vadd.f32 %v1813_v35, %v1501_v18  ;;  %v84_v35 = vld [vmem:[%s6626_s8] sm:$0xff] }
 0xec6   :  { %5289 = vmatpush3.xpose.msk.msra.mxu1 %vm292_vm2, %v1968_v43  ;;  %5290 = vmatprep.mubr.msk.f32.mxu1 %vm5659_vm1, %v5658_v10  ;;  %v78_v43 = vld [vmem:[%s6625_s12] sm:$0xff] }
 0xec7   :  { %5298 = vmatprep.subr.mxu1 %v5658_v10 }
 0xec9   :  { %5291 = vmatmul.mubr.msk.f32.vlgmr.msra.gmra.mxu1 %vm292_vm2, %v1966_v45 }
 0xeca   :  { %5299 = vmatpush3.msra.mxu1 %v5987_v39  ;;  %5300 = vmatprep.mubr.msk.f32.mxu1 %vm5659_vm1, %v5658_v10 }
 0xf85   :  { %v1887_v46 = vpop.f32.mrf.mxu1 }
 0xf86   :  { %5286 = vmatmul.mubr.msk.f32.vlgmr.msra.gmra.mxu0 %vm292_vm2, %v1887_v46 }
 0xf87   :  { %v5282_v47 = vpop.f32.mrf.mxu1  ;;  %5295 = vmatprep.mubr.msk.f32.mxu0 %vm5659_vm1, %v5658_v10 }
 0xf89   :  { %v2039_v50 = vpop.f32.mrf.mxu1 }
 0xf8a   :  { %v2043_v51 = vsel %vm292_vm2, %v2039_v50, -inf }
 0xf8b   :  { %2044 = vmax.xlane.f32.xlu0 %v2043_v51  ;;  %v5292_v49 = vpop.f32.mrf.mxu1 }
 0xfa1   :  { %2055 = vrot.lane.b32.xlu0 %v6010_v48, %s5667_s27  ;;  %v2224_v48 = vsel %vm101_vm0, %v2220_v59, 0.0 }
 0xfa5   :  { %2375 = vrot.lane.b32.xlu0 %v2269_v24, %s5661_s7 }
0x1014   :  { %v2045_v52 = vpop.xlane.xlu0 %2044 }
0x1015   :  { %v2046_v39 = vsub.f32 %v2039_v50, %v2045_v52  ;;  %v79_v52 = vld [vmem:[%s6625_s12 + $0x8] sm:$0xff] }
0x1017   :  { %v2047_v54 = vmul.f32 1.442695, %v2046_v39  ;;  %v85_v39 = vld [vmem:[%s6626_s8 + $0x8] sm:$0xff] }
0x1018   :  { %v2056_v55 = vpop.permute.xlu0 %2055  ;;  %v2364_v32 = vadd.f32 %v85_v39, %v79_v52 }
0x1019   :  { %5566 = vpow2.f32 %v2047_v54  ;;  %5294 = vmatpush3.msra.mxu0 %v2056_v55  ;;  %v80_v54 = vld [vmem:[%s6625_s12 + $0x10] sm:$0xff] }
0x101a   :  { %5303 = vmatprep.subr.mxu0 %v2270_v53  ;;  %v86_v55 = vld [vmem:[%s6626_s8 + $0x10] sm:$0xff] }
0x101c   :  { %v2376_v45 = vpop.permute.xlu0 %2375 }
0x1026   :  { %v5567_v57 = vpop.eup %5566 }
0x1027   :  { %v2049_v58 = vsel %vm292_vm2, %v5567_v57, 0.0 }
0x1028   :  { %2050 = vadd.xlane.f32.xlu1 %v2049_v58  ;;  %v87_v58 = vld [vmem:[%s6626_s8 + $0x18] sm:$0xff] }
0x102c   :  { %2225 = vadd.xlane.f32.xlu1 %v2224_v48 }
0x1046   :  { %v1960_v60 = vpop.f32.mrf.mxu0 }
0x1047   :  { %v1964_v61 = vadd.f32 %v1960_v60, %v1722_v28 }
0x1048   :  { %v5287_v62 = vpop.f32.mrf.mxu0 }
0x10b1   :  { %v2051_v63 = vpop.xlane.xlu1 %2050 }
0x10b2   :  { %5568 = vrcp.f32 %v2051_v63 }
0x10b5   :  { %v2226_v11 = vpop.xlane.xlu1 %2225 }
0x10b6   :  { %v2231_v12 = vmul.f32 0.03125, %v2226_v11 }
0x10b8   :  { %v2233_v17 = vsub.f32 %v2220_v59, %v2231_v12 }
0x10ba   :  { %v2235_v22 = vmul.f32 %v2233_v17, %v2233_v17 }
0x10bc   :  { %v2237_v23 = vsel %vm101_vm0, %v2235_v22, 0.0 }
0x10bf   :  { %v5569_v0 = vpop.eup %5568 }
0x10c0   :  { %v2053_v2 = vmul.f32 %v5569_v0, %v5567_v57  ;;  %v81_v57 = vld [vmem:[%s6625_s12 + $0x18] sm:$0xff] }
0x10c1   :  { %v2366_v59 = vadd.f32 %v87_v58, %v81_v57 }
0x10c2   :  { %5296 = vmatmul.mubr.msk.f32.vlgmr.msra.gmra.mxu0 %vm292_vm2, %v2053_v2  ;;  %v2054_v3 = vadd.f32 %v2053_v2, %v1814_v44  ;;  %v2363_v44 = vadd.f32 %v84_v35, %v78_v43 }
0x10c3   :  { %5304 = vmatpush3.msra.mxu0 %v2270_v53 }
0x10c4   :  { %v2206_v5 = vmul.f32 0.25, %v2054_v3  ;;  %5305 = vmatprep.subr.mxu0 %v2269_v24 }
0x10c5   :  { %5306 = vmatpush3.msra.mxu0 %v2269_v24 }
0x10c6   :  { %2208 = vst.msk [vmem:[#allocation3 + $0x8] sm:$0xff] %vm292_vm2, %v2206_v5 }
0x1182   :  { %v2127_v8 = vpop.f32.mrf.mxu0 }
0x1183   :  { %5301 = vmatmul.mubr.msk.f32.vlgmr.msra.gmra.mxu1 %vm292_vm2, %v2127_v8 }
0x1184   :  { %v5297_v9 = vpop.f32.mrf.mxu0  ;;  %5322 = vmatprep.mubr.msk.f32.mxu1 %vm101_vm0, %v2363_v44 }
0x1243   :  { %v2200_v13 = vpop.f32.mrf.mxu1 }
0x1244   :  { %v2204_v14 = vadd.f32 %v2200_v13, %v1964_v61 }
0x1245   :  { %v5302_v15 = vpop.f32.mrf.mxu1 }
0x1246   :  { %2205 = vst.msk [vmem:[#allocation2 + $0x8] sm:$0xff] %vm101_vm0, %v2204_v14 }
0x124d   :  { %v2210_v16 = vld [vmem:[#allocation2 + $0x8] sm:$0xff] }
0x124e   :  { %v2212_v18 = vadd.f32 %v2210_v16, %v5821_v6  ;;  %v2268_v6 = vld [vmem:[%s6624_s6 + $0x8] sm:$0xff] }
0x124f   :  { %2373 = vrot.lane.b32.xlu0 %v2268_v6, %s5661_s7  ;;  %5307 = vmatprep.subr.mxu0 %v2268_v6 }
0x1250   :  { %v2221_v19 = vadd.f32 %v4934_v56, %v2212_v18  ;;  %5308 = vmatpush3.msra.mxu0 %v2268_v6  ;;  %v2365_v56 = vadd.f32 %v86_v55, %v80_v54 }
0x1251   :  { %5309 = vmatprep.subr.mxu0 %v2267_v25 }
0x1252   :  { %v2227_v21 = vsel %vm101_vm0, %v2221_v19, 0.0  ;;  %5310 = vmatpush3.msra.mxu0 %v2267_v25 }
0x1253   :  { %2228 = vadd.xlane.f32.xlu1 %v2227_v21  ;;  %2371 = vrot.lane.b32.xlu0 %v2267_v25, %s5661_s7 }
0x1257   :  { %2238 = vadd.xlane.f32.xlu1 %v2237_v23 }
0x12c1   :  { %v2374_v50 = vpop.permute.xlu0 %2373 }
0x12c5   :  { %v2372_v29 = vpop.permute.xlu0 %2371 }
0x12dc   :  { %v2229_v26 = vpop.xlane.xlu1 %2228 }
0x12dd   :  { %v2232_v27 = vmul.f32 0.03125, %v2229_v26 }
0x12df   :  { %v2234_v28 = vsub.f32 %v2221_v19, %v2232_v27 }
0x12e0   :  { %v2239_v30 = vpop.xlane.xlu1 %2238 }
0x12e1   :  { %v2243_v31 = vmul.f32 0.03125, %v2239_v30  ;;  %v2236_v34 = vmul.f32 %v2234_v28, %v2234_v28 }
0x12e3   :  { %v2245_v33 = vadd.f32 1e-05, %v2243_v31  ;;  %v2240_v20 = vsel %vm101_vm0, %v2236_v34, 0.0 }
0x12e4   :  { %2241 = vadd.xlane.f32.xlu1 %v2240_v20 }
0x12e5   :  { %5570 = vrsqrt.f32 %v2245_v33 }
0x12f2   :  { %v5571_v36 = vpop.eup %5570 }
0x12f3   :  { %v2249_v38 = vmul.f32 %v5571_v36, %v2233_v17 }
0x12f5   :  { %v2257_v41 = vmul.f32 %v4935_v37, %v2249_v38  ;;  %2377 = vrot.lane.b32.xlu1 %v2270_v53, %s5661_s7 }
0x12f7   :  { %v6110_v42 = vadd.f32 %v4936_v40, %v2257_v41 }
0x12f9   :  { %v2272_v1 = vadd.f32 %v6110_v42, %v5814_v4  ;;  %2487 = vrot.lane.b32.xlu1 %v2269_v24, %s5660_s2  ;;  %v6127_v4 = vld [vmem:[%s6586_s9] ss:$0 sm:$0xff] }
0x12fa   :  { %2383 = vrot.lane.b32.xlu0 %v6127_v4, %s5661_s7 }
0x12fb   :  { %5311 = vmatprep.mubr.msk.f32.mxu0 %vm101_vm0, %v2272_v1 }
0x12fd   :  { %2483 = vrot.lane.b32.xlu1 %v2267_v25, %s5660_s2 }
0x12fe   :  { %2489 = vrot.lane.b32.xlu0 %v2270_v53, %s5660_s2 }
0x1302   :  { %2485 = vrot.lane.b32.xlu0 %v2268_v6, %s5660_s2 }
0x136c   :  { %v6163_v0 = vpop.permute.xlu0 %2383 }
0x136d   :  { %v2242_v46 = vpop.xlane.xlu1 %2241 }
0x136e   :  { %v2244_v47 = vmul.f32 0.03125, %v2242_v46 }
0x1370   :  { %v2246_v51 = vadd.f32 1e-05, %v2244_v47  ;;  %v2490_v2 = vpop.permute.xlu0 %2489 }
0x1371   :  { %v2378_v49 = vpop.permute.xlu1 %2377  ;;  %5328 = vmatprep.subr.mxu0 %v2490_v2 }
0x1372   :  { %5572 = vrsqrt.f32 %v2246_v51  ;;  %5314 = vmatprep.subr.mxu1 %v2378_v49  ;;  %v6250_v51 = vld [vmem:[%s6587_s10 + $0x8] sm:$0xff] }
0x1373   :  { %5315 = vmatpush3.msra.mxu1 %v2378_v49 }
0x1374   :  { %5316 = vmatprep.subr.mxu1 %v2376_v45  ;;  %v2486_v5 = vpop.permute.xlu0 %2485 }
0x1375   :  { %5317 = vmatpush3.msra.mxu1 %v2376_v45  ;;  %v2488_v3 = vpop.permute.xlu1 %2487 }
0x1376   :  { %5318 = vmatprep.subr.mxu1 %v2374_v50 }
0x1377   :  { %5319 = vmatpush3.msra.mxu1 %v2374_v50 }
0x1378   :  { %5320 = vmatprep.subr.mxu1 %v2372_v29 }
0x1379   :  { %5321 = vmatpush3.msra.mxu1 %v2372_v29  ;;  %v2484_v8 = vpop.permute.xlu1 %2483  ;;  %v6261_v29 = vld [vmem:[%s6587_s10] sm:$0xff] }
0x137a   :  { %5323 = vmatmul.mubr.msk.f32.vlgmr.msra.gmra.mxu1 %vm101_vm0, %v2364_v32  ;;  %5342 = vmatprep.subr.mxu1 %v5658_v10 }
0x137b   :  { %5325 = vmatprep.mubr.msk.f32.mxu1 %vm101_vm0, %v2365_v56 }
0x137e   :  { %5326 = vmatmul.mubr.msk.f32.gmra.mxu1 %vm101_vm0, %v2366_v59 }
0x137f   :  { %v5573_v48 = vpop.eup %5572  ;;  %5346 = vmatprep.mubr.msk.f32.mxu1 %vm5659_vm1, %v5658_v10 }
0x1380   :  { %v2250_v60 = vmul.f32 %v5573_v48, %v2234_v28 }
0x1382   :  { %v2258_v61 = vmul.f32 %v4935_v37, %v2250_v60 }
0x1384   :  { %v6157_v62 = vadd.f32 %v4936_v40, %v2258_v61 }
0x1386   :  { %v2273_v63 = vadd.f32 %v6157_v62, %v5826_v7 }
0x1388   :  { %5312 = vmatmul.mubr.msk.f32.vlgmr.msra.gmra.mxu0 %vm101_vm0, %v2273_v63 }
0x1389   :  { %5336 = vmatprep.mubr.msk.f32.mxu0 %vm101_vm0, %v78_v43  ;;  %5329 = vmatpush3.msra.mxu0 %v2490_v2 }
0x138a   :  { %5330 = vmatprep.subr.mxu0 %v2488_v3 }
0x138b   :  { %5331 = vmatpush3.msra.mxu0 %v2488_v3 }
0x138c   :  { %5332 = vmatprep.subr.mxu0 %v2486_v5 }
0x138d   :  { %5333 = vmatpush3.msra.mxu0 %v2486_v5 }
0x138e   :  { %5334 = vmatprep.subr.mxu0 %v2484_v8 }
0x138f   :  { %5335 = vmatpush3.msra.mxu0 %v2484_v8 }
0x1390   :  { %5356 = vmatprep.subr.mxu0 %v5658_v10  ;;  %5337 = vmatmul.mubr.msk.f32.vlgmr.msra.gmra.mxu0 %vm101_vm0, %v79_v52 }
0x1391   :  { %5339 = vmatprep.mubr.msk.f32.mxu0 %vm101_vm0, %v80_v54 }
0x1394   :  { %5340 = vmatmul.mubr.msk.f32.gmra.mxu0 %vm101_vm0, %v81_v57 }
0x1395   :  { %5360 = vmatprep.mubr.msk.f32.mxu0 %vm5659_vm1, %v5658_v10 }
0x143a   :  { %v5324_v7 = vpop.f32.mrf.mxu1 }
0x143b   :  { %v6172_v9 = vadd.f32 %v5324_v7, %v6163_v0 }
0x143c   :  { %v2464_v13 = vpop.f32.mrf.mxu1 }
0x143d   :  { %v6175_v14 = vadd.f32 %v2464_v13, %v6163_v0  ;;  %2768 = vrot.lane.b32.xlu0 %v6172_v9, %s5663_s3  ;;  %5343 = vmatpush3.xpose.msk.msra.mxu1 %vm292_vm2, %v6172_v9 }
0x143e   :  { %5344 = vmatprep.subr.mxu1 %v5658_v10  ;;  %v6201_v21 = vpop.f32.mrf.mxu1 }
0x143f   :  { %2766 = vrot.lane.b32.xlu1 %v6175_v14, %s5663_s3  ;;  %v6288_v2 = vadd.f32 %v6201_v21, %v6163_v0 }
0x1440   :  { %v6203_v22 = vpop.f32.mrf.mxu1 }
0x1441   :  { %5345 = vmatpush3.xpose.msk.msra.mxu1 %vm292_vm2, %v6175_v14  ;;  %v6300_v8 = vadd.f32 %v6203_v22, %v6163_v0 }
0x1442   :  { %5349 = vmatprep.subr.mxu1 %v5658_v10 }
0x1448   :  { %v6187_v15 = vpop.f32.mrf.mxu0 }
0x1449   :  { %v2358_v5 = vadd.f32 %v6187_v15, %v6127_v4 }
0x144a   :  { %v2352_v11 = vpop.f32.mrf.mxu0 }
0x144b   :  { %v2353_v12 = vadd.f32 %v6127_v4, %v2352_v11  ;;  %v6304_v7 = vmul.f32 0.35355338, %v2358_v5 }
0x144d   :  { %v2361_v16 = vmul.f32 0.35355338, %v2353_v12 }
0x144f   :  { %2764 = vrot.lane.b32.xlu0 %v2361_v16, %s5663_s3  ;;  %5347 = vmatmul.mubr.msk.f32.vlgmr.msra.gmra.mxu1 %vm292_vm2, %v2361_v16 }
0x1450   :  { %5353 = vmatprep.mubr.msk.f32.mxu1 %vm5659_vm1, %v5658_v10  ;;  %v5338_v6 = vpop.f32.mrf.mxu0 }
0x1452   :  { %v2576_v25 = vpop.f32.mrf.mxu0 }
0x1454   :  { %v6206_v26 = vpop.f32.mrf.mxu0 }
0x1456   :  { %v6208_v27 = vpop.f32.mrf.mxu0 }
0x14af   :  { %v2769_v17 = vpop.permute.xlu0 %2768 }
0x14b0   :  { %5357 = vmatpush3.xpose.msk.msra.mxu0 %vm292_vm2, %v2769_v17 }
0x14b1   :  { %5358 = vmatprep.subr.mxu0 %v5658_v10  ;;  %v2767_v18 = vpop.permute.xlu1 %2766 }
0x14b4   :  { %5359 = vmatpush3.xpose.msk.msra.mxu0 %vm292_vm2, %v2767_v18 }
0x14b5   :  { %5370 = vmatprep.subr.mxu0 %v5658_v10 }
0x14c1   :  { %v2765_v19 = vpop.permute.xlu0 %2764 }
0x14c2   :  { %5361 = vmatmul.mubr.msk.f32.vlgmr.msra.gmra.mxu0 %vm292_vm2, %v2765_v19 }
0x14c3   :  { %5372 = vmatprep.mubr.msk.f32.mxu0 %vm5659_vm1, %v5658_v10  ;;  %5371 = vmatpush3.msra.mxu0 %v6250_v51 }
0x14c4   :  { %5380 = vmatprep.subr.mxu0 %v5658_v10 }
0x150f   :  { %v2674_v23 = vpop.f32.mrf.mxu1 }
0x1510   :  { %v2679_v24 = vsel %vm2678_vm3, %v2674_v23, -inf }
0x1511   :  { %2680 = vmax.xlane.f32.xlu1 %v2679_v24  ;;  %v5348_v53 = vpop.f32.mrf.mxu1 }
0x1582   :  { %v2842_v28 = vpop.f32.mrf.mxu0 }
0x1583   :  { %v2846_v30 = vsel %vm2678_vm3, %v2842_v28, -inf }
0x1584   :  { %2847 = vmax.xlane.f32.xlu0 %v2846_v30  ;;  %v5362_v31 = vpop.f32.mrf.mxu0 }
0x159a   :  { %v2681_v34 = vpop.xlane.xlu1 %2680  ;;  %2495 = vrot.lane.b32.xlu0 %v6127_v4, %s5660_s2 }
0x159b   :  { %v2682_v33 = vsub.f32 %v2674_v23, %v2681_v34 }
0x159d   :  { %v2683_v20 = vmul.f32 1.442695, %v2682_v33 }
0x159f   :  { %5574 = vpow2.f32 %v2683_v20 }
0x15ac   :  { %v5575_v36 = vpop.eup %5574 }
0x15ad   :  { %v2685_v37 = vsel %vm2678_vm3, %v5575_v36, 0.0 }
0x15ae   :  { %2686 = vadd.xlane.f32.xlu1 %v2685_v37 }
0x160d   :  { %v2848_v38 = vpop.xlane.xlu0 %2847 }
0x160e   :  { %v2849_v40 = vsub.f32 %v2842_v28, %v2848_v38 }
0x1610   :  { %v2850_v41 = vmul.f32 1.442695, %v2849_v40 }
0x1611   :  { %v6214_v1 = vpop.permute.xlu0 %2495 }
0x1612   :  { %5576 = vpow2.f32 %v2850_v41  ;;  %v6217_v43 = vadd.f32 %v2576_v25, %v6214_v1  ;;  %v6220_v35 = vadd.f32 %v5338_v6, %v6214_v1  ;;  %v6369_v5 = vadd.f32 %v6206_v26, %v6214_v1 }
0x1614   :  { %2860 = vrot.lane.b32.xlu0 %v6217_v43, %s5663_s3  ;;  %5350 = vmatpush3.msra.mxu1 %v6220_v35 }
0x1615   :  { %5351 = vmatprep.subr.mxu1 %v5658_v10 }
0x1616   :  { %5352 = vmatpush3.msra.mxu1 %v6217_v43 }
0x1617   :  { %5363 = vmatprep.subr.mxu1 %v5658_v10 }
0x1618   :  { %3089 = vrot.lane.b32.xlu0 %v6172_v9, %s5664_s25 }
0x161c   :  { %3085 = vrot.lane.b32.xlu0 %v2361_v16, %s5664_s25 }
0x161f   :  { %v5577_v44 = vpop.eup %5576 }
0x1620   :  { %3334 = vrot.lane.b32.xlu0 %v6175_v14, %s5667_s27  ;;  %v2852_v45 = vsel %vm2678_vm3, %v5577_v44, 0.0 }
0x1621   :  { %2853 = vadd.xlane.f32.xlu1 %v2852_v45 }
0x1632   :  { %2862 = vrot.lane.b32.xlu1 %v6220_v35, %s5663_s3 }
0x1636   :  { %3087 = vrot.lane.b32.xlu1 %v6175_v14, %s5664_s25 }
0x1637   :  { %v2687_v46 = vpop.xlane.xlu1 %2686 }
0x1638   :  { %5578 = vrcp.f32 %v2687_v46  ;;  %v6340_v46 = vld [vmem:[%s6587_s10 + $0x10] sm:$0xff] }
0x163a   :  { %3336 = vrot.lane.b32.xlu1 %v6172_v9, %s5667_s27 }
0x163e   :  { %3332 = vrot.lane.b32.xlu1 %v2361_v16, %s5667_s27 }
0x1645   :  { %v5579_v47 = vpop.eup %5578 }
0x1646   :  { %v6241_v50 = vmul.f32 %v5579_v47, %v5575_v36 }
0x1648   :  { %5354 = vmatmul.mubr.msk.f32.vlgmr.msra.gmra.mxu1 %vm2678_vm3, %v6241_v50 }
0x1649   :  { %5367 = vmatprep.mubr.msk.f32.mxu1 %vm5659_vm1, %v5658_v10 }
0x1686   :  { %v2861_v39 = vpop.permute.xlu0 %2860 }
0x168a   :  { %v3090_v58 = vpop.permute.xlu0 %3089 }
0x168e   :  { %v3086_v60 = vpop.permute.xlu0 %3085 }
0x1692   :  { %v3335_v63 = vpop.permute.xlu0 %3334 }
0x16aa   :  { %v2854_v49 = vpop.xlane.xlu1 %2853 }
0x16ab   :  { %5580 = vrcp.f32 %v2854_v49 }
0x16ae   :  { %v2863_v52 = vpop.permute.xlu1 %2862 }
0x16af   :  { %5364 = vmatpush3.msra.mxu1 %v2863_v52 }
0x16b0   :  { %5365 = vmatprep.subr.mxu1 %v5658_v10 }
0x16b1   :  { %5366 = vmatpush3.msra.mxu1 %v2861_v39 }
0x16b2   :  { %5375 = vmatprep.subr.mxu1 %v5658_v10  ;;  %v3088_v48 = vpop.permute.xlu1 %3087 }
0x16b6   :  { %v3337_v61 = vpop.permute.xlu1 %3336 }
0x16b8   :  { %v5581_v54 = vpop.eup %5580 }
0x16b9   :  { %v6256_v55 = vmul.f32 %v5581_v54, %v5577_v44 }
0x16ba   :  { %v3333_v3 = vpop.permute.xlu1 %3332 }
0x16bb   :  { %5368 = vmatmul.mubr.msk.f32.vlgmr.msra.gmra.mxu1 %vm2678_vm3, %v6256_v55  ;;  %v2857_v49 = vadd.f32 %v6256_v55, %v6241_v50  ;;  %v6361_v50 = vld [vmem:[%s6587_s10 + $0x18] sm:$0xff] }
0x16bc   :  { %5376 = vmatpush3.msra.mxu1 %v6261_v29  ;;  %5377 = vmatprep.mubr.msk.f32.mxu1 %vm5659_vm1, %v5658_v10 }
0x16bd   :  { %5387 = vmatprep.subr.mxu1 %v5658_v10 }
0x1708   :  { %v2760_v32 = vpop.f32.mrf.mxu1 }
0x1709   :  { %5378 = vmatmul.mubr.msk.f32.vlgmr.msra.gmra.mxu1 %vm292_vm2, %v2760_v32 }
0x170a   :  { %v5355_v56 = vpop.f32.mrf.mxu1  ;;  %5391 = vmatprep.mubr.msk.f32.mxu1 %vm5659_vm1, %v5658_v10 }
0x177b   :  { %v2935_v57 = vpop.f32.mrf.mxu1 }
0x177c   :  { %5373 = vmatmul.mubr.msk.f32.vlgmr.msra.gmra.mxu0 %vm292_vm2, %v2935_v57 }
0x177d   :  { %5381 = vmatpush3.xpose.msk.msra.mxu0 %vm292_vm2, %v3090_v58  ;;  %v5369_v59 = vpop.f32.mrf.mxu1  ;;  %5384 = vmatprep.mubr.msk.f32.mxu0 %vm5659_vm1, %v5658_v10 }
0x177e   :  { %5382 = vmatprep.subr.mxu0 %v5658_v10 }
0x1781   :  { %5383 = vmatpush3.xpose.msk.msra.mxu0 %vm292_vm2, %v3088_v48 }
0x1782   :  { %5399 = vmatprep.subr.mxu0 %v5658_v10 }
0x1784   :  { %5385 = vmatmul.mubr.msk.f32.vlgmr.msra.gmra.mxu0 %vm292_vm2, %v3086_v60 }
0x1785   :  { %5400 = vmatpush3.xpose.msk.msra.mxu0 %vm292_vm2, %v3337_v61  ;;  %5403 = vmatprep.mubr.msk.f32.mxu0 %vm5659_vm1, %v5658_v10 }
0x1786   :  { %5401 = vmatprep.subr.mxu0 %v5658_v10 }
0x1789   :  { %5402 = vmatpush3.xpose.msk.msra.mxu0 %vm292_vm2, %v3335_v63 }
0x178a   :  { %5418 = vmatprep.subr.mxu0 %v5658_v10 }
0x178c   :  { %5404 = vmatmul.mubr.msk.f32.vlgmr.msra.gmra.mxu0 %vm292_vm2, %v3333_v3 }
0x178d   :  { %5419 = vmatpush3.xpose.msk.msra.mxu0 %vm292_vm2, %v6288_v2  ;;  %5422 = vmatprep.mubr.msk.f32.mxu0 %vm5659_vm1, %v5658_v10 }
0x178e   :  { %5420 = vmatprep.subr.mxu0 %v5658_v10 }
0x1791   :  { %5421 = vmatpush3.xpose.msk.msra.mxu0 %vm292_vm2, %v6300_v8 }
0x1792   :  { %5439 = vmatprep.subr.mxu0 %v5658_v10 }
0x1794   :  { %5423 = vmatmul.mubr.msk.f32.vlgmr.msra.gmra.mxu0 %vm292_vm2, %v6304_v7 }
0x1795   :  { %5443 = vmatprep.mubr.msk.f32.mxu0 %vm5659_vm1, %v5658_v10 }
0x17c9   :  { %v6311_v4 = vpop.f32.mrf.mxu1 }
0x17cb   :  { %v5379_v9 = vpop.f32.mrf.mxu1 }
0x183c   :  { %v6313_v13 = vpop.f32.mrf.mxu0 }
0x183d   :  { %v3082_v48 = vadd.f32 %v6311_v4, %v6313_v13 }
0x183e   :  { %v5374_v0 = vpop.f32.mrf.mxu0 }
0x183f   :  { %v6374_v0 = vadd.f32 %v6208_v27, %v6214_v1 }
0x1844   :  { %v3163_v14 = vpop.f32.mrf.mxu0 }
0x1845   :  { %v3167_v15 = vsel %vm2678_vm3, %v3163_v14, -inf }
0x1846   :  { %3168 = vmax.xlane.f32.xlu0 %v3167_v15  ;;  %v5386_v11 = vpop.f32.mrf.mxu0 }
0x184c   :  { %v3410_v12 = vpop.f32.mrf.mxu0 }
0x184d   :  { %v3414_v19 = vsel %vm2678_vm3, %v3410_v12, -inf }
0x184e   :  { %v5405_v16 = vpop.f32.mrf.mxu0 }
0x1854   :  { %v3657_v17 = vpop.f32.mrf.mxu0 }
0x1855   :  { %v3661_v21 = vsel %vm2678_vm3, %v3657_v17, -inf }
0x1856   :  { %v5424_v18 = vpop.f32.mrf.mxu0 }
0x185c   :  { %3181 = vrot.lane.b32.xlu0 %v6220_v35, %s5664_s25 }
0x187b   :  { %3415 = vmax.xlane.f32.xlu0 %v3414_v19 }
0x1891   :  { %3428 = vrot.lane.b32.xlu0 %v6220_v35, %s5667_s27 }
0x18b0   :  { %3662 = vmax.xlane.f32.xlu0 %v3661_v21 }
0x18c6   :  { %3750 = vrot.lane.b32.xlu0 %v6288_v2, %s5663_s3 }
0x18ca   :  { %3746 = vrot.lane.b32.xlu0 %v6304_v7, %s5663_s3 }
0x18cf   :  { %v3169_v22 = vpop.xlane.xlu0 %3168 }
0x18d0   :  { %v3170_v23 = vsub.f32 %v3163_v14, %v3169_v22 }
0x18d2   :  { %v3171_v24 = vmul.f32 1.442695, %v3170_v23 }
0x18d3   :  { %v3182_v53 = vpop.permute.xlu0 %3181 }
0x18d4   :  { %5582 = vpow2.f32 %v3171_v24  ;;  %5388 = vmatpush3.msra.mxu1 %v3182_v53 }
0x18d5   :  { %5389 = vmatprep.subr.mxu1 %v5658_v10 }
0x18e1   :  { %v5583_v6 = vpop.eup %5582 }
0x18e2   :  { %v3173_v25 = vsel %vm2678_vm3, %v5583_v6, 0.0 }
0x18e3   :  { %3174 = vadd.xlane.f32.xlu1 %v3173_v25 }
0x18f4   :  { %3179 = vrot.lane.b32.xlu1 %v6217_v43, %s5664_s25 }
0x1904   :  { %v3416_v28 = vpop.xlane.xlu0 %3415 }
0x1905   :  { %v3417_v30 = vsub.f32 %v3410_v12, %v3416_v28 }
0x1907   :  { %v3418_v31 = vmul.f32 1.442695, %v3417_v30 }
0x1908   :  { %v3429_v20 = vpop.permute.xlu0 %3428 }
0x1909   :  { %5584 = vpow2.f32 %v3418_v31 }
0x1916   :  { %v5585_v34 = vpop.eup %5584 }
0x1917   :  { %v3420_v33 = vsel %vm2678_vm3, %v5585_v34, 0.0 }
0x1918   :  { %3421 = vadd.xlane.f32.xlu1 %v3420_v33 }
0x1929   :  { %3426 = vrot.lane.b32.xlu1 %v6217_v43, %s5667_s27 }
0x1939   :  { %v3663_v36 = vpop.xlane.xlu0 %3662 }
0x193a   :  { %v3664_v37 = vsub.f32 %v3657_v17, %v3663_v36 }
0x193c   :  { %v3665_v38 = vmul.f32 1.442695, %v3664_v37 }
0x193d   :  { %v3751_v26 = vpop.permute.xlu0 %3750 }
0x193e   :  { %5586 = vpow2.f32 %v3665_v38 }
0x1941   :  { %v3747_v1 = vpop.permute.xlu0 %3746 }
0x194b   :  { %v5587_v40 = vpop.eup %5586 }
0x194c   :  { %v3667_v41 = vsel %vm2678_vm3, %v5587_v40, 0.0 }
0x194d   :  { %3668 = vadd.xlane.f32.xlu1 %v3667_v41 }
0x195e   :  { %3748 = vrot.lane.b32.xlu1 %v6300_v8, %s5663_s3 }
0x196c   :  { %v3175_v35 = vpop.xlane.xlu1 %3174 }
0x196d   :  { %5588 = vrcp.f32 %v3175_v35 }
0x1970   :  { %v3180_v44 = vpop.permute.xlu1 %3179 }
0x1971   :  { %5390 = vmatpush3.msra.mxu1 %v3180_v44 }
0x1972   :  { %5394 = vmatprep.subr.mxu1 %v5658_v10 }
0x197a   :  { %v5589_v45 = vpop.eup %5588 }
0x197b   :  { %v3177_v43 = vmul.f32 %v5589_v45, %v5583_v6 }
0x197d   :  { %5392 = vmatmul.mubr.msk.f32.vlgmr.msra.gmra.mxu1 %vm2678_vm3, %v3177_v43  ;;  %v3178_v54 = vadd.f32 %v3177_v43, %v2857_v49 }
0x197e   :  { %5395 = vmatpush3.msra.mxu1 %v6340_v46  ;;  %5396 = vmatprep.mubr.msk.f32.mxu1 %vm5659_vm1, %v5658_v10 }
0x197f   :  { %5406 = vmatprep.subr.mxu1 %v5658_v10 }
0x19a1   :  { %v3422_v47 = vpop.xlane.xlu1 %3421 }
0x19a2   :  { %5590 = vrcp.f32 %v3422_v47 }
0x19a5   :  { %v3427_v59 = vpop.permute.xlu1 %3426 }
0x19af   :  { %v5591_v52 = vpop.eup %5590 }
0x19b0   :  { %v3424_v39 = vmul.f32 %v5591_v52, %v5585_v34 }
0x19b2   :  { %v3425_v32 = vadd.f32 %v3424_v39, %v3178_v54 }
0x19b4   :  { %v3580_v56 = vmul.f32 0.25, %v3425_v32 }
0x19b6   :  { %3581 = vst.msk [vmem:[#allocation5] sm:$0xff] %vm2678_vm3, %v3580_v56 }
0x19d6   :  { %v3669_v55 = vpop.xlane.xlu1 %3668 }
0x19d7   :  { %5592 = vrcp.f32 %v3669_v55 }
0x19da   :  { %v3749_v27 = vpop.permute.xlu1 %3748 }
0x19e4   :  { %v5593_v3 = vpop.eup %5592 }
0x19e5   :  { %v6380_v4 = vmul.f32 %v5593_v3, %v5587_v40 }
0x1a3d   :  { %v3254_v57 = vpop.f32.mrf.mxu1 }
0x1a3e   :  { %5397 = vmatmul.mubr.msk.f32.vlgmr.msra.gmra.mxu1 %vm292_vm2, %v3254_v57 }
0x1a3f   :  { %5407 = vmatpush3.msra.mxu1 %v3429_v20  ;;  %v5393_v58 = vpop.f32.mrf.mxu1  ;;  %5410 = vmatprep.mubr.msk.f32.mxu1 %vm5659_vm1, %v5658_v10 }
0x1a40   :  { %5408 = vmatprep.subr.mxu1 %v5658_v10 }
0x1a41   :  { %5409 = vmatpush3.msra.mxu1 %v3427_v59 }
0x1a42   :  { %5411 = vmatmul.mubr.msk.f32.vlgmr.msra.gmra.mxu1 %vm2678_vm3, %v3424_v39  ;;  %5413 = vmatprep.subr.mxu1 %v5658_v10  ;;  %v6457_v39 = vld [vmem:[%s6588_s11] ss:$0 sm:$0xff] }
0x1a43   :  { %5415 = vmatprep.mubr.msk.f32.mxu1 %vm5659_vm1, %v5658_v10  ;;  %5414 = vmatpush3.msra.mxu1 %v6361_v50 }
0x1a44   :  { %5425 = vmatprep.subr.mxu1 %v5658_v10 }
0x1afe   :  { %v3327_v60 = vpop.f32.mrf.mxu1 }
0x1aff   :  { %v3331_v61 = vadd.f32 %v3327_v60, %v3082_v48 }
0x1b00   :  { %v5398_v63 = vpop.f32.mrf.mxu1 }
0x1b02   :  { %v3501_v9 = vpop.f32.mrf.mxu1 }
0x1b03   :  { %5416 = vmatmul.mubr.msk.f32.vlgmr.msra.gmra.mxu1 %vm292_vm2, %v3501_v9 }
0x1b04   :  { %5426 = vmatpush3.msra.mxu1 %v6369_v5  ;;  %v5412_v14 = vpop.f32.mrf.mxu1  ;;  %5429 = vmatprep.mubr.msk.f32.mxu1 %vm5659_vm1, %v5658_v10 }
0x1b05   :  { %5427 = vmatprep.subr.mxu1 %v5658_v10 }
0x1b06   :  { %5428 = vmatpush3.msra.mxu1 %v6374_v0 }
0x1b07   :  { %5432 = vmatprep.subr.mxu1 %v5658_v10  ;;  %5430 = vmatmul.mubr.msk.f32.vlgmr.msra.gmra.mxu1 %vm2678_vm3, %v6380_v4 }
0x1b08   :  { %5433 = vmatpush3.xpose.msk.msra.mxu1 %vm292_vm2, %v3751_v26  ;;  %5436 = vmatprep.mubr.msk.f32.mxu1 %vm5659_vm1, %v5658_v10 }
0x1b09   :  { %5434 = vmatprep.subr.mxu1 %v5658_v10 }
0x1b0c   :  { %5435 = vmatpush3.xpose.msk.msra.mxu1 %vm292_vm2, %v3749_v27 }
0x1b0d   :  { %5451 = vmatprep.subr.mxu1 %v5658_v10 }
0x1b0f   :  { %5437 = vmatmul.mubr.msk.f32.vlgmr.msra.gmra.mxu1 %vm292_vm2, %v3747_v1 }
0x1b10   :  { %5452 = vmatpush3.msra.mxu1 %v6261_v29  ;;  %5453 = vmatprep.mubr.msk.f32.mxu1 %vm5659_vm1, %v5658_v10 }
0x1b11   :  { %5463 = vmatprep.subr.mxu1 %v5658_v10 }
0x1bc3   :  { %v3574_v13 = vpop.f32.mrf.mxu1 }
0x1bc4   :  { %v3578_v15 = vadd.f32 %v3574_v13, %v3331_v61 }
0x1bc5   :  { %v5417_v11 = vpop.f32.mrf.mxu1 }
0x1bc6   :  { %3579 = vst.msk [vmem:[#allocation2] sm:$0xff] %vm101_vm0, %v3578_v15 }
0x1bc7   :  { %v3742_v12 = vpop.f32.mrf.mxu1 }
0x1bc8   :  { %5454 = vmatmul.mubr.msk.f32.vlgmr.msra.gmra.mxu1 %vm292_vm2, %v3742_v12 }
0x1bc9   :  { %v5431_v16 = vpop.f32.mrf.mxu1  ;;  %5467 = vmatprep.mubr.msk.f32.mxu1 %vm5659_vm1, %v5658_v10 }
0x1bcd   :  { %v4565_v49 = vld [vmem:[#allocation2] sm:$0xff] }
0x1bce   :  { %v4567_v52 = vadd.f32 %v4565_v49, %v6110_v42  ;;  %v4624_v49 = vld [vmem:[%s6595_s18 + $0x10] sm:$0xff] }
0x1bcf   :  { %v3824_v17 = vpop.f32.mrf.mxu1 }
0x1bd0   :  { %v3828_v29 = vsel %vm2678_vm3, %v3824_v17, -inf  ;;  %v6460_v54 = vadd.f32 %v6457_v39, %v4567_v52  ;;  %v4623_v52 = vld [vmem:[%s6595_s18 + $0x8] sm:$0xff] }
0x1bd1   :  { %3829 = vmax.xlane.f32.xlu1 %v3828_v29  ;;  %v5438_v18 = vpop.f32.mrf.mxu1 }
0x1bd2   :  { %v4580_v32 = vsel %vm101_vm0, %v6460_v54, 0.0 }
0x1be2   :  { %3842 = vrot.lane.b32.xlu1 %v6374_v0, %s5663_s3 }
0x1be6   :  { %4071 = vrot.lane.b32.xlu1 %v6288_v2, %s5664_s25 }
0x1bea   :  { %4067 = vrot.lane.b32.xlu1 %v6304_v7, %s5664_s25 }
0x1bee   :  { %4316 = vrot.lane.b32.xlu1 %v6300_v8, %s5667_s27 }
0x1c5a   :  { %v3830_v19 = vpop.xlane.xlu1 %3829 }
0x1c5b   :  { %v3831_v21 = vsub.f32 %v3824_v17, %v3830_v19 }
0x1c5d   :  { %v3832_v22 = vmul.f32 1.442695, %v3831_v21 }
0x1c5e   :  { %v3843_v30 = vpop.permute.xlu1 %3842 }
0x1c5f   :  { %5594 = vpow2.f32 %v3832_v22 }
0x1c6c   :  { %v5595_v23 = vpop.eup %5594 }
0x1c6d   :  { %v3834_v24 = vsel %vm2678_vm3, %v5595_v23, 0.0 }
0x1c6e   :  { %3835 = vadd.xlane.f32.xlu0 %v3834_v24 }
0x1c84   :  { %3844 = vrot.lane.b32.xlu0 %v6369_v5, %s5663_s3 }
0x1c88   :  { %4069 = vrot.lane.b32.xlu0 %v6300_v8, %s5664_s25  ;;  %v6415_v53 = vpop.f32.mrf.mxu1 }
0x1c8a   :  { %v5455_v6 = vpop.f32.mrf.mxu1 }
0x1c8c   :  { %4318 = vrot.lane.b32.xlu0 %v6288_v2, %s5667_s27 }
0x1c90   :  { %4314 = vrot.lane.b32.xlu0 %v6304_v7, %s5667_s27  ;;  %v4072_v7 = vpop.permute.xlu1 %4071 }
0x1cf7   :  { %v3836_v25 = vpop.xlane.xlu0 %3835 }
0x1cf8   :  { %5596 = vrcp.f32 %v3836_v25 }
0x1cfb   :  { %v3845_v28 = vpop.permute.xlu0 %3844 }
0x1cfc   :  { %5440 = vmatpush3.msra.mxu0 %v3845_v28 }
0x1cfd   :  { %5441 = vmatprep.subr.mxu0 %v5658_v10 }
0x1cfe   :  { %5442 = vmatpush3.msra.mxu0 %v3843_v30 }
0x1cff   :  { %5446 = vmatprep.subr.mxu0 %v5658_v10  ;;  %v4070_v33 = vpop.permute.xlu0 %4069 }
0x1d03   :  { %v4319_v20 = vpop.permute.xlu0 %4318 }
0x1d05   :  { %v5597_v8 = vpop.eup %5596 }
0x1d06   :  { %v6423_v31 = vmul.f32 %v5597_v8, %v5595_v23 }
0x1d07   :  { %v4315_v37 = vpop.permute.xlu0 %4314 }
0x1d08   :  { %5444 = vmatmul.mubr.msk.f32.vlgmr.msra.gmra.mxu0 %vm2678_vm3, %v6423_v31  ;;  %v3839_v27 = vadd.f32 %v6423_v31, %v6380_v4 }
0x1d09   :  { %5447 = vmatpush3.msra.mxu0 %v6250_v51  ;;  %5448 = vmatprep.mubr.msk.f32.mxu0 %vm5659_vm1, %v5658_v10  ;;  %v4068_v51 = vpop.permute.xlu1 %4067 }
0x1d0a   :  { %5456 = vmatprep.subr.mxu0 %v5658_v10 }
0x1d0d   :  { %v4317_v36 = vpop.permute.xlu1 %4316 }
0x1dc8   :  { %v3917_v2 = vpop.f32.mrf.mxu0 }
0x1dc9   :  { %5449 = vmatmul.mubr.msk.f32.vlgmr.msra.gmra.mxu0 %vm292_vm2, %v3917_v2 }
0x1dca   :  { %5457 = vmatpush3.xpose.msk.msra.mxu0 %vm292_vm2, %v4072_v7  ;;  %v5445_v34 = vpop.f32.mrf.mxu0  ;;  %5460 = vmatprep.mubr.msk.f32.mxu0 %vm5659_vm1, %v5658_v10 }
0x1dcb   :  { %5458 = vmatprep.subr.mxu0 %v5658_v10 }
0x1dce   :  { %5459 = vmatpush3.xpose.msk.msra.mxu0 %vm292_vm2, %v4070_v33 }
0x1dcf   :  { %5475 = vmatprep.subr.mxu0 %v5658_v10 }
0x1dd1   :  { %5461 = vmatmul.mubr.msk.f32.vlgmr.msra.gmra.mxu0 %vm292_vm2, %v4068_v51 }
0x1dd2   :  { %5476 = vmatpush3.xpose.msk.msra.mxu0 %vm292_vm2, %v4319_v20  ;;  %5479 = vmatprep.mubr.msk.f32.mxu0 %vm5659_vm1, %v5658_v10 }
0x1dd3   :  { %5477 = vmatprep.subr.mxu0 %v5658_v10 }
0x1dd6   :  { %5478 = vmatpush3.xpose.msk.msra.mxu0 %vm292_vm2, %v4317_v36 }
0x1dd9   :  { %5480 = vmatmul.mubr.msk.f32.vlgmr.msra.gmra.mxu0 %vm292_vm2, %v4315_v37 }
0x1e89   :  { %v6445_v38 = vpop.f32.mrf.mxu0 }
0x1e8a   :  { %v4064_v4 = vadd.f32 %v6415_v53, %v6445_v38 }
0x1e8b   :  { %v5450_v40 = vpop.f32.mrf.mxu0 }
0x1e91   :  { %v4145_v41 = vpop.f32.mrf.mxu0 }
0x1e92   :  { %v4149_v35 = vsel %vm2678_vm3, %v4145_v41, -inf }
0x1e93   :  { %4150 = vmax.xlane.f32.xlu1 %v4149_v35  ;;  %v5462_v44 = vpop.f32.mrf.mxu0 }
0x1e94   :  { %v4990_v44 = vld [vmem:[%s6592_s15] ss:$0 sm:$0xff] }
0x1e99   :  { %v4392_v45 = vpop.f32.mrf.mxu0 }
0x1e9a   :  { %v4396_v47 = vsel %vm2678_vm3, %v4392_v45, -inf }
0x1e9b   :  { %v5481_v43 = vpop.f32.mrf.mxu0 }
0x1ea4   :  { %4161 = vrot.lane.b32.xlu1 %v6374_v0, %s5664_s25 }
0x1ec8   :  { %4397 = vmax.xlane.f32.xlu1 %v4396_v47  ;;  %v4625_v47 = vld [vmem:[%s6595_s18 + $0x18] sm:$0xff] }
0x1ec9   :  { %5494 = vmatprep.subr.mxu0 %v4625_v47 }
0x1eca   :  { %5495 = vmatpush3.msra.mxu0 %v4625_v47 }
0x1ecb   :  { %5496 = vmatprep.subr.mxu0 %v4624_v49 }
0x1ecc   :  { %5497 = vmatpush3.msra.mxu0 %v4624_v49 }
0x1ecd   :  { %5498 = vmatprep.subr.mxu0 %v4623_v52 }
0x1ece   :  { %5499 = vmatpush3.msra.mxu0 %v4623_v52 }
0x1ed9   :  { %4408 = vrot.lane.b32.xlu1 %v6374_v0, %s5667_s27 }
0x1efd   :  { %4581 = vadd.xlane.f32.xlu1 %v4580_v32  ;;  %v4722_v32 = vld [vmem:[%s6597_s20 + $0x30] sm:$0xff] }
0x1f1c   :  { %v4151_v56 = vpop.xlane.xlu1 %4150 }
0x1f1d   :  { %v4152_v57 = vsub.f32 %v4145_v41, %v4151_v56  ;;  %v4989_v41 = vld [vmem:[%s6591_s14] ss:$0 sm:$0xff]  ;;  %v4721_v56 = vld [vmem:[%s6597_s20 + $0x28] sm:$0xff] }
0x1f1f   :  { %v4153_v58 = vmul.f32 1.442695, %v4152_v57  ;;  %v4720_v57 = vld [vmem:[%s6597_s20 + $0x20] sm:$0xff] }
0x1f20   :  { %v4162_v42 = vpop.permute.xlu1 %4161 }
0x1f21   :  { %5598 = vpow2.f32 %v4153_v58 }
0x1f2e   :  { %v5599_v59 = vpop.eup %5598 }
0x1f2f   :  { %v4155_v55 = vsel %vm2678_vm3, %v5599_v59, 0.0 }
0x1f30   :  { %4156 = vadd.xlane.f32.xlu0 %v4155_v55 }
0x1f46   :  { %4163 = vrot.lane.b32.xlu0 %v6369_v5, %s5664_s25 }
0x1f51   :  { %v4398_v48 = vpop.xlane.xlu1 %4397 }
0x1f52   :  { %v4399_v60 = vsub.f32 %v4392_v45, %v4398_v48 }
0x1f54   :  { %v4400_v61 = vmul.f32 1.442695, %v4399_v60 }
0x1f55   :  { %v4409_v29 = vpop.permute.xlu1 %4408 }
0x1f56   :  { %5600 = vpow2.f32 %v4400_v61 }
0x1f63   :  { %v5601_v63 = vpop.eup %5600 }
0x1f64   :  { %v4402_v3 = vsel %vm2678_vm3, %v5601_v63, 0.0 }
0x1f65   :  { %4403 = vadd.xlane.f32.xlu0 %v4402_v3  ;;  %v4718_v3 = vld [vmem:[%s6597_s20 + $0x10] sm:$0xff] }
0x1f7b   :  { %4410 = vrot.lane.b32.xlu0 %v6369_v5, %s5667_s27 }
0x1f86   :  { %v4582_v28 = vpop.xlane.xlu1 %4581 }
0x1fb9   :  { %v4157_v9 = vpop.xlane.xlu0 %4156 }
0x1fba   :  { %5602 = vrcp.f32 %v4157_v9  ;;  %v4717_v9 = vld [vmem:[%s6597_s20 + $0x8] sm:$0xff] }
0x1fbd   :  { %v4164_v0 = vpop.permute.xlu0 %4163 }
0x1fbe   :  { %5464 = vmatpush3.msra.mxu1 %v4164_v0  ;;  %v4716_v0 = vld [vmem:[%s6597_s20] sm:$0xff] }
0x1fbf   :  { %5465 = vmatprep.subr.mxu1 %v5658_v10 }
0x1fc0   :  { %5466 = vmatpush3.msra.mxu1 %v4162_v42 }
0x1fc1   :  { %5470 = vmatprep.subr.mxu1 %v5658_v10 }
0x1fc7   :  { %v5603_v14 = vpop.eup %5602 }
0x1fc8   :  { %v4159_v26 = vmul.f32 %v5603_v14, %v5599_v59  ;;  %v4991_v14 = vld [vmem:[%s6596_s19] ss:$0 sm:$0xff]  ;;  %s5668_s19 = smov [#allocation3]  }
0x1fca   :  { %5468 = vmatmul.mubr.msk.f32.vlgmr.msra.gmra.mxu1 %vm2678_vm3, %v4159_v26  ;;  %v4160_v15 = vadd.f32 %v4159_v26, %v3839_v27 }
0x1fcb   :  { %5471 = vmatpush3.msra.mxu1 %v6340_v46  ;;  %5472 = vmatprep.mubr.msk.f32.mxu1 %vm5659_vm1, %v5658_v10 }
0x1fcc   :  { %5482 = vmatprep.subr.mxu1 %v5658_v10 }
0x1fee   :  { %v4404_v5 = vpop.xlane.xlu0 %4403 }
0x1fef   :  { %5604 = vrcp.f32 %v4404_v5 }
0x1ff2   :  { %v4411_v17 = vpop.permute.xlu0 %4410 }
0x1ffc   :  { %v5605_v1 = vpop.eup %5604 }
0x1ffd   :  { %v4406_v13 = vmul.f32 %v5605_v1, %v5601_v63  ;;  %v4719_v63 = vld [vmem:[%s6597_s20 + $0x18] sm:$0xff] }
0x1fff   :  { %v4407_v11 = vadd.f32 %v4406_v13, %v4160_v15 }
0x2001   :  { %v4562_v12 = vmul.f32 0.25, %v4407_v11  ;;  %v4994_v11 = vld [vmem:[%s6598_s21] ss:$0 sm:$0xff]  ;;  %s5669_s21 = smov [#allocation5]  }
0x2002   :  { %s4880_s13 = sshll.u32 %s5669_s21, 4  ;;  %s4881_s13 = int_to_ptr.vmem [resolvable:$true] %s4880_s13 }
0x2003   :  { %4564 = vst.msk [vmem:[#allocation5 + $0x8] sm:$0xff] %vm2678_vm3, %v4562_v12 }
0x208a   :  { %v4236_v16 = vpop.f32.mrf.mxu1 }
0x208b   :  { %5473 = vmatmul.mubr.msk.f32.vlgmr.msra.gmra.mxu1 %vm292_vm2, %v4236_v16 }
0x208c   :  { %5483 = vmatpush3.msra.mxu1 %v4411_v17  ;;  %v5469_v46 = vpop.f32.mrf.mxu1  ;;  %5486 = vmatprep.mubr.msk.f32.mxu1 %vm5659_vm1, %v5658_v10 }
0x208d   :  { %5484 = vmatprep.subr.mxu1 %v5658_v10 }
0x208e   :  { %5485 = vmatpush3.msra.mxu1 %v4409_v29 }
0x208f   :  { %5487 = vmatmul.mubr.msk.f32.vlgmr.msra.gmra.mxu1 %vm2678_vm3, %v4406_v13  ;;  %5489 = vmatprep.subr.mxu1 %v5658_v10 }
0x2090   :  { %5490 = vmatpush3.msra.mxu1 %v6361_v50  ;;  %5491 = vmatprep.mubr.msk.f32.mxu1 %vm5659_vm1, %v5658_v10  ;;  %v4586_v50 = vmul.f32 0.03125, %v4582_v28 }
0x2092   :  { %v4588_v10 = vsub.f32 %v6460_v54, %v4586_v50  ;;  %v4723_v54 = vld [vmem:[%s6597_s20 + $0x38] sm:$0xff]  ;;  %s4868_s20 = sshll.u32 %s5668_s19, 4  ;;  %s4869_s20 = int_to_ptr.vmem [resolvable:$true] %s4868_s20 }
0x2093   :  { %5505 = vmatprep.subr.mxu1 %v4723_v54  ;;  %s5614_s15 = scalar_lea.vmem %s4869_s20, 256  ;;  %p5619_p1 = scmp.lt.s32.totalorder %s4869_s20, %s4869_s20 }
0x2094   :  { %v4590_v2 = vmul.f32 %v4588_v10, %v4588_v10  ;;  %p5615_p0 = scmp.ne.s32.totalorder %s4869_s20, %s5614_s15  ;;  %p5620_p2 = scmp.lt.s32.totalorder %s5614_s15, %s5614_s15 }
0x2096   :  { %v4592_v7 = vsel %vm101_vm0, %v4590_v2, 0.0  ;;  %p5621_p3 = por %p5620_p2, %p5619_p1 }
0x2098   :  { %p5622_p4 = pnand %p5621_p3, %p5615_p0 }
0x214b   :  { %v4309_v18 = vpop.f32.mrf.mxu1 }
0x214c   :  { %v4313_v19 = vadd.f32 %v4309_v18, %v4064_v4 }
0x214d   :  { %v5474_v21 = vpop.f32.mrf.mxu1 }
0x214f   :  { %v4483_v22 = vpop.f32.mrf.mxu1 }
0x2150   :  { %5492 = vmatmul.mubr.msk.f32.vlgmr.msra.gmra.mxu1 %vm292_vm2, %v4483_v22 }
0x2151   :  { %v5488_v23 = vpop.f32.mrf.mxu1  ;;  %5506 = vmatpush3.msra.mxu1 %v4723_v54 }
0x2152   :  { %5507 = vmatprep.subr.mxu1 %v4722_v32 }
0x2153   :  { %5508 = vmatpush3.msra.mxu1 %v4722_v32 }
0x2154   :  { %5509 = vmatprep.subr.mxu1 %v4721_v56 }
0x2155   :  { %5510 = vmatpush3.msra.mxu1 %v4721_v56 }
0x2156   :  { %5511 = vmatprep.subr.mxu1 %v4720_v57 }
0x2157   :  { %5512 = vmatpush3.msra.mxu1 %v4720_v57 }
0x2158   :  { %5513 = vmatprep.subr.mxu1 %v4719_v63 }
0x2159   :  { %5514 = vmatpush3.msra.mxu1 %v4719_v63 }
0x215a   :  { %5515 = vmatprep.subr.mxu1 %v4718_v3 }
0x215b   :  { %5516 = vmatpush3.msra.mxu1 %v4718_v3 }
0x215c   :  { %5517 = vmatprep.subr.mxu1 %v4717_v9 }
0x215d   :  { %5518 = vmatpush3.msra.mxu1 %v4717_v9 }
0x215e   :  { %5519 = vmatprep.subr.mxu1 %v4716_v0 }
0x215f   :  { %5520 = vmatpush3.msra.mxu1 %v4716_v0 }
0x2210   :  { %v4556_v24 = vpop.f32.mrf.mxu1 }
0x2211   :  { %v4560_v6 = vadd.f32 %v4556_v24, %v4313_v19 }
0x2212   :  { %v5493_v25 = vpop.f32.mrf.mxu1 }
0x2213   :  { %4561 = vst.msk [vmem:[#allocation2 + $0x8] sm:$0xff] %vm101_vm0, %v4560_v6 }
0x221a   :  { %v4566_v30 = vld [vmem:[#allocation2 + $0x8] sm:$0xff] }
0x221b   :  { %v4568_v8 = vadd.f32 %v4566_v30, %v6157_v62 }
0x221d   :  { %v4577_v53 = vadd.f32 %v6457_v39, %v4568_v8  ;;  %v4622_v39 = vld [vmem:[%s6595_s18] sm:$0xff] }
0x221e   :  { %5500 = vmatprep.subr.mxu0 %v4622_v39 }
0x221f   :  { %v4583_v31 = vsel %vm101_vm0, %v4577_v53, 0.0  ;;  %5501 = vmatpush3.msra.mxu0 %v4622_v39 }
0x2220   :  { %4584 = vadd.xlane.f32.xlu0 %v4583_v31 }
0x2224   :  { %4593 = vadd.xlane.f32.xlu0 %v4592_v7 }
0x22a9   :  { %v4585_v34 = vpop.xlane.xlu0 %4584 }
0x22aa   :  { %v4587_v33 = vmul.f32 0.03125, %v4585_v34 }
0x22ac   :  { %v4589_v51 = vsub.f32 %v4577_v53, %v4587_v33 }
0x22ad   :  { %v4594_v20 = vpop.xlane.xlu0 %4593 }
0x22ae   :  { %v4598_v36 = vmul.f32 0.03125, %v4594_v20  ;;  %v4591_v37 = vmul.f32 %v4589_v51, %v4589_v51 }
0x22b0   :  { %v4600_v38 = vadd.f32 1e-05, %v4598_v36  ;;  %v4595_v40 = vsel %vm101_vm0, %v4591_v37, 0.0 }
0x22b1   :  { %4596 = vadd.xlane.f32.xlu1 %v4595_v40 }
0x22b2   :  { %5606 = vrsqrt.f32 %v4600_v38 }
0x22bf   :  { %v5607_v62 = vpop.eup %5606 }
0x22c0   :  { %v4604_v35 = vmul.f32 %v5607_v62, %v4588_v10 }
0x22c2   :  { %v4612_v45 = vmul.f32 %v4989_v41, %v4604_v35 }
0x22c4   :  { %v6505_v43 = vadd.f32 %v4990_v44, %v4612_v45 }
0x22c6   :  { %5502 = vmatprep.mubr.msk.f32.mxu0 %vm101_vm0, %v6505_v43 }
0x233a   :  { %v4597_v58 = vpop.xlane.xlu1 %4596 }
0x233b   :  { %v4599_v59 = vmul.f32 0.03125, %v4597_v58 }
0x233d   :  { %v4601_v55 = vadd.f32 1e-05, %v4599_v59 }
0x233f   :  { %5608 = vrsqrt.f32 %v4601_v55 }
0x234c   :  { %v5609_v42 = vpop.eup %5608 }
0x234d   :  { %v4605_v48 = vmul.f32 %v5609_v42, %v4589_v51 }
0x234f   :  { %v4613_v60 = vmul.f32 %v4989_v41, %v4605_v48 }
0x2351   :  { %v4621_v61 = vadd.f32 %v4990_v44, %v4613_v60 }
0x2353   :  { %5503 = vmatmul.mubr.msk.f32.vlgmr.msra.gmra.mxu0 %vm101_vm0, %v4621_v61 }
0x2413   :  { %v5504_v26 = vpop.f32.mrf.mxu0 }
0x2414   :  { %v4711_v5 = vadd.f32 %v5504_v26, %v4991_v14 }
0x2415   :  { %v4705_v27 = vpop.f32.mrf.mxu0 }
0x2416   :  { %v4706_v1 = vadd.f32 %v4991_v14, %v4705_v27  ;;  %v4715_v15 = vmax.f32 %v4711_v5, 0.0 }
0x2418   :  { %v4714_v13 = vmax.f32 %v4706_v1, 0.0 }
0x241a   :  { %5521 = vmatprep.mubr.msk.f32.mxu1 %vm4731_vm4, %v4714_v13 }
0x241b   :  { %5522 = vmatmul.mubr.msk.f32.vlgmr.msra.gmra.mxu1 %vm4731_vm4, %v4715_v15 }
0x24db   :  { %v5523_v12 = vpop.f32.mrf.mxu1 }
0x24dc   :  { %v4810_v16 = vadd.f32 %v5523_v12, %v4994_v11 }
0x24dd   :  { %v4804_v17 = vpop.f32.mrf.mxu1 }
0x24de   :  { %v4814_v46 = vadd.f32 %v4810_v16, %v4621_v61  ;;  %v4805_v29 = vadd.f32 %v4994_v11, %v4804_v17 }
0x24e0   :  { %v4813_v4 = vadd.f32 %v4805_v29, %v6505_v43  ;;  %v4820_v18 = vsel %vm101_vm0, %v4814_v46, 0.0 }
0x24e1   :  { %4821 = vadd.xlane.f32.xlu1 %v4820_v18 }
0x24e2   :  { %v4817_v19 = vsel %vm101_vm0, %v4813_v4, 0.0 }
0x24e3   :  { %4818 = vadd.xlane.f32.xlu0 %v4817_v19 }
0x256a   :  { %v4822_v21 = vpop.xlane.xlu1 %4821 }
0x256b   :  { %v4824_v22 = vmul.f32 0.03125, %v4822_v21 }
0x256c   :  { %v4819_v23 = vpop.xlane.xlu0 %4818 }
0x256d   :  { %v4826_v24 = vsub.f32 %v4814_v46, %v4824_v22  ;;  %v4823_v6 = vmul.f32 0.03125, %v4819_v23 }
0x256f   :  { %v4825_v25 = vsub.f32 %v4813_v4, %v4823_v6  ;;  %v4828_v28 = vmul.f32 %v4826_v24, %v4826_v24 }
0x2571   :  { %v4832_v50 = vsel %vm101_vm0, %v4828_v28, 0.0  ;;  %v4827_v30 = vmul.f32 %v4825_v25, %v4825_v25 }
0x2572   :  { %4833 = vadd.xlane.f32.xlu1 %v4832_v50 }
0x2573   :  { %v4829_v10 = vsel %vm101_vm0, %v4827_v30, 0.0 }
0x2574   :  { %4830 = vadd.xlane.f32.xlu0 %v4829_v10 }
0x2575   :  { %5625 = shalt.err (!%p5622_p4)
}
0x2576   :  { %s5670_s1 = smov 128   ;;  %s5671_s2 = smov 8  }
0x2577   :  { %4874 = dma.vmem_to_hbm [thread:$0]  %s4869_s20, 256, %s6600_s23, [#allocation4], %s5670_s1, %s5670_s1, %s5671_s2  }
0x2578   :  { %s5634_s5 = scalar_lea.vmem %s4881_s13, 256  ;;  %p5639_p6 = scmp.lt.s32.totalorder %s4881_s13, %s4881_s13 }
0x2579   :  { %p5635_p5 = scmp.ne.s32.totalorder %s4881_s13, %s5634_s5  ;;  %p5640_p7 = scmp.lt.s32.totalorder %s5634_s5, %s5634_s5 }
0x257b   :  { %p5641_p8 = por %p5640_p7, %p5639_p6 }
0x257d   :  { %p5642_p9 = pnand %p5641_p8, %p5635_p5 }
0x257f   :  { %5645 = shalt.err (!%p5642_p9)
}
0x2580   :  { %4886 = dma.vmem_to_hbm [thread:$0]  %s4881_s13, 256, %s6601_s24, [#allocation6], %s5670_s1, %s5670_s1, %s5671_s2  }
0x2581   :  { %v4997_v51 = vld [vmem:[%s6593_s16] ss:$0 sm:$0xff] }
0x2582   :  { %v4998_v37 = vld [vmem:[%s6594_s17] ss:$0 sm:$0xff] }
0x25fb   :  { %v4834_v8 = vpop.xlane.xlu1 %4833 }
0x25fc   :  { %v4836_v53 = vmul.f32 0.03125, %v4834_v8 }
0x25fd   :  { %v4831_v31 = vpop.xlane.xlu0 %4830 }
0x25fe   :  { %v4838_v2 = vadd.f32 1e-05, %v4836_v53  ;;  %v4835_v7 = vmul.f32 0.03125, %v4831_v31 }
0x2600   :  { %5610 = vrsqrt.f32 %v4838_v2  ;;  %v4837_v34 = vadd.f32 1e-05, %v4835_v7 }
0x2602   :  { %5612 = vrsqrt.f32 %v4837_v34 }
0x260d   :  { %v5611_v33 = vpop.eup %5610 }
0x260e   :  { %v4842_v20 = vmul.f32 %v5611_v33, %v4826_v24 }
0x260f   :  { %v5613_v36 = vpop.eup %5612 }
0x2610   :  { %v4850_v38 = vmul.f32 %v4997_v51, %v4842_v20  ;;  %v4841_v40 = vmul.f32 %v5613_v36, %v4825_v25 }
0x2612   :  { %v4858_v62 = vadd.f32 %v4998_v37, %v4850_v38  ;;  %v4849_v41 = vmul.f32 %v4997_v51, %v4841_v40 }
0x2614   :  { %4860 = vst.msk [vmem:[%s6599_s22 + $0x8] sm:$0xff] %vm101_vm0, %v4858_v62  ;;  %v4857_v35 = vadd.f32 %v4998_v37, %v4849_v41 }
0x2616   :  { %4859 = vst.msk [vmem:[%s6599_s22] sm:$0xff] %vm101_vm0, %v4857_v35 }
0x2617   :  { %5654 = dma.done.wait [#allocation4], 256  }
0x2618   :  { %5655 = vsyncadd [#allocation4], 4294967040 }
0x2619   :  { %5656 = dma.done.wait [#allocation6], 256  }
0x261a   :  { %5657 = vsyncadd [#allocation6], 4294967040 }
0x261b   :  { %4895 = vsyncpa [#allocation4], 1 }
0x261c   :  { %4896 = vsyncpa [#allocation6], 1 }

</bundles_post_ra>
